<compile_context>
chip_gen: v7x
topology: tpu7x:2x2x1
jax: 0.10.0
libtpu: 0.0.40
codegen_flags: <defaults>
</compile_context>

<pallas_src>
import functools

import jax
import jax.numpy as jnp
from jax.experimental import pallas as pl
from jax.experimental.pallas import tpu as pltpu


# ----------------------------- fused Pallas kernel ---------------------------
def _encoder_kernel(x_ref, mask_ref, w1_ref, w2_ref, s_ref, out_ref, *, heads, c1, c2):
    """Both GATv2Conv layers + LeakyReLU/Tanh for ONE graph of the batch grid."""
    x = x_ref[...]                                   # (N, Fin)
    mask = mask_ref[...]                             # (N_t, N_s): 0.0 on edges, -1e30 off
    n = x.shape[0]
    slope = jnp.float32(0.2)

    def gatv2(h_in, w_ref, slab_row, out_ch):
        hc = heads * out_ch
        # static slices of the packed small-parameter slab
        bcat = s_ref[slab_row:slab_row + 1, :2 * hc]          # (1, 2*H*C) = [bl | br]
        att = s_ref[slab_row + 1:slab_row + 2, :hc]           # (1, H*C), head-major
        bias = s_ref[slab_row + 2:slab_row + 3, :out_ch]      # (1, C)

        # one fused matmul for lin_l and lin_r (w = [wl | wr])
        xw = jnp.dot(h_in, w_ref[...], preferred_element_type=jnp.float32) + bcat
        xl = xw[:, :hc]                              # source features, all heads
        xr = xw[:, hc:]                              # target features, all heads

        # GATv2 pairwise scores, all heads in a single elementwise pass:
        #   z[i, j, h*C+c] = leaky_relu(xl[j, h*C+c] + xr[i, h*C+c], 0.2)
        z = xl[None, :, :] + xr[:, None, :]          # (N_t, N_s, H*C)
        z = jnp.maximum(z, slope * z)                # LeakyReLU(0.2), slope in (0,1)
        zw = z * att[None]                           # fold the att multiply in once

        # per-head channel reduce (XLU) + additive mask; stack heads on rows so the
        # masked softmax below runs once for both heads.
        e_rows = [
            jnp.sum(zw[:, :, h * out_ch:(h + 1) * out_ch], axis=-1) + mask
            for h in range(heads)
        ]
        e = jnp.concatenate(e_rows, axis=0)          # (H*N_t, N_s)

        # masked row softmax (every row has at least a self-loop -> finite max;
        # masked entries underflow to exactly 0 after max-subtraction).
        e = e - jnp.max(e, axis=-1, keepdims=True)
        p = jnp.exp(e)
        alpha = p / jnp.sum(p, axis=-1, keepdims=True)   # exact reciprocal (tiny)

        # per-head aggregation (layer-1 slices 128-lane aligned; no concat materialize)
        acc = jnp.zeros((n, out_ch), jnp.float32)
        for h in range(heads):
            acc = acc + jnp.dot(alpha[h * n:(h + 1) * n, :],
                                xl[:, h * out_ch:(h + 1) * out_ch],
                                preferred_element_type=jnp.float32)
        return acc * jnp.float32(1.0 / heads) + bias      # concat=False -> head mean

    h1 = gatv2(x, w1_ref, 0, c1)
    h1 = jnp.maximum(h1, slope * h1)                 # LeakyReLU(0.2)
    h2 = gatv2(h1, w2_ref, 3, c2)
    out_ref[...] = jnp.tanh(h2)                      # Tanh


# ------------------------------ host-side packing -----------------------------
def edges_to_mask(edge_index, n):
    """Additive softmax mask: 0.0 on edges + self-loops, -1e30 elsewhere.

    edge_index[0] = source j, edge_index[1] = target i (PyG convention).
    add_self_loops=True (GATv2Conv default) -> diagonal forced on.
    """
    # TODO(synk): duplicate (multi-)edges collapse in the dense adjacency mask.
    src, dst = edge_index[0], edge_index[1]
    adj = jnp.zeros((n, n), jnp.bool_)
    adj = adj.at[dst, src].set(True)
    diag = jnp.arange(n)
    adj = adj.at[diag, diag].set(True)
    return jnp.where(adj, 0.0, -1e30).astype(jnp.float32)


def init_gatv2_params(key, in_ch, out_ch, heads):
    kwl, kwr, katt, kbl, kbr, kb = jax.random.split(key, 6)

    def glorot(k, shape):
        lim = (6.0 / (shape[0] + shape[1])) ** 0.5
        return jax.random.uniform(k, shape, jnp.float32, -lim, lim)

    return dict(
        wl=glorot(kwl, (in_ch, heads * out_ch)),
        bl=0.01 * jax.random.normal(kbl, (1, heads * out_ch), jnp.float32),
        wr=glorot(kwr, (in_ch, heads * out_ch)),
        br=0.01 * jax.random.normal(kbr, (1, heads * out_ch), jnp.float32),
        att=glorot(katt, (heads, out_ch)),
        bias=0.01 * jax.random.normal(kb, (1, out_ch), jnp.float32),
    )


def _pack_params(params):
    """Fuse lin_l/lin_r weights and pack all tiny per-layer params into one slab."""
    l1, l2 = params["layer1"], params["layer2"]
    heads, c1 = l1["att"].shape
    _, c2 = l2["att"].shape
    width = 2 * heads * max(c1, c2)

    def slab_rows(p, c):
        hc = heads * c
        r = jnp.zeros((3, width), jnp.float32)
        r = r.at[0, :2 * hc].set(jnp.concatenate([p["bl"], p["br"]], axis=1)[0])
        r = r.at[1, :hc].set(p["att"].reshape(-1))          # head-major, matches xl layout
        r = r.at[2, :c].set(p["bias"][0])
        return r

    slab = jnp.concatenate([slab_rows(l1, c1), slab_rows(l2, c2)], axis=0)   # (6, width)
    w1 = jnp.concatenate([l1["wl"], l1["wr"]], axis=1)       # (Fin, 2*H*C1)
    w2 = jnp.concatenate([l2["wl"], l2["wr"]], axis=1)       # (C1, 2*H*C2)
    return w1, w2, slab, heads, c1, c2


# ------------------------------ pallas_call wrappers ---------------------------
def encoder_ecolgat_batched(x_b, mask_b, params):
    """B independent graphs (shared weights) in one pallas_call, grid over B."""
    b, n, fin = x_b.shape
    w1, w2, slab, heads, c1, c2 = _pack_params(params)
    kernel = functools.partial(_encoder_kernel, heads=heads, c1=c1, c2=c2)

    return pl.pallas_call(
        kernel,
        out_shape=jax.ShapeDtypeStruct((b, n, c2), jnp.float32),
        grid=(b,),
        in_specs=[
            pl.BlockSpec((None, n, fin), lambda i: (i, 0, 0)),     # per-graph x
            pl.BlockSpec((None, n, n), lambda i: (i, 0, 0)),       # per-graph mask
            pl.BlockSpec(w1.shape, lambda i: (0, 0)),              # weights: resident
            pl.BlockSpec(w2.shape, lambda i: (0, 0)),
            pl.BlockSpec(slab.shape, lambda i: (0, 0)),            # packed small params
        ],
        out_specs=pl.BlockSpec((None, n, c2), lambda i: (i, 0, 0)),
        compiler_params=pltpu.CompilerParams(dimension_semantics=("parallel",)),
    )(x_b, mask_b, w1, w2, slab)


def encoder_ecolgat(x, edge_index, params):
    """Module-equivalent single-graph forward (grid of 1)."""
    n = x.shape[0]
    mask = edges_to_mask(edge_index, n)
    return encoder_ecolgat_batched(x[None], mask[None], params)[0]


# --------------------------- pure-JAX reference ------------------------------
def _gatv2_ref(x, adj, p, activation):
    heads, out_ch = p["att"].shape
    n = x.shape[0]
    xl = (x @ p["wl"] + p["bl"]).reshape(n, heads, out_ch)
    xr = (x @ p["wr"] + p["br"]).reshape(n, heads, out_ch)
    z = xl[None, :, :, :] + xr[:, None, :, :]                  # (N_t, N_s, H, C)
    z = jnp.where(z > 0, z, 0.2 * z)
    e = jnp.einsum("tshc,hc->hts", z, p["att"])
    e = jnp.where(adj[None] > 0, e, -1e30)
    e = e - e.max(-1, keepdims=True)
    pm = jnp.exp(e) * adj[None]
    alpha = pm / pm.sum(-1, keepdims=True)
    out = jnp.einsum("hts,shc->thc", alpha, xl).mean(axis=1) + p["bias"]
    if activation == "leaky_relu":
        return jnp.where(out > 0, out, 0.2 * out)
    return jnp.tanh(out)


def encoder_ref(x, edge_index, params):
    adj = (edges_to_mask(edge_index, x.shape[0]) == 0.0).astype(jnp.float32)
    h1 = _gatv2_ref(x, adj, params["layer1"], "leaky_relu")
    return _gatv2_ref(h1, adj, params["layer2"], "tanh")


# ---------------------------------- main --------------------------------------
if __name__ == "__main__":
    N, INPUT_LEN, DIM, HEADS = 16, 8, 32, 2
    B = 4   # batch of graphs sharing weights -> amortizes launch/DMA overhead

    key = jax.random.PRNGKey(0)
    kx, k1, k2 = jax.random.split(key, 3)
    xs = jax.random.normal(kx, (B, N, INPUT_LEN), jnp.float32)

    params = {
        "layer1": init_gatv2_params(k1, INPUT_LEN, 256, HEADS),
        "layer2": init_gatv2_params(k2, 256, DIM, HEADS),
    }

    # deterministic graphs: bidirectional ring + bidirectional skip-k chords (k varies per graph)
    idx = jnp.arange(N)
    edge_indices = []
    for g in range(B):
        skip = 2 + g
        src = jnp.concatenate([idx, (idx + 1) % N, idx, (idx + skip) % N])
        dst = jnp.concatenate([(idx + 1) % N, idx, (idx + skip) % N, idx])
        edge_indices.append(jnp.stack([src, dst], axis=0).astype(jnp.int32))   # (2, 64)
    masks = jnp.stack([edges_to_mask(ei, N) for ei in edge_indices])           # (B, N, N)

    # batched fused kernel (one launch for all B graphs)
    enc_b = jax.jit(encoder_ecolgat_batched)
    out_b = jax.block_until_ready(enc_b(xs, masks, params))
    assert out_b.shape == (B, N, DIM), out_b.shape

    # check every graph against the pure-JAX reference
    for g in range(B):
        ref = encoder_ref(xs[g], edge_indices[g], params)
        assert bool(jnp.allclose(out_b[g], ref, rtol=2e-3, atol=2e-3)), f"mismatch graph {g}"

    # module-equivalent single-graph forward path
    out1 = jax.block_until_ready(jax.jit(encoder_ecolgat)(xs[0], edge_indices[0], params))
    assert out1.shape == (N, DIM)
    assert bool(jnp.allclose(out1, out_b[0], rtol=1e-6, atol=1e-6)), "batched vs single mismatch"

    print("KERNEL_OK")
</pallas_src>

<mosaic_0001>
module attributes {stable_mosaic.version = 11 : i64} {
  func.func @_encoder_kernel(%arg0: i32, %arg1: memref<1x16x8xf32, #tpu.memory_space<vmem>>, %arg2: memref<1x16x16xf32, #tpu.memory_space<vmem>>, %arg3: memref<8x1024xf32, #tpu.memory_space<vmem>>, %arg4: memref<256x128xf32, #tpu.memory_space<vmem>>, %arg5: memref<6x1024xf32, #tpu.memory_space<vmem>>, %arg6: memref<1x16x32xf32, #tpu.memory_space<vmem>>) attributes {dimension_semantics = [#tpu.dimension_semantics<parallel>], iteration_bounds = array<i64: 4>, scalar_prefetch = 0 : i64, scratch_operands = 0 : i64, tpu.core_type = #tpu.core_type<tc>, window_params = [{transform_indices = @transform_0, window_bounds = array<i64: 1, 16, 8>}, {transform_indices = @transform_1, window_bounds = array<i64: 1, 16, 16>}, {pipeline_mode = #tpu.pipeline_mode<synchronous>, transform_indices = @transform_2, window_bounds = array<i64: 8, 1024>}, {pipeline_mode = #tpu.pipeline_mode<synchronous>, transform_indices = @transform_3, window_bounds = array<i64: 256, 128>}, {pipeline_mode = #tpu.pipeline_mode<synchronous>, transform_indices = @transform_4, window_bounds = array<i64: 6, 1024>}, {transform_indices = @transform_5, window_bounds = array<i64: 1, 16, 32>}]} {
    %c0 = arith.constant 0 : index
    %c0_0 = arith.constant 0 : index
    %c0_1 = arith.constant 0 : index
    %0 = vector.load %arg1[%c0, %c0_0, %c0_1] : memref<1x16x8xf32, #tpu.memory_space<vmem>>, vector<1x16x8xf32>
    %1 = vector.shape_cast %0 : vector<1x16x8xf32> to vector<16x8xf32>
    %c0_2 = arith.constant 0 : index
    %c0_3 = arith.constant 0 : index
    %c0_4 = arith.constant 0 : index
    %2 = vector.load %arg2[%c0_2, %c0_3, %c0_4] : memref<1x16x16xf32, #tpu.memory_space<vmem>>, vector<1x16x16xf32>
    %3 = vector.shape_cast %2 : vector<1x16x16xf32> to vector<16x16xf32>
    %c0_5 = arith.constant 0 : index
    %c0_6 = arith.constant 0 : index
    %4 = vector.load %arg5[%c0_5, %c0_6] : memref<6x1024xf32, #tpu.memory_space<vmem>>, vector<1x1024xf32>
    %c1 = arith.constant 1 : index
    %c0_7 = arith.constant 0 : index
    %5 = vector.load %arg5[%c1, %c0_7] : memref<6x1024xf32, #tpu.memory_space<vmem>>, vector<1x512xf32>
    %c2 = arith.constant 2 : index
    %c0_8 = arith.constant 0 : index
    %6 = vector.load %arg5[%c2, %c0_8] : memref<6x1024xf32, #tpu.memory_space<vmem>>, vector<1x256xf32>
    %c0_9 = arith.constant 0 : index
    %c0_10 = arith.constant 0 : index
    %7 = vector.load %arg3[%c0_9, %c0_10] : memref<8x1024xf32, #tpu.memory_space<vmem>>, vector<8x1024xf32>
    %cst = arith.constant dense<0.000000e+00> : vector<16x1024xf32>
    %8 = tpu.matmul %1, %7, %cst {dimension_numbers = #tpu.dot_dimension_numbers<[1], [0], [0], [1], [0, 0, 1, 1], [], []>} : vector<16x8xf32>, vector<8x1024xf32>, vector<16x1024xf32> -> vector<16x1024xf32>
    %9 = vector.broadcast %4 : vector<1x1024xf32> to vector<16x1024xf32>
    %10 = arith.addf %8, %9 : vector<16x1024xf32>
    %11 = vector.extract_strided_slice %10 {offsets = [0, 0], sizes = [16, 512], strides = [1, 1]} : vector<16x1024xf32> to vector<16x512xf32>
    %12 = vector.extract_strided_slice %10 {offsets = [0, 512], sizes = [16, 512], strides = [1, 1]} : vector<16x1024xf32> to vector<16x512xf32>
    %13 = vector.shape_cast %11 : vector<16x512xf32> to vector<1x16x512xf32>
    %14 = vector.shape_cast %12 : vector<16x512xf32> to vector<16x1x512xf32>
    %15 = vector.broadcast %13 : vector<1x16x512xf32> to vector<16x16x512xf32>
    %16 = vector.broadcast %14 : vector<16x1x512xf32> to vector<16x16x512xf32>
    %17 = arith.addf %15, %16 : vector<16x16x512xf32>
    %cst_11 = arith.constant 2.000000e-01 : f32
    %18 = vector.broadcast %cst_11 : f32 to vector<16x16x512xf32>
    %19 = arith.mulf %18, %17 : vector<16x16x512xf32>
    %20 = arith.maximumf %17, %19 : vector<16x16x512xf32>
    %21 = vector.shape_cast %5 : vector<1x512xf32> to vector<1x1x512xf32>
    %22 = vector.broadcast %21 : vector<1x1x512xf32> to vector<16x16x512xf32>
    %23 = arith.mulf %20, %22 : vector<16x16x512xf32>
    %24 = vector.extract_strided_slice %23 {offsets = [0, 0, 0], sizes = [16, 16, 256], strides = [1, 1, 1]} : vector<16x16x512xf32> to vector<16x16x256xf32>
    %cst_12 = arith.constant dense<0.000000e+00> : vector<16x16xf32>
    %25 = vector.multi_reduction <add>, %24, %cst_12 [2] : vector<16x16x256xf32> to vector<16x16xf32>
    %26 = arith.addf %25, %3 : vector<16x16xf32>
    %27 = vector.extract_strided_slice %23 {offsets = [0, 0, 256], sizes = [16, 16, 256], strides = [1, 1, 1]} : vector<16x16x512xf32> to vector<16x16x256xf32>
    %cst_13 = arith.constant dense<0.000000e+00> : vector<16x16xf32>
    %28 = vector.multi_reduction <add>, %27, %cst_13 [2] : vector<16x16x256xf32> to vector<16x16xf32>
    %29 = arith.addf %28, %3 : vector<16x16xf32>
    %30 = tpu.concatenate %26, %29 in 0 : vector<16x16xf32>, vector<16x16xf32> -> vector<32x16xf32>
    %cst_14 = arith.constant dense<0xFF800000> : vector<32xf32>
    %31 = vector.multi_reduction <maximumf>, %30, %cst_14 [1] : vector<32x16xf32> to vector<32xf32>
    %32 = vector.shape_cast %31 : vector<32xf32> to vector<32x1xf32>
    %33 = vector.broadcast %32 : vector<32x1xf32> to vector<32x16xf32>
    %34 = arith.subf %30, %33 : vector<32x16xf32>
    %35 = math.exp %34 : vector<32x16xf32>
    %cst_15 = arith.constant dense<0.000000e+00> : vector<32xf32>
    %36 = vector.multi_reduction <add>, %35, %cst_15 [1] : vector<32x16xf32> to vector<32xf32>
    %37 = vector.shape_cast %36 : vector<32xf32> to vector<32x1xf32>
    %38 = vector.broadcast %37 : vector<32x1xf32> to vector<32x16xf32>
    %39 = arith.divf %35, %38 : vector<32x16xf32>
    %cst_16 = arith.constant 0.000000e+00 : f32
    %40 = vector.broadcast %cst_16 : f32 to vector<16x256xf32>
    %41 = vector.extract_strided_slice %39 {offsets = [0, 0], sizes = [16, 16], strides = [1, 1]} : vector<32x16xf32> to vector<16x16xf32>
    %42 = vector.extract_strided_slice %11 {offsets = [0, 0], sizes = [16, 256], strides = [1, 1]} : vector<16x512xf32> to vector<16x256xf32>
    %cst_17 = arith.constant dense<0.000000e+00> : vector<16x256xf32>
    %43 = tpu.matmul %41, %42, %cst_17 {dimension_numbers = #tpu.dot_dimension_numbers<[1], [0], [0], [1], [0, 0, 1, 1], [], []>} : vector<16x16xf32>, vector<16x256xf32>, vector<16x256xf32> -> vector<16x256xf32>
    %44 = arith.addf %40, %43 : vector<16x256xf32>
    %45 = vector.extract_strided_slice %39 {offsets = [16, 0], sizes = [16, 16], strides = [1, 1]} : vector<32x16xf32> to vector<16x16xf32>
    %46 = vector.extract_strided_slice %11 {offsets = [0, 256], sizes = [16, 256], strides = [1, 1]} : vector<16x512xf32> to vector<16x256xf32>
    %cst_18 = arith.constant dense<0.000000e+00> : vector<16x256xf32>
    %47 = tpu.matmul %45, %46, %cst_18 {dimension_numbers = #tpu.dot_dimension_numbers<[1], [0], [0], [1], [0, 0, 1, 1], [], []>} : vector<16x16xf32>, vector<16x256xf32>, vector<16x256xf32> -> vector<16x256xf32>
    %48 = arith.addf %44, %47 : vector<16x256xf32>
    %cst_19 = arith.constant 5.000000e-01 : f32
    %49 = vector.broadcast %cst_19 : f32 to vector<16x256xf32>
    %50 = arith.mulf %48, %49 : vector<16x256xf32>
    %51 = vector.broadcast %6 : vector<1x256xf32> to vector<16x256xf32>
    %52 = arith.addf %50, %51 : vector<16x256xf32>
    %cst_20 = arith.constant 2.000000e-01 : f32
    %53 = vector.broadcast %cst_20 : f32 to vector<16x256xf32>
    %54 = arith.mulf %53, %52 : vector<16x256xf32>
    %55 = arith.maximumf %52, %54 : vector<16x256xf32>
    %c3 = arith.constant 3 : index
    %c0_21 = arith.constant 0 : index
    %56 = vector.load %arg5[%c3, %c0_21] : memref<6x1024xf32, #tpu.memory_space<vmem>>, vector<1x128xf32>
    %c4 = arith.constant 4 : index
    %c0_22 = arith.constant 0 : index
    %57 = vector.load %arg5[%c4, %c0_22] : memref<6x1024xf32, #tpu.memory_space<vmem>>, vector<1x64xf32>
    %c5 = arith.constant 5 : index
    %c0_23 = arith.constant 0 : index
    %58 = vector.load %arg5[%c5, %c0_23] : memref<6x1024xf32, #tpu.memory_space<vmem>>, vector<1x32xf32>
    %c0_24 = arith.constant 0 : index
    %c0_25 = arith.constant 0 : index
    %59 = vector.load %arg4[%c0_24, %c0_25] : memref<256x128xf32, #tpu.memory_space<vmem>>, vector<256x128xf32>
    %cst_26 = arith.constant dense<0.000000e+00> : vector<16x128xf32>
    %60 = tpu.matmul %55, %59, %cst_26 {dimension_numbers = #tpu.dot_dimension_numbers<[1], [0], [0], [1], [0, 0, 1, 1], [], []>} : vector<16x256xf32>, vector<256x128xf32>, vector<16x128xf32> -> vector<16x128xf32>
    %61 = vector.broadcast %56 : vector<1x128xf32> to vector<16x128xf32>
    %62 = arith.addf %60, %61 : vector<16x128xf32>
    %63 = vector.extract_strided_slice %62 {offsets = [0, 0], sizes = [16, 64], strides = [1, 1]} : vector<16x128xf32> to vector<16x64xf32>
    %64 = vector.extract_strided_slice %62 {offsets = [0, 64], sizes = [16, 64], strides = [1, 1]} : vector<16x128xf32> to vector<16x64xf32>
    %65 = vector.shape_cast %63 : vector<16x64xf32> to vector<1x16x64xf32>
    %66 = vector.shape_cast %64 : vector<16x64xf32> to vector<16x1x64xf32>
    %67 = vector.broadcast %65 : vector<1x16x64xf32> to vector<16x16x64xf32>
    %68 = vector.broadcast %66 : vector<16x1x64xf32> to vector<16x16x64xf32>
    %69 = arith.addf %67, %68 : vector<16x16x64xf32>
    %cst_27 = arith.constant 2.000000e-01 : f32
    %70 = vector.broadcast %cst_27 : f32 to vector<16x16x64xf32>
    %71 = arith.mulf %70, %69 : vector<16x16x64xf32>
    %72 = arith.maximumf %69, %71 : vector<16x16x64xf32>
    %73 = vector.shape_cast %57 : vector<1x64xf32> to vector<1x1x64xf32>
    %74 = vector.broadcast %73 : vector<1x1x64xf32> to vector<16x16x64xf32>
    %75 = arith.mulf %72, %74 : vector<16x16x64xf32>
    %76 = vector.extract_strided_slice %75 {offsets = [0, 0, 0], sizes = [16, 16, 32], strides = [1, 1, 1]} : vector<16x16x64xf32> to vector<16x16x32xf32>
    %cst_28 = arith.constant dense<0.000000e+00> : vector<16x16xf32>
    %77 = vector.multi_reduction <add>, %76, %cst_28 [2] : vector<16x16x32xf32> to vector<16x16xf32>
    %78 = arith.addf %77, %3 : vector<16x16xf32>
    %79 = vector.extract_strided_slice %75 {offsets = [0, 0, 32], sizes = [16, 16, 32], strides = [1, 1, 1]} : vector<16x16x64xf32> to vector<16x16x32xf32>
    %cst_29 = arith.constant dense<0.000000e+00> : vector<16x16xf32>
    %80 = vector.multi_reduction <add>, %79, %cst_29 [2] : vector<16x16x32xf32> to vector<16x16xf32>
    %81 = arith.addf %80, %3 : vector<16x16xf32>
    %82 = tpu.concatenate %78, %81 in 0 : vector<16x16xf32>, vector<16x16xf32> -> vector<32x16xf32>
    %cst_30 = arith.constant dense<0xFF800000> : vector<32xf32>
    %83 = vector.multi_reduction <maximumf>, %82, %cst_30 [1] : vector<32x16xf32> to vector<32xf32>
    %84 = vector.shape_cast %83 : vector<32xf32> to vector<32x1xf32>
    %85 = vector.broadcast %84 : vector<32x1xf32> to vector<32x16xf32>
    %86 = arith.subf %82, %85 : vector<32x16xf32>
    %87 = math.exp %86 : vector<32x16xf32>
    %cst_31 = arith.constant dense<0.000000e+00> : vector<32xf32>
    %88 = vector.multi_reduction <add>, %87, %cst_31 [1] : vector<32x16xf32> to vector<32xf32>
    %89 = vector.shape_cast %88 : vector<32xf32> to vector<32x1xf32>
    %90 = vector.broadcast %89 : vector<32x1xf32> to vector<32x16xf32>
    %91 = arith.divf %87, %90 : vector<32x16xf32>
    %cst_32 = arith.constant 0.000000e+00 : f32
    %92 = vector.broadcast %cst_32 : f32 to vector<16x32xf32>
    %93 = vector.extract_strided_slice %91 {offsets = [0, 0], sizes = [16, 16], strides = [1, 1]} : vector<32x16xf32> to vector<16x16xf32>
    %94 = vector.extract_strided_slice %63 {offsets = [0, 0], sizes = [16, 32], strides = [1, 1]} : vector<16x64xf32> to vector<16x32xf32>
    %cst_33 = arith.constant dense<0.000000e+00> : vector<16x32xf32>
    %95 = tpu.matmul %93, %94, %cst_33 {dimension_numbers = #tpu.dot_dimension_numbers<[1], [0], [0], [1], [0, 0, 1, 1], [], []>} : vector<16x16xf32>, vector<16x32xf32>, vector<16x32xf32> -> vector<16x32xf32>
    %96 = arith.addf %92, %95 : vector<16x32xf32>
    %97 = vector.extract_strided_slice %91 {offsets = [16, 0], sizes = [16, 16], strides = [1, 1]} : vector<32x16xf32> to vector<16x16xf32>
    %98 = vector.extract_strided_slice %63 {offsets = [0, 32], sizes = [16, 32], strides = [1, 1]} : vector<16x64xf32> to vector<16x32xf32>
    %cst_34 = arith.constant dense<0.000000e+00> : vector<16x32xf32>
    %99 = tpu.matmul %97, %98, %cst_34 {dimension_numbers = #tpu.dot_dimension_numbers<[1], [0], [0], [1], [0, 0, 1, 1], [], []>} : vector<16x16xf32>, vector<16x32xf32>, vector<16x32xf32> -> vector<16x32xf32>
    %100 = arith.addf %96, %99 : vector<16x32xf32>
    %cst_35 = arith.constant 5.000000e-01 : f32
    %101 = vector.broadcast %cst_35 : f32 to vector<16x32xf32>
    %102 = arith.mulf %100, %101 : vector<16x32xf32>
    %103 = vector.broadcast %58 : vector<1x32xf32> to vector<16x32xf32>
    %104 = arith.addf %102, %103 : vector<16x32xf32>
    %105 = math.tanh %104 : vector<16x32xf32>
    %c0_36 = arith.constant 0 : index
    %c0_37 = arith.constant 0 : index
    %c0_38 = arith.constant 0 : index
    %106 = vector.load %arg6[%c0_36, %c0_37, %c0_38] : memref<1x16x32xf32, #tpu.memory_space<vmem>>, vector<1x16x32xf32>
    %107 = vector.shape_cast %106 : vector<1x16x32xf32> to vector<16x32xf32>
    %108 = vector.shape_cast %105 : vector<16x32xf32> to vector<1x16x32xf32>
    tpu.vector_store %arg6[%c0_36, %c0_37, %c0_38], %108 {strides = array<i32>} : memref<1x16x32xf32, #tpu.memory_space<vmem>>, vector<1x16x32xf32>,
    return
  }
  func.func @transform_0(%arg0: i32) -> (i32, i32, i32) {
    %c0_i32 = arith.constant 0 : i32
    %c0_i32_0 = arith.constant 0 : i32
    %c0_i32_1 = arith.constant 0 : i32
    return %arg0, %c0_i32, %c0_i32_0 : i32, i32, i32
  }
  func.func @transform_1(%arg0: i32) -> (i32, i32, i32) {
    %c0_i32 = arith.constant 0 : i32
    %c0_i32_0 = arith.constant 0 : i32
    %c0_i32_1 = arith.constant 0 : i32
    return %arg0, %c0_i32, %c0_i32_0 : i32, i32, i32
  }
  func.func @transform_2(%arg0: i32) -> (i32, i32) {
    %c0_i32 = arith.constant 0 : i32
    %c0_i32_0 = arith.constant 0 : i32
    %c0_i32_1 = arith.constant 0 : i32
    return %c0_i32, %c0_i32_0 : i32, i32
  }
  func.func @transform_3(%arg0: i32) -> (i32, i32) {
    %c0_i32 = arith.constant 0 : i32
    %c0_i32_0 = arith.constant 0 : i32
    %c0_i32_1 = arith.constant 0 : i32
    return %c0_i32, %c0_i32_0 : i32, i32
  }
  func.func @transform_4(%arg0: i32) -> (i32, i32) {
    %c0_i32 = arith.constant 0 : i32
    %c0_i32_0 = arith.constant 0 : i32
    %c0_i32_1 = arith.constant 0 : i32
    return %c0_i32, %c0_i32_0 : i32, i32
  }
  func.func @transform_5(%arg0: i32) -> (i32, i32, i32) {
    %c0_i32 = arith.constant 0 : i32
    %c0_i32_0 = arith.constant 0 : i32
    %c0_i32_1 = arith.constant 0 : i32
    return %arg0, %c0_i32, %c0_i32_0 : i32, i32, i32
  }
}

</mosaic_0001>

<bundles_post_ra>
// kernel: encoder_ecolgat_batched.1
= control target key start
LH: loop header
LB: loop body
LE: loop exit
PB: predicated region body
PF: predicated region fallthrough
CT: control target
= control target key end

     0   :  { %10 = vsyncpa [#allocation3], 0  ;;  %s6871_s0 = inlined_call_operand.vmem [shape: f32[4,16,8], index: 0, kind: input, shape index: {}]   ;;  %s6872_s1 = inlined_call_operand.vmem [shape: f32[4,16,16], index: 1, kind: input, shape index: {}]   ;;  %s6873_s2 = inlined_call_operand.vmem [shape: f32[8,1024], index: 2, kind: input, shape index: {}]   ;;  %s6874_s3 = inlined_call_operand.vmem [shape: f32[256,128], index: 3, kind: input, shape index: {}]   ;;  %s6875_s4 = inlined_call_operand.vmem [shape: f32[6,1024], index: 4, kind: input, shape index: {}]   ;;  %s6876_s5 = inlined_call_operand.hbm [shape: f32[4,16,32], index: 5, kind: output, shape index: {}]  }
   0x1   :  { %12 = vsyncpa [#allocation3 + $0x1], 0  ;;  %s4968_s18 = smov 0   ;;  %s4970_s19 = smov 0  }
   0x2   :  { %s4972_s20 = smov 0   ;;  %s4974_s21 = smov 0  }
   0x3 LB: > { %s4989_s22 = sadd.s32 4294967295, %s4928_s21   ;;  %s4625_s23 = sadd.s32 4294967294, %s4928_s21   ;;  %s4928_s21 = sphi %s4974_s21, %s6990_s21   ;;  %s4924_s20 = sphi %s4972_s20, %s6989_s20   ;;  %s4920_s19 = sphi %s4970_s19, %s6988_s19   ;;  %s4916_s18 = sphi %s4968_s18, %s6987_s18  }
   0x4   : > { %s4993_s24 = sadd.s32 1, %s4928_s21   ;;  %s140_s25 = sadd.s32 1, %s4924_s20 }
   0x5   : > { %s137_s26 = ssub.s32 %s4928_s21, %s4993_s24  ;;  %p150_p0 = scmp.ne.s32.totalorder %s4924_s20, %s4920_s19 }
   0x6   : > { %p138_p1 = scmp.eq.s32.totalorder %s137_s26, 0  ;;  %p151_p2 = scmp.eq.s32.totalorder %s4989_s22, 3 }
   0x7   : > { %p156_p3 = scmp.ne.s32.totalorder %s4920_s19, %s4916_s18  ;;  %p157_p4 = scmp.eq.s32.totalorder %s4625_s23, 3 }
   0x8   : > { %s5004_s27 = scalar_select %p138_p1, %s4924_s20, %s140_s25  }
   0x9   : > { %p5006_p5 = por %p151_p2, %p150_p0  ;;  %p5010_p6 = por %p157_p4, %p156_p3 }
   0xa   : > { %p4628_p7 = scmp.ge.s32.totalorder %s4928_s21, 1  ;;  %p200_p8 = scmp.lt.s32.totalorder %s4928_s21, 5 }
   0xc   : > { %p201_p9 = pnand %p4628_p7, %p200_p8 }
   0xe   : > { %204 = sbr.rel (%p201_p9) target bundleno = 3046 (0xbe6), region = 40 }
  0x15   : > { %v255_v0 = vld [vmem:[%s6873_s2 + $0x8] sm:$0xff]  ;;  %v254_v1 = vld [vmem:[%s6873_s2] sm:$0xff]  ;;  %p233_p10 = scmp.lt.s32.totalorder %s4989_s22, 3  ;;  %v257_v2 = vld [vmem:[%s6873_s2 + $0x18] sm:$0xff]  ;;  %v6879_v3 = vlaneseq  ;;  %v6877_v4 = vmov 0.0   ;;  %vm303_vm0 = vcmask 64512  }
  0x16   : > { %310 = vmatprep.subr.mxu0 %v255_v0  ;;  %374 = vmatprep.mubr.f32.mxu0 %v6877_v4  ;;  %v256_v5 = vld [vmem:[%s6873_s2 + $0x10] sm:$0xff]  ;;  %v261_v6 = vld [vmem:[%s6873_s2 + $0x38] sm:$0xff]  ;;  %v259_v11 = vld [vmem:[%s6873_s2 + $0x28] sm:$0xff]  ;;  %v4931_v35 = vmov 1966171168   ;;  %vm2220_vm1 = vcmask 130112  }
  0x17   : > { %311 = vmatpush1.msra.mxu0 %v254_v1  ;;  %s234_s15 = scalar_select %p233_p10, %s4989_s22, 3  ;;  %4768 = vmatprep.subr.mxu1 %v257_v2  ;;  %v5035_v7 = vshrl.u32 %v6879_v3, 7  ;;  %v260_v12 = vld [vmem:[%s6873_s2 + $0x30] sm:$0xff]  ;;  %v258_v18 = vld [vmem:[%s6873_s2 + $0x20] sm:$0xff]  ;;  %v631_v36 = vunpack.c.l.s4 %v4931_v35  ;;  %vm2357_vm2 = vcmask 1041409   ;;  %vm2359_vm3 = vcmask 1042434  }
  0x18   : > { %387 = vmatprep.subr.mxu0 %v257_v2  ;;  %4769 = vmatpush1.msra.mxu1 %v256_v5  ;;  %v247_v22 = vld [vmem:[%s6875_s4] ss:$8 sm:$0xf]  ;;  %vm2361_vm4 = vcmask 1043459   ;;  %vm2363_vm5 = vcmask 1044484   ;;  %vm2365_vm6 = vcmask 1045509  }
  0x19   : > { %6923 = vst [vmem:[#allocation5_spill] sm:$0xff] %v5035_v7  ;;  %s4657_s16 = sshll.u32 %s234_s15, 4  ;;  %457 = vmatprep.mubr.f32.mxu1 %v6877_v4  ;;  %541 = vmatprep.subr.mxu1 %v261_v6  ;;  %v5039_v8 = vsub.s32 0, %v5035_v7  ;;  %v5059_v14 = vsub.s32 1, %v5035_v7  ;;  %v5067_v17 = vsub.s32 2, %v5035_v7  ;;  %v5078_v20 = vsub.s32 3, %v5035_v7 }
  0x1a   : > { %s237_s25 = scalar_lea.vmem %s6871_s0, %s4657_s16  ;;  %s5047_s6 = scalar_lea.vmem %s6872_s1, %s4657_s16  ;;  %v248_v23 = vld [vmem:[%s6875_s4] ss:$8 sm:$0xf0]  ;;  %v5094_v24 = vsub.s32 6, %v5035_v7  ;;  %v5099_v26 = vsub.s32 7, %v5035_v7  ;;  %v5108_v39 = vsub.s32 4, %v5035_v7  ;;  %v632_v48 = vunpack.c.0.s8 %v631_v36 }
  0x1b   : > { %6924 = vst [vmem:[#allocation6_spill] sm:$0xff] %v5039_v8  ;;  %v243_v9 = vld [vmem:[%s237_s25] sm:$0xff]  ;;  %6925 = vst [vmem:[#allocation7_spill] sm:$0xff] %v5059_v14  ;;  %v244_v15 = vld [vmem:[%s237_s25 + $0x8] sm:$0xff]  ;;  %v249_v27 = vor.u32 %v248_v23, %v247_v22  ;;  %v5111_v40 = vsub.s32 5, %v5035_v7  ;;  %vm2367_vm7 = vcmask 1046534  }
  0x1c   : > { %v245_v10 = vld [vmem:[%s5047_s6] sm:$0xff]  ;;  %4636 = vmatmul.mubr.msk.f32.vlgmr.msra.gmra.mrb[0].mxu0 %vm303_vm0, %v243_v9  ;;  %4639 = vmatmul.mubr.msk.f32.vlgmr.msra.gmra.mrb[0].mxu1 %vm303_vm0, %v244_v15  ;;  %v5129_v63 = vsub.s32 %v632_v48, %v5035_v7  ;;  %vm2369_vm8 = vcmask 1047559   ;;  %vm2668_vm9 = vcmask 130048   ;;  %s4933_s7 = smov 64   ;;  %s4934_s10 = smov 96   ;;  %vm3356_vm10 = vcmask 261120  }
  0x1d   : > { %v1716_v13 = vrot.slane %v245_v10, %v5039_v8  ;;  %380 = vmatprep.mubr.f32.mxu0 %v6877_v4  ;;  %388 = vmatpush1.msra.mxu0 %v256_v5  ;;  %v1727_v16 = vrot.slane %v245_v10, %v5059_v14  ;;  %v1738_v19 = vrot.slane %v245_v10, %v5067_v17  ;;  %s230_s13 = sand.u32 1, %s4920_s19   ;;  %s4659_s15 = sshll.u32 %s4989_s22, 8 }
  0x1e   : > { %464 = vmatprep.subr.mxu0 %v259_v11  ;;  %542 = vmatpush1.msra.mxu1 %v260_v12  ;;  %v1749_v21 = vrot.slane %v245_v10, %v5078_v20  ;;  %v290_v31 = vrot.slane %v249_v27, %v5094_v24  ;;  %v278_v33 = vrot.slane %v249_v27, %v5078_v20  ;;  %s4629_s14 = sshll.u32 %s230_s13, 4  ;;  %s6824_s26 = scalar_lea.hbm %s6876_s5, %s4659_s15 }
  0x1f   : > { %605 = vmatprep.mubr.f32.mxu1 %v6877_v4  ;;  %1722 = vbcast.lane.b32.xlu1 %v1716_v13, 264  ;;  %v294_v34 = vrot.slane %v249_v27, %v5099_v26  ;;  %v274_v38 = vrot.slane %v249_v27, %v5067_v17  ;;  %v270_v44 = vrot.slane %v249_v27, %v5059_v14  ;;  %s232_s16 = scalar_lea.vmem [#allocation2], %s4629_s14  ;;  %s6830_s30 = scalar_lea.sflag [#allocation3], %s230_s13 }
  0x20   : > { %4637 = vmatmul.mubr.msk.f32.gmra.mrb[2].mxu0 %vm303_vm0, %v244_v15  ;;  %1718 = vbcast.lane.b32.xlu0 %v1716_v13, 256  ;;  %v282_v52 = vrot.slane %v249_v27, %v5108_v39  ;;  %v286_v53 = vrot.slane %v249_v27, %v5111_v40  ;;  %6926 = vst [vmem:[#allocation8_spill] sm:$0xff] %v5129_v63  ;;  %v4634_v13 = vld [vmem:[%s6875_s4 + $0x1] ss:$8 sm:$0xf]  ;;  %s4551_s17 = sshll.u32 %s232_s16, 4  ;;  %s6826_s17 = int_to_ptr.vmem [resolvable:$true] %s4551_s17 }
  0x21   : > { %451 = vmatprep.mubr.f32.mxu0 %v6877_v4  ;;  %4642 = vmatmul.mubr.msk.f32.vlgmr.msra.gmra.mrb[2].mxu1 %vm303_vm0, %v243_v9  ;;  %v5152_v35 = vrot.slane %v4634_v13, %v5078_v20  ;;  %v5155_v36 = vrot.slane %v4634_v13, %v5039_v8  ;;  %s4866_s22 = scalar_lea.vmem %s6826_s17, 256 }
  0x22   : > { %611 = vmatprep.mubr.f32.mxu1 %v6877_v4  ;;  %p4867_p11 = scmp.ne.s32.totalorder %s6826_s17, %s4866_s22 }
  0x23   : > { %1729 = vbcast.lane.b32.xlu1 %v1727_v16, 256 }
  0x24   : > { %4638 = vmatmul.mubr.msk.f32.vlgmr.msra.gmra.mrb[4].mxu0 %vm303_vm0, %v243_v9  ;;  %1740 = vbcast.lane.b32.xlu0 %v1738_v19, 256  ;;  %p4868_p12 = pnand %p4867_p11, %p5006_p5 }
  0x25   : > { %465 = vmatpush1.msra.mxu0 %v258_v18  ;;  %528 = vmatprep.mubr.f32.mxu0 %v6877_v4 }
  0x26   : > { %4643 = vmatmul.mubr.msk.f32.gmra.mrb[4].mxu1 %vm303_vm0, %v244_v15  ;;  %p4869_p13 = pneg %p4868_p12 }
  0x27   : > { %1733 = vbcast.lane.b32.xlu1 %v1727_v16, 264 }
  0x28   : > { %4640 = vmatmul.mubr.msk.f32.vlgmr.msra.gmra.mrb[6].mxu0 %vm303_vm0, %v243_v9  ;;  %1751 = vbcast.lane.b32.xlu0 %v1749_v21, 256 }
  0x29   : > { %534 = vmatprep.mubr.f32.mxu0 %v6877_v4 }
  0x2b   : > { %1744 = vbcast.lane.b32.xlu1 %v1738_v19, 264 }
  0x2c   : > { %4641 = vmatmul.mubr.msk.f32.gmra.mrb[8].mxu0 %vm303_vm0, %v244_v15 }
  0x2d   : > { %2783 = vmatprep.mubr.f32.mxu0 %v6877_v4 }
  0x2f   : > { %1755 = vbcast.lane.b32.xlu1 %v1749_v21, 264 }
  0xef   : > { %v5096_v25 = vpop.f32.mrb[0].mxu0  ;;  %v459_v29 = vpop.f32.mrb[0].mxu1 }
  0xf0   : > { %v378_v28 = vpop.f32.mrb[1].mxu0  ;;  %v461_v30 = vpop.f32.mrb[1].mxu1  ;;  %v5116_v49 = vadd.f32 %v459_v29, %v274_v38 }
  0xf1   : > { %v5114_v46 = vadd.f32 %v461_v30, %v278_v33  ;;  %v5126_v61 = vadd.f32 %v378_v28, %v270_v44  ;;  %v266_v28 = vrot.slane %v249_v27, %v5039_v8 }
  0xf3   : > { %v5102_v32 = vpop.f32.mrb[2].mxu0 }
  0xf4   : > { %v384_v37 = vpop.f32.mrb[3].mxu0  ;;  %v607_v41 = vpop.f32.mrb[2].mxu1  ;;  %v5163_v48 = vadd.f32 %v5102_v32, %v266_v28 }
  0xf5   : > { %v608_v42 = vadd.f32 %v607_v41, %v290_v31  ;;  %v609_v43 = vpop.f32.mrb[3].mxu1  ;;  %v5122_v54 = vadd.f32 %v384_v37, %v270_v44 }
  0xf6   : > { %v610_v47 = vadd.f32 %v609_v43, %v294_v34  ;;  %6928 = vst [vmem:[#allocation10_spill] sm:$0xff] %v5163_v48 }
  0xf7   : > { %v453_v45 = vpop.f32.mrb[4].mxu0  ;;  %v4724_v10 = vpack.c.bf16 %v5122_v54, %v5126_v61 }
  0xf8   : > { %v5118_v50 = vadd.f32 %v453_v45, %v274_v38  ;;  %v455_v51 = vpop.f32.mrb[5].mxu0  ;;  %v628_v56 = vcombine.low %v608_v42, %v610_v47  ;;  %v629_v57 = vcombine.high %v608_v42, %v610_v47  ;;  %v5160_v47 = vadd.f32 %v5096_v25, %v266_v28 }
  0xf9   : > { %v5124_v55 = vadd.f32 %v455_v51, %v278_v33  ;;  %v613_v58 = vpop.f32.mrb[4].mxu1  ;;  %v5146_v33 = vrot.slane %v4634_v13, %v5059_v14 }
  0xfa   : > { %v614_v59 = vadd.f32 %v613_v58, %v290_v31  ;;  %v615_v60 = vpop.f32.mrb[5].mxu1  ;;  %v4722_v6 = vpack.c.bf16 %v5116_v49, %v5118_v50  ;;  %v650_v15 = vrot.slane %v628_v56, %v5129_v63  ;;  %v657_v16 = vrot.slane %v629_v57, %v5129_v63  ;;  %6927 = vst [vmem:[#allocation9_spill] sm:$0xff] %v5160_v47 }
  0xfb   : > { %v530_v62 = vpop.f32.mrb[6].mxu0  ;;  %v4720_v0 = vpack.c.bf16 %v5114_v46, %v5124_v55  ;;  %v616_v1 = vadd.f32 %v615_v60, %v294_v34  ;;  %v5149_v34 = vrot.slane %v4634_v13, %v5067_v17 }
  0xfc   : > { %v531_v2 = vadd.f32 %v530_v62, %v282_v52  ;;  %v532_v5 = vpop.f32.mrb[7].mxu0 }
  0xfd   : > { %v533_v9 = vadd.f32 %v532_v5, %v286_v53  ;;  %4721 = vmatprep.subr.bf16.mxu0 %v4720_v0  ;;  %v696_v11 = vcombine.low %v614_v59, %v616_v1  ;;  %v697_v12 = vcombine.high %v614_v59, %v616_v1 }
  0xfe   : > { %4723 = vmatpush1.bf16.msra.mxu0 %v4722_v6 }
  0xff   : > { %v626_v18 = vcombine.low %v531_v2, %v533_v9  ;;  %v627_v19 = vcombine.high %v531_v2, %v533_v9  ;;  %v536_v21 = vpop.f32.mrb[8].mxu0  ;;  %4725 = vmatprep.subr.bf16.mxu0 %v4724_v10  ;;  %v718_v44 = vrot.slane %v696_v11, %v5129_v63  ;;  %v725_v45 = vrot.slane %v697_v12, %v5129_v63 }
 0x100   : > { %v537_v22 = vadd.f32 %v536_v21, %v282_v52  ;;  %v538_v23 = vpop.f32.mrb[9].mxu0 }
 0x101   : > { %v636_v29 = vrot.slane %v626_v18, %v5129_v63  ;;  %v643_v30 = vrot.slane %v627_v19, %v5129_v63  ;;  %v539_v31 = vadd.f32 %v538_v23, %v286_v53 }
 0x103   : > { %v658_v37 = vcombine.low %v636_v29, %v650_v15  ;;  %v659_v38 = vcombine.high %v636_v29, %v650_v15  ;;  %v660_v27 = vcombine.low %v643_v30, %v657_v16  ;;  %v661_v41 = vcombine.high %v643_v30, %v657_v16 }
 0x104   : > { %v694_v42 = vcombine.low %v537_v22, %v539_v31  ;;  %v695_v43 = vcombine.high %v537_v22, %v539_v31 }
 0x105   : > { %v5166_v51 = vrot.slane %v658_v37, %v5129_v63  ;;  %v5169_v52 = vrot.slane %v659_v38, %v5129_v63  ;;  %v5172_v53 = vrot.slane %v660_v27, %v5129_v63  ;;  %v5175_v56 = vrot.slane %v661_v41, %v5129_v63 }
 0x106   : > { %v704_v57 = vrot.slane %v694_v42, %v5129_v63  ;;  %v711_v25 = vrot.slane %v695_v43, %v5129_v63 }
 0x107   : > { %v789_v32 = vrot.slane %v5169_v52, %v5067_v17  ;;  %v793_v58 = vrot.slane %v5169_v52, %v5078_v20  ;;  %v773_v59 = vrot.slane %v5166_v51, %v5067_v17  ;;  %v777_v60 = vrot.slane %v5166_v51, %v5078_v20 }
 0x108   : > { %v726_v62 = vcombine.low %v704_v57, %v718_v44  ;;  %v727_v0 = vcombine.high %v704_v57, %v718_v44  ;;  %v728_v1 = vcombine.low %v711_v25, %v725_v45  ;;  %v729_v2 = vcombine.high %v711_v25, %v725_v45 }
 0x109   : > { %v1092_v5 = vadd.f32 %v789_v32, %v5118_v50  ;;  %v1093_v6 = vadd.f32 %v793_v58, %v5124_v55  ;;  %v1084_v9 = vadd.f32 %v773_v59, %v5118_v50  ;;  %v1085_v10 = vadd.f32 %v777_v60, %v5124_v55 }
 0x10a   : > { %v5192_v11 = vrot.slane %v726_v62, %v5129_v63  ;;  %v5195_v12 = vrot.slane %v728_v1, %v5129_v63  ;;  %v5198_v13 = vrot.slane %v727_v0, %v5129_v63  ;;  %v5201_v15 = vrot.slane %v729_v2, %v5129_v63 }
 0x10b   : > { %v1220_v16 = vmul.f32 0.2, %v1092_v5  ;;  %v1221_v18 = vmul.f32 0.2, %v1093_v6  ;;  %v1212_v19 = vmul.f32 0.2, %v1084_v9  ;;  %v1096_v21 = vadd.f32 %v789_v32, %v5116_v49 }
 0x10c   : > { %v1213_v22 = vmul.f32 0.2, %v1085_v10  ;;  %v1097_v23 = vadd.f32 %v793_v58, %v5114_v46  ;;  %v1088_v28 = vadd.f32 %v773_v59, %v5116_v49  ;;  %v1089_v29 = vadd.f32 %v777_v60, %v5114_v46 }
 0x10d   : > { %v1348_v30 = vmax.f32 %v1092_v5, %v1220_v16  ;;  %v1349_v31 = vmax.f32 %v1093_v6, %v1221_v18  ;;  %v1340_v37 = vmax.f32 %v1084_v9, %v1212_v19  ;;  %v1224_v38 = vmul.f32 0.2, %v1096_v21 }
 0x10e   : > { %v1341_v27 = vmax.f32 %v1085_v10, %v1213_v22  ;;  %v1225_v41 = vmul.f32 0.2, %v1097_v23  ;;  %v1216_v42 = vmul.f32 0.2, %v1088_v28  ;;  %v1217_v43 = vmul.f32 0.2, %v1089_v29 }
 0x10f   : > { %v1497_v44 = vmul.f32 %v5149_v34, %v1348_v30  ;;  %v1498_v45 = vmul.f32 %v5152_v35, %v1349_v31  ;;  %v1489_v57 = vmul.f32 %v5149_v34, %v1340_v37  ;;  %v1352_v25 = vmax.f32 %v1096_v21, %v1224_v38 }
 0x110   : > { %v1490_v32 = vmul.f32 %v5152_v35, %v1341_v27  ;;  %v1353_v58 = vmax.f32 %v1097_v23, %v1225_v41  ;;  %v1344_v59 = vmax.f32 %v1088_v28, %v1216_v42  ;;  %v1345_v60 = vmax.f32 %v1089_v29, %v1217_v43 }
 0x111   : > { %v1959_v62 = vadd.f32 %v1498_v45, %v1497_v44  ;;  %v1501_v0 = vmul.f32 %v5149_v34, %v1352_v25  ;;  %v837_v1 = vrot.slane %v5172_v53, %v5067_v17  ;;  %v841_v2 = vrot.slane %v5172_v53, %v5078_v20 }
 0x112   : > { %v1953_v5 = vadd.f32 %v1490_v32, %v1489_v57  ;;  %v1502_v6 = vmul.f32 %v5152_v35, %v1353_v58  ;;  %v1493_v9 = vmul.f32 %v5149_v34, %v1344_v59  ;;  %v1494_v10 = vmul.f32 %v5152_v35, %v1345_v60 }
 0x113   : > { %1960 = vadd.xlane.f32.xlu1 %v1959_v62  ;;  %v1120_v16 = vadd.f32 %v837_v1, %v5116_v49  ;;  %v1121_v18 = vadd.f32 %v841_v2, %v5114_v46  ;;  %v1116_v19 = vadd.f32 %v837_v1, %v5118_v50  ;;  %v1117_v21 = vadd.f32 %v841_v2, %v5124_v55 }
 0x114   : > { %1954 = vadd.xlane.f32.xlu0 %v1953_v5  ;;  %v1962_v22 = vadd.f32 %v1502_v6, %v1501_v0  ;;  %v1956_v23 = vadd.f32 %v1494_v10, %v1493_v9  ;;  %v853_v28 = vrot.slane %v5175_v56, %v5067_v17  ;;  %v857_v29 = vrot.slane %v5175_v56, %v5078_v20 }
 0x115   : > { %v1248_v30 = vmul.f32 0.2, %v1120_v16  ;;  %v1249_v31 = vmul.f32 0.2, %v1121_v18  ;;  %v1244_v37 = vmul.f32 0.2, %v1116_v19  ;;  %v765_v38 = vrot.slane %v5166_v51, %v5039_v8 }
 0x116   : > { %v1245_v27 = vmul.f32 0.2, %v1117_v21  ;;  %v1128_v41 = vadd.f32 %v853_v28, %v5116_v49  ;;  %v1129_v42 = vadd.f32 %v857_v29, %v5114_v46  ;;  %v1124_v43 = vadd.f32 %v853_v28, %v5118_v50 }
 0x117   : > { %1963 = vadd.xlane.f32.xlu1 %v1962_v22  ;;  %v1376_v44 = vmax.f32 %v1120_v16, %v1248_v30  ;;  %v1377_v45 = vmax.f32 %v1121_v18, %v1249_v31  ;;  %v1372_v57 = vmax.f32 %v1116_v19, %v1244_v37  ;;  %v1125_v25 = vadd.f32 %v857_v29, %v5124_v55 }
 0x118   : > { %1957 = vadd.xlane.f32.xlu0 %v1956_v23  ;;  %v1373_v32 = vmax.f32 %v1117_v21, %v1245_v27  ;;  %v1256_v58 = vmul.f32 0.2, %v1128_v41  ;;  %v1257_v59 = vmul.f32 0.2, %v1129_v42  ;;  %v1252_v60 = vmul.f32 0.2, %v1124_v43 }
 0x119   : > { %v1525_v62 = vmul.f32 %v5149_v34, %v1376_v44  ;;  %v1526_v0 = vmul.f32 %v5152_v35, %v1377_v45  ;;  %v1521_v1 = vmul.f32 %v5149_v34, %v1372_v57  ;;  %v1253_v2 = vmul.f32 0.2, %v1125_v25 }
 0x11a   : > { %v1522_v5 = vmul.f32 %v5152_v35, %v1373_v32  ;;  %v1384_v6 = vmax.f32 %v1128_v41, %v1256_v58  ;;  %v1385_v9 = vmax.f32 %v1129_v42, %v1257_v59  ;;  %v1380_v10 = vmax.f32 %v1124_v43, %v1252_v60 }
 0x11b   : > { %v1980_v16 = vadd.f32 %v1526_v0, %v1525_v62  ;;  %v1381_v18 = vmax.f32 %v1125_v25, %v1253_v2  ;;  %v769_v19 = vrot.slane %v5166_v51, %v5059_v14  ;;  %v1086_v21 = vadd.f32 %v765_v38, %v5163_v48 }
 0x11c   : > { %v1977_v22 = vadd.f32 %v1522_v5, %v1521_v1  ;;  %v1533_v23 = vmul.f32 %v5149_v34, %v1384_v6  ;;  %v1534_v28 = vmul.f32 %v5152_v35, %v1385_v9  ;;  %v1529_v29 = vmul.f32 %v5149_v34, %v1380_v10 }
 0x11d   : > { %1981 = vadd.xlane.f32.xlu1 %v1980_v16  ;;  %v1530_v30 = vmul.f32 %v5152_v35, %v1381_v18  ;;  %v1087_v31 = vadd.f32 %v769_v19, %v5122_v54  ;;  %v1214_v37 = vmul.f32 0.2, %v1086_v21  ;;  %v1082_v27 = vadd.f32 %v765_v38, %v5160_v47 }
 0x11e   : > { %1978 = vadd.xlane.f32.xlu0 %v1977_v22  ;;  %v1986_v41 = vadd.f32 %v1534_v28, %v1533_v23  ;;  %v1083_v42 = vadd.f32 %v769_v19, %v5126_v61  ;;  %v781_v43 = vrot.slane %v5169_v52, %v5039_v8  ;;  %v785_v44 = vrot.slane %v5169_v52, %v5059_v14 }
 0x11f   : > { %v1983_v45 = vadd.f32 %v1530_v30, %v1529_v29  ;;  %v1215_v57 = vmul.f32 0.2, %v1087_v31  ;;  %v1342_v25 = vmax.f32 %v1086_v21, %v1214_v37  ;;  %v1210_v32 = vmul.f32 0.2, %v1082_v27 }
 0x120   : > { %v1211_v58 = vmul.f32 0.2, %v1083_v42  ;;  %v1094_v59 = vadd.f32 %v781_v43, %v5163_v48  ;;  %v1095_v60 = vadd.f32 %v785_v44, %v5122_v54  ;;  %v1090_v38 = vadd.f32 %v781_v43, %v5160_v47 }
 0x121   : > { %1987 = vadd.xlane.f32.xlu1 %v1986_v41  ;;  %v1343_v62 = vmax.f32 %v1087_v31, %v1215_v57  ;;  %v1491_v0 = vmul.f32 %v5155_v36, %v1342_v25  ;;  %v1338_v1 = vmax.f32 %v1082_v27, %v1210_v32  ;;  %v1091_v2 = vadd.f32 %v785_v44, %v5126_v61 }
 0x122   : > { %1984 = vadd.xlane.f32.xlu0 %v1983_v45  ;;  %v1339_v5 = vmax.f32 %v1083_v42, %v1211_v58  ;;  %v1222_v6 = vmul.f32 0.2, %v1094_v59  ;;  %v1223_v9 = vmul.f32 0.2, %v1095_v60  ;;  %v1218_v10 = vmul.f32 0.2, %v1090_v38 }
 0x123   : > { %v1492_v16 = vmul.f32 %v5146_v33, %v1343_v62  ;;  %v1487_v18 = vmul.f32 %v5155_v36, %v1338_v1  ;;  %v1219_v19 = vmul.f32 0.2, %v1091_v2  ;;  %v829_v21 = vrot.slane %v5172_v53, %v5039_v8 }
 0x124   : > { %v1488_v22 = vmul.f32 %v5146_v33, %v1339_v5  ;;  %v1350_v23 = vmax.f32 %v1094_v59, %v1222_v6  ;;  %v1351_v28 = vmax.f32 %v1095_v60, %v1223_v9  ;;  %v1346_v29 = vmax.f32 %v1090_v38, %v1218_v10 }
 0x125   : > { %v1618_v30 = vadd.f32 %v1492_v16, %v1491_v0  ;;  %v1347_v31 = vmax.f32 %v1091_v2, %v1219_v19  ;;  %v833_v37 = vrot.slane %v5172_v53, %v5059_v14  ;;  %v1118_v27 = vadd.f32 %v829_v21, %v5163_v48 }
 0x126   : > { %v1615_v41 = vadd.f32 %v1488_v22, %v1487_v18  ;;  %v1499_v42 = vmul.f32 %v5155_v36, %v1350_v23  ;;  %v1500_v43 = vmul.f32 %v5146_v33, %v1351_v28  ;;  %v1495_v44 = vmul.f32 %v5155_v36, %v1346_v29 }
 0x127   : > { %1619 = vadd.xlane.f32.xlu1 %v1618_v30  ;;  %v1496_v45 = vmul.f32 %v5146_v33, %v1347_v31  ;;  %v1119_v57 = vadd.f32 %v833_v37, %v5122_v54  ;;  %v1246_v25 = vmul.f32 0.2, %v1118_v27  ;;  %v1114_v32 = vadd.f32 %v829_v21, %v5160_v47 }
 0x128   : > { %1616 = vadd.xlane.f32.xlu0 %v1615_v41  ;;  %v1624_v58 = vadd.f32 %v1500_v43, %v1499_v42  ;;  %v1115_v59 = vadd.f32 %v833_v37, %v5126_v61  ;;  %v845_v60 = vrot.slane %v5175_v56, %v5039_v8  ;;  %v849_v38 = vrot.slane %v5175_v56, %v5059_v14 }
 0x129   : > { %v1621_v62 = vadd.f32 %v1496_v45, %v1495_v44  ;;  %v1247_v0 = vmul.f32 0.2, %v1119_v57  ;;  %v1374_v1 = vmax.f32 %v1118_v27, %v1246_v25  ;;  %v1242_v2 = vmul.f32 0.2, %v1114_v32 }
 0x12a   : > { %v1243_v5 = vmul.f32 0.2, %v1115_v59  ;;  %v1126_v6 = vadd.f32 %v845_v60, %v5163_v48  ;;  %v1127_v9 = vadd.f32 %v849_v38, %v5122_v54  ;;  %v1122_v10 = vadd.f32 %v845_v60, %v5160_v47 }
 0x12b   : > { %1625 = vadd.xlane.f32.xlu1 %v1624_v58  ;;  %v1375_v16 = vmax.f32 %v1119_v57, %v1247_v0  ;;  %v1523_v18 = vmul.f32 %v5155_v36, %v1374_v1  ;;  %v1370_v19 = vmax.f32 %v1114_v32, %v1242_v2  ;;  %v1123_v21 = vadd.f32 %v849_v38, %v5126_v61 }
 0x12c   : > { %1622 = vadd.xlane.f32.xlu0 %v1621_v62  ;;  %v1371_v22 = vmax.f32 %v1115_v59, %v1243_v5  ;;  %v1254_v23 = vmul.f32 0.2, %v1126_v6  ;;  %v1255_v28 = vmul.f32 0.2, %v1127_v9  ;;  %v1250_v29 = vmul.f32 0.2, %v1122_v10 }
 0x12d   : > { %v1524_v30 = vmul.f32 %v5146_v33, %v1375_v16  ;;  %v1519_v31 = vmul.f32 %v5155_v36, %v1370_v19  ;;  %v1251_v37 = vmul.f32 0.2, %v1123_v21  ;;  %v5284_v27 = vcombine.high %v5166_v51, %v5166_v51 }
 0x12e   : > { %v1520_v41 = vmul.f32 %v5146_v33, %v1371_v22  ;;  %v1382_v42 = vmax.f32 %v1126_v6, %v1254_v23  ;;  %v1383_v43 = vmax.f32 %v1127_v9, %v1255_v28  ;;  %v1378_v44 = vmax.f32 %v1122_v10, %v1250_v29 }
 0x12f   : > { %v1642_v45 = vadd.f32 %v1524_v30, %v1523_v18  ;;  %v1379_v57 = vmax.f32 %v1123_v21, %v1251_v37  ;;  %v805_v25 = vrot.slane %v5284_v27, %v5067_v17  ;;  %v809_v32 = vrot.slane %v5284_v27, %v5078_v20 }
 0x130   : > { %v1639_v58 = vadd.f32 %v1520_v41, %v1519_v31  ;;  %v1531_v59 = vmul.f32 %v5155_v36, %v1382_v42  ;;  %v1532_v60 = vmul.f32 %v5146_v33, %v1383_v43  ;;  %v1527_v51 = vmul.f32 %v5155_v36, %v1378_v44 }
 0x131   : > { %1643 = vadd.xlane.f32.xlu1 %v1642_v45  ;;  %v1528_v38 = vmul.f32 %v5146_v33, %v1379_v57  ;;  %v1104_v62 = vadd.f32 %v805_v25, %v5116_v49  ;;  %v1105_v0 = vadd.f32 %v809_v32, %v5114_v46  ;;  %v1100_v1 = vadd.f32 %v805_v25, %v5118_v50 }
 0x132   : > { %1640 = vadd.xlane.f32.xlu0 %v1639_v58  ;;  %v1648_v2 = vadd.f32 %v1532_v60, %v1531_v59  ;;  %v1101_v5 = vadd.f32 %v809_v32, %v5124_v55  ;;  %v5301_v6 = vcombine.high %v5169_v52, %v5169_v52  ;;  %v5305_v9 = vcombine.high %v5172_v53, %v5172_v53 }
 0x133   : > { %v1645_v10 = vadd.f32 %v1528_v38, %v1527_v51  ;;  %v1232_v16 = vmul.f32 0.2, %v1104_v62  ;;  %v1233_v18 = vmul.f32 0.2, %v1105_v0  ;;  %v1228_v19 = vmul.f32 0.2, %v1100_v1 }
 0x134   : > { %v1229_v21 = vmul.f32 0.2, %v1101_v5  ;;  %v821_v22 = vrot.slane %v5301_v6, %v5067_v17  ;;  %v825_v23 = vrot.slane %v5301_v6, %v5078_v20  ;;  %v869_v28 = vrot.slane %v5305_v9, %v5067_v17 }
 0x135   : > { %1649 = vadd.xlane.f32.xlu1 %v1648_v2  ;;  %v1360_v52 = vmax.f32 %v1104_v62, %v1232_v16  ;;  %v1361_v29 = vmax.f32 %v1105_v0, %v1233_v18  ;;  %v1356_v30 = vmax.f32 %v1100_v1, %v1228_v19  ;;  %v873_v53 = vrot.slane %v5305_v9, %v5078_v20 }
 0x136   : > { %1646 = vadd.xlane.f32.xlu0 %v1645_v10  ;;  %v1357_v31 = vmax.f32 %v1101_v5, %v1229_v21  ;;  %v1112_v37 = vadd.f32 %v821_v22, %v5116_v49  ;;  %v1113_v41 = vadd.f32 %v825_v23, %v5114_v46  ;;  %v1108_v42 = vadd.f32 %v821_v22, %v5118_v50 }
 0x137   : > { %v1509_v43 = vmul.f32 %v5149_v34, %v1360_v52  ;;  %v1510_v44 = vmul.f32 %v5152_v35, %v1361_v29  ;;  %v1505_v45 = vmul.f32 %v5149_v34, %v1356_v30  ;;  %v1109_v57 = vadd.f32 %v825_v23, %v5124_v55 }
 0x138   : > { %v1506_v25 = vmul.f32 %v5152_v35, %v1357_v31  ;;  %v1240_v32 = vmul.f32 0.2, %v1112_v37  ;;  %v1241_v58 = vmul.f32 0.2, %v1113_v41  ;;  %v1236_v59 = vmul.f32 0.2, %v1108_v42 }
 0x139   : > { %v1968_v60 = vadd.f32 %v1510_v44, %v1509_v43  ;;  %v1237_v51 = vmul.f32 0.2, %v1109_v57  ;;  %v1136_v38 = vadd.f32 %v869_v28, %v5116_v49  ;;  %v1137_v62 = vadd.f32 %v873_v53, %v5114_v46 }
 0x13a   : > { %v1965_v0 = vadd.f32 %v1506_v25, %v1505_v45  ;;  %v1368_v1 = vmax.f32 %v1112_v37, %v1240_v32  ;;  %v1369_v2 = vmax.f32 %v1113_v41, %v1241_v58  ;;  %v1364_v5 = vmax.f32 %v1108_v42, %v1236_v59 }
 0x13b   : > { %1969 = vadd.xlane.f32.xlu1 %v1968_v60  ;;  %v1365_v10 = vmax.f32 %v1109_v57, %v1237_v51  ;;  %v1264_v16 = vmul.f32 0.2, %v1136_v38  ;;  %v1265_v18 = vmul.f32 0.2, %v1137_v62  ;;  %v1132_v19 = vadd.f32 %v869_v28, %v5118_v50 }
 0x13c   : > { %1966 = vadd.xlane.f32.xlu0 %v1965_v0  ;;  %v1517_v21 = vmul.f32 %v5149_v34, %v1368_v1  ;;  %v1518_v22 = vmul.f32 %v5152_v35, %v1369_v2  ;;  %v1513_v23 = vmul.f32 %v5149_v34, %v1364_v5  ;;  %v1133_v52 = vadd.f32 %v873_v53, %v5124_v55 }
 0x13d   : > { %v1514_v29 = vmul.f32 %v5152_v35, %v1365_v10  ;;  %v1392_v30 = vmax.f32 %v1136_v38, %v1264_v16  ;;  %v1393_v31 = vmax.f32 %v1137_v62, %v1265_v18  ;;  %v1260_v37 = vmul.f32 0.2, %v1132_v19 }
 0x13e   : > { %v1974_v41 = vadd.f32 %v1518_v22, %v1517_v21  ;;  %v1261_v42 = vmul.f32 0.2, %v1133_v52  ;;  %v5333_v43 = vcombine.high %v5175_v56, %v5175_v56  ;;  %v797_v28 = vrot.slane %v5284_v27, %v5039_v8 }
 0x13f   : > { %v1971_v44 = vadd.f32 %v1514_v29, %v1513_v23  ;;  %v1541_v45 = vmul.f32 %v5149_v34, %v1392_v30  ;;  %v1542_v57 = vmul.f32 %v5152_v35, %v1393_v31  ;;  %v1388_v53 = vmax.f32 %v1132_v19, %v1260_v37 }
 0x140   : > { %1975 = vadd.xlane.f32.xlu1 %v1974_v41  ;;  %v1389_v25 = vmax.f32 %v1133_v52, %v1261_v42  ;;  %v885_v32 = vrot.slane %v5333_v43, %v5067_v17  ;;  %v889_v58 = vrot.slane %v5333_v43, %v5078_v20  ;;  %v801_v56 = vrot.slane %v5284_v27, %v5059_v14 }
 0x141   : > { %1972 = vadd.xlane.f32.xlu0 %v1971_v44  ;;  %v1992_v59 = vadd.f32 %v1542_v57, %v1541_v45  ;;  %v1537_v60 = vmul.f32 %v5149_v34, %v1388_v53  ;;  %v1102_v51 = vadd.f32 %v797_v28, %v5163_v48  ;;  %v1098_v38 = vadd.f32 %v797_v28, %v5160_v47 }
 0x142   : > { %v1538_v62 = vmul.f32 %v5152_v35, %v1389_v25  ;;  %v1144_v0 = vadd.f32 %v885_v32, %v5116_v49  ;;  %v1145_v1 = vadd.f32 %v889_v58, %v5114_v46  ;;  %v1140_v2 = vadd.f32 %v885_v32, %v5118_v50 }
 0x143   : > { %v1141_v5 = vadd.f32 %v889_v58, %v5124_v55  ;;  %v1103_v27 = vadd.f32 %v801_v56, %v5122_v54  ;;  %v1230_v10 = vmul.f32 0.2, %v1102_v51  ;;  %v1099_v16 = vadd.f32 %v801_v56, %v5126_v61 }
 0x144   : > { %1993 = vadd.xlane.f32.xlu1 %v1992_v59  ;;  %v1989_v18 = vadd.f32 %v1538_v62, %v1537_v60  ;;  %v1272_v19 = vmul.f32 0.2, %v1144_v0  ;;  %v1273_v21 = vmul.f32 0.2, %v1145_v1  ;;  %v1268_v22 = vmul.f32 0.2, %v1140_v2 }
 0x145   : > { %v1269_v23 = vmul.f32 0.2, %v1141_v5  ;;  %v1231_v52 = vmul.f32 0.2, %v1103_v27  ;;  %v1358_v29 = vmax.f32 %v1102_v51, %v1230_v10  ;;  %v1226_v30 = vmul.f32 0.2, %v1098_v38 }
 0x146   : > { %1990 = vadd.xlane.f32.xlu0 %v1989_v18  ;;  %v1400_v31 = vmax.f32 %v1144_v0, %v1272_v19  ;;  %v1401_v37 = vmax.f32 %v1145_v1, %v1273_v21  ;;  %v1396_v41 = vmax.f32 %v1140_v2, %v1268_v22  ;;  %v1227_v42 = vmul.f32 0.2, %v1099_v16 }
 0x147   : > { %v1397_v28 = vmax.f32 %v1141_v5, %v1269_v23  ;;  %v1359_v44 = vmax.f32 %v1103_v27, %v1231_v52  ;;  %v1507_v45 = vmul.f32 %v5155_v36, %v1358_v29  ;;  %v1354_v57 = vmax.f32 %v1098_v38, %v1226_v30 }
 0x148   : > { %v1549_v53 = vmul.f32 %v5149_v34, %v1400_v31  ;;  %v1550_v25 = vmul.f32 %v5152_v35, %v1401_v37  ;;  %v1545_v32 = vmul.f32 %v5149_v34, %v1396_v41  ;;  %v1355_v58 = vmax.f32 %v1099_v16, %v1227_v42 }
 0x149   : > { %v1546_v56 = vmul.f32 %v5152_v35, %v1397_v28  ;;  %v1508_v59 = vmul.f32 %v5146_v33, %v1359_v44  ;;  %v1503_v60 = vmul.f32 %v5155_v36, %v1354_v57  ;;  %v813_v51 = vrot.slane %v5301_v6, %v5039_v8 }
 0x14a   : > { %v1998_v62 = vadd.f32 %v1550_v25, %v1549_v53  ;;  %v1504_v0 = vmul.f32 %v5146_v33, %v1355_v58  ;;  %v817_v38 = vrot.slane %v5301_v6, %v5059_v14  ;;  %v861_v1 = vrot.slane %v5305_v9, %v5039_v8 }
 0x14b   : > { %v1995_v2 = vadd.f32 %v1546_v56, %v1545_v32  ;;  %v1630_v5 = vadd.f32 %v1508_v59, %v1507_v45  ;;  %v1110_v27 = vadd.f32 %v813_v51, %v5163_v48  ;;  %v1106_v10 = vadd.f32 %v813_v51, %v5160_v47 }
 0x14c   : > { %1999 = vadd.xlane.f32.xlu1 %v1998_v62  ;;  %v1627_v16 = vadd.f32 %v1504_v0, %v1503_v60  ;;  %v1111_v18 = vadd.f32 %v817_v38, %v5122_v54  ;;  %v1107_v19 = vadd.f32 %v817_v38, %v5126_v61  ;;  %v865_v21 = vrot.slane %v5305_v9, %v5059_v14 }
 0x14d   : > { %1996 = vadd.xlane.f32.xlu0 %v1995_v2  ;;  %v1238_v6 = vmul.f32 0.2, %v1110_v27  ;;  %v1234_v22 = vmul.f32 0.2, %v1106_v10  ;;  %v1134_v23 = vadd.f32 %v861_v1, %v5163_v48  ;;  %v1130_v52 = vadd.f32 %v861_v1, %v5160_v47 }
 0x14e   : > { %v1239_v29 = vmul.f32 0.2, %v1111_v18  ;;  %v1235_v30 = vmul.f32 0.2, %v1107_v19  ;;  %v1135_v31 = vadd.f32 %v865_v21, %v5122_v54  ;;  %v1131_v37 = vadd.f32 %v865_v21, %v5126_v61 }
 0x14f   : > { %v1366_v41 = vmax.f32 %v1110_v27, %v1238_v6  ;;  %v1362_v42 = vmax.f32 %v1106_v10, %v1234_v22  ;;  %v1262_v28 = vmul.f32 0.2, %v1134_v23  ;;  %v1258_v44 = vmul.f32 0.2, %v1130_v52 }
 0x150   : > { %1631 = vadd.xlane.f32.xlu1 %v1630_v5  ;;  %v1367_v45 = vmax.f32 %v1111_v18, %v1239_v29  ;;  %v1363_v9 = vmax.f32 %v1107_v19, %v1235_v30  ;;  %v1263_v57 = vmul.f32 0.2, %v1135_v31  ;;  %v1259_v53 = vmul.f32 0.2, %v1131_v37 }
 0x151   : > { %1628 = vadd.xlane.f32.xlu0 %v1627_v16  ;;  %v1515_v25 = vmul.f32 %v5155_v36, %v1366_v41  ;;  %v1511_v32 = vmul.f32 %v5155_v36, %v1362_v42  ;;  %v1390_v58 = vmax.f32 %v1134_v23, %v1262_v28  ;;  %v1386_v56 = vmax.f32 %v1130_v52, %v1258_v44 }
 0x152   : > { %v1516_v59 = vmul.f32 %v5146_v33, %v1367_v45  ;;  %v1512_v60 = vmul.f32 %v5146_v33, %v1363_v9  ;;  %v1391_v51 = vmax.f32 %v1135_v31, %v1263_v57  ;;  %v1387_v62 = vmax.f32 %v1131_v37, %v1259_v53 }
 0x153   : > { %v1539_v0 = vmul.f32 %v5155_v36, %v1390_v58  ;;  %v1535_v38 = vmul.f32 %v5155_v36, %v1386_v56  ;;  %v877_v1 = vrot.slane %v5333_v43, %v5039_v8  ;;  %v881_v2 = vrot.slane %v5333_v43, %v5059_v14 }
 0x154   : > { %v1636_v5 = vadd.f32 %v1516_v59, %v1515_v25  ;;  %v1633_v27 = vadd.f32 %v1512_v60, %v1511_v32  ;;  %v1540_v10 = vmul.f32 %v5146_v33, %v1391_v51  ;;  %v1536_v16 = vmul.f32 %v5146_v33, %v1387_v62 }
 0x155   : > { %v1142_v18 = vadd.f32 %v877_v1, %v5163_v48  ;;  %v1143_v19 = vadd.f32 %v881_v2, %v5122_v54  ;;  %v1138_v21 = vadd.f32 %v877_v1, %v5160_v47  ;;  %v1139_v6 = vadd.f32 %v881_v2, %v5126_v61 }
 0x156   : > { %1637 = vadd.xlane.f32.xlu1 %v1636_v5  ;;  %1634 = vadd.xlane.f32.xlu0 %v1633_v27  ;;  %v1654_v22 = vadd.f32 %v1540_v10, %v1539_v0  ;;  %v1651_v23 = vadd.f32 %v1536_v16, %v1535_v38  ;;  %v901_v43 = vrot.slane %v5192_v11, %v5067_v17 }
 0x157   : > { %v1270_v52 = vmul.f32 0.2, %v1142_v18  ;;  %v1271_v29 = vmul.f32 0.2, %v1143_v19  ;;  %v1266_v30 = vmul.f32 0.2, %v1138_v21  ;;  %v905_v31 = vrot.slane %v5192_v11, %v5078_v20 }
 0x158   : > { %v1267_v37 = vmul.f32 0.2, %v1139_v6  ;;  %v1152_v41 = vadd.f32 %v901_v43, %v5116_v49  ;;  %v1148_v42 = vadd.f32 %v901_v43, %v5118_v50  ;;  %v917_v28 = vrot.slane %v5198_v13, %v5067_v17 }
 0x159   : > { %v1398_v44 = vmax.f32 %v1142_v18, %v1270_v52  ;;  %v1399_v45 = vmax.f32 %v1143_v19, %v1271_v29  ;;  %v1394_v9 = vmax.f32 %v1138_v21, %v1266_v30  ;;  %v1153_v57 = vadd.f32 %v905_v31, %v5114_v46 }
 0x15a   : > { %1655 = vadd.xlane.f32.xlu1 %v1654_v22  ;;  %1652 = vadd.xlane.f32.xlu0 %v1651_v23  ;;  %v1395_v53 = vmax.f32 %v1139_v6, %v1267_v37  ;;  %v1280_v25 = vmul.f32 0.2, %v1152_v41  ;;  %v1149_v32 = vadd.f32 %v905_v31, %v5124_v55  ;;  %v1276_v58 = vmul.f32 0.2, %v1148_v42 }
 0x15b   : > { %v1547_v56 = vmul.f32 %v5155_v36, %v1398_v44  ;;  %v1548_v59 = vmul.f32 %v5146_v33, %v1399_v45  ;;  %v1543_v60 = vmul.f32 %v5155_v36, %v1394_v9  ;;  %v1281_v51 = vmul.f32 0.2, %v1153_v57 }
 0x15c   : > { %v1544_v62 = vmul.f32 %v5146_v33, %v1395_v53  ;;  %v1408_v0 = vmax.f32 %v1152_v41, %v1280_v25  ;;  %v1277_v38 = vmul.f32 0.2, %v1149_v32  ;;  %v1404_v1 = vmax.f32 %v1148_v42, %v1276_v58 }
 0x15d   : > { %v1660_v2 = vadd.f32 %v1548_v59, %v1547_v56  ;;  %v1409_v5 = vmax.f32 %v1153_v57, %v1281_v51  ;;  %v921_v27 = vrot.slane %v5198_v13, %v5078_v20  ;;  %v1160_v10 = vadd.f32 %v917_v28, %v5116_v49 }
 0x15e   : > { %v1657_v16 = vadd.f32 %v1544_v62, %v1543_v60  ;;  %v1557_v18 = vmul.f32 %v5149_v34, %v1408_v0  ;;  %v1405_v19 = vmax.f32 %v1149_v32, %v1277_v38  ;;  %v1553_v21 = vmul.f32 %v5149_v34, %v1404_v1 }
 0x15f   : > { %1661 = vadd.xlane.f32.xlu1 %v1660_v2  ;;  %v1558_v6 = vmul.f32 %v5152_v35, %v1409_v5  ;;  %v1161_v22 = vadd.f32 %v921_v27, %v5114_v46  ;;  %v1288_v23 = vmul.f32 0.2, %v1160_v10  ;;  %v1156_v43 = vadd.f32 %v917_v28, %v5118_v50 }
 0x160   : > { %1658 = vadd.xlane.f32.xlu0 %v1657_v16  ;;  %v1554_v52 = vmul.f32 %v5152_v35, %v1405_v19  ;;  %v1157_v29 = vadd.f32 %v921_v27, %v5124_v55  ;;  %v965_v30 = vrot.slane %v5195_v12, %v5067_v17  ;;  %v969_v31 = vrot.slane %v5195_v12, %v5078_v20 }
 0x161   : > { %v2004_v37 = vadd.f32 %v1558_v6, %v1557_v18  ;;  %v1289_v41 = vmul.f32 0.2, %v1161_v22  ;;  %v1416_v42 = vmax.f32 %v1160_v10, %v1288_v23  ;;  %v1284_v44 = vmul.f32 0.2, %v1156_v43 }
 0x162   : > { %v2001_v45 = vadd.f32 %v1554_v52, %v1553_v21  ;;  %v1285_v9 = vmul.f32 0.2, %v1157_v29  ;;  %v1184_v57 = vadd.f32 %v965_v30, %v5116_v49  ;;  %v1185_v28 = vadd.f32 %v969_v31, %v5114_v46 }
 0x163   : > { %2005 = vadd.xlane.f32.xlu1 %v2004_v37  ;;  %v1417_v53 = vmax.f32 %v1161_v22, %v1289_v41  ;;  %v1565_v25 = vmul.f32 %v5149_v34, %v1416_v42  ;;  %v1412_v32 = vmax.f32 %v1156_v43, %v1284_v44  ;;  %v1180_v58 = vadd.f32 %v965_v30, %v5118_v50 }
 0x164   : > { %2002 = vadd.xlane.f32.xlu0 %v2001_v45  ;;  %v1413_v56 = vmax.f32 %v1157_v29, %v1285_v9  ;;  %v1312_v59 = vmul.f32 0.2, %v1184_v57  ;;  %v1313_v60 = vmul.f32 0.2, %v1185_v28  ;;  %v1181_v51 = vadd.f32 %v969_v31, %v5124_v55 }
 0x165   : > { %v1566_v62 = vmul.f32 %v5152_v35, %v1417_v53  ;;  %v1561_v0 = vmul.f32 %v5149_v34, %v1412_v32  ;;  %v1308_v38 = vmul.f32 0.2, %v1180_v58  ;;  %v981_v1 = vrot.slane %v5201_v15, %v5067_v17 }
 0x166   : > { %v1562_v2 = vmul.f32 %v5152_v35, %v1413_v56  ;;  %v1440_v5 = vmax.f32 %v1184_v57, %v1312_v59  ;;  %v1441_v27 = vmax.f32 %v1185_v28, %v1313_v60  ;;  %v1309_v10 = vmul.f32 0.2, %v1181_v51 }
 0x167   : > { %v2010_v16 = vadd.f32 %v1566_v62, %v1565_v25  ;;  %v1436_v18 = vmax.f32 %v1180_v58, %v1308_v38  ;;  %v985_v19 = vrot.slane %v5201_v15, %v5078_v20  ;;  %v1192_v21 = vadd.f32 %v981_v1, %v5116_v49 }
 0x168   : > { %v2007_v6 = vadd.f32 %v1562_v2, %v1561_v0  ;;  %v1589_v22 = vmul.f32 %v5149_v34, %v1440_v5  ;;  %v1590_v23 = vmul.f32 %v5152_v35, %v1441_v27  ;;  %v1437_v43 = vmax.f32 %v1181_v51, %v1309_v10 }
 0x169   : > { %2011 = vadd.xlane.f32.xlu1 %v2010_v16  ;;  %v1585_v52 = vmul.f32 %v5149_v34, %v1436_v18  ;;  %v1193_v29 = vadd.f32 %v985_v19, %v5114_v46  ;;  %v1320_v30 = vmul.f32 0.2, %v1192_v21  ;;  %v1188_v31 = vadd.f32 %v981_v1, %v5118_v50 }
 0x16a   : > { %2008 = vadd.xlane.f32.xlu0 %v2007_v6  ;;  %v2028_v37 = vadd.f32 %v1590_v23, %v1589_v22  ;;  %v1586_v41 = vmul.f32 %v5152_v35, %v1437_v43  ;;  %v1189_v42 = vadd.f32 %v985_v19, %v5124_v55  ;;  %v893_v44 = vrot.slane %v5192_v11, %v5039_v8 }
 0x16b   : > { %v1321_v45 = vmul.f32 0.2, %v1193_v29  ;;  %v1448_v9 = vmax.f32 %v1192_v21, %v1320_v30  ;;  %v1316_v57 = vmul.f32 0.2, %v1188_v31  ;;  %v897_v28 = vrot.slane %v5192_v11, %v5059_v14 }
 0x16c   : > { %v2025_v53 = vadd.f32 %v1586_v41, %v1585_v52  ;;  %v1317_v25 = vmul.f32 0.2, %v1189_v42  ;;  %v1150_v32 = vadd.f32 %v893_v44, %v5163_v48  ;;  %v1146_v58 = vadd.f32 %v893_v44, %v5160_v47 }
 0x16d   : > { %2029 = vadd.xlane.f32.xlu1 %v2028_v37  ;;  %v1449_v56 = vmax.f32 %v1193_v29, %v1321_v45  ;;  %v1597_v59 = vmul.f32 %v5149_v34, %v1448_v9  ;;  %v1444_v60 = vmax.f32 %v1188_v31, %v1316_v57  ;;  %v1151_v51 = vadd.f32 %v897_v28, %v5122_v54 }
 0x16e   : > { %2026 = vadd.xlane.f32.xlu0 %v2025_v53  ;;  %v1445_v62 = vmax.f32 %v1189_v42, %v1317_v25  ;;  %v1278_v0 = vmul.f32 0.2, %v1150_v32  ;;  %v1147_v38 = vadd.f32 %v897_v28, %v5126_v61  ;;  %v1274_v1 = vmul.f32 0.2, %v1146_v58 }
 0x16f   : > { %v1598_v2 = vmul.f32 %v5152_v35, %v1449_v56  ;;  %v1593_v5 = vmul.f32 %v5149_v34, %v1444_v60  ;;  %v1279_v27 = vmul.f32 0.2, %v1151_v51  ;;  %v909_v10 = vrot.slane %v5198_v13, %v5039_v8 }
 0x170   : > { %v1594_v16 = vmul.f32 %v5152_v35, %v1445_v62  ;;  %v1406_v18 = vmax.f32 %v1150_v32, %v1278_v0  ;;  %v1275_v19 = vmul.f32 0.2, %v1147_v38  ;;  %v1402_v21 = vmax.f32 %v1146_v58, %v1274_v1 }
 0x171   : > { %v2034_v6 = vadd.f32 %v1598_v2, %v1597_v59  ;;  %v1407_v22 = vmax.f32 %v1151_v51, %v1279_v27  ;;  %v913_v23 = vrot.slane %v5198_v13, %v5059_v14  ;;  %v1158_v43 = vadd.f32 %v909_v10, %v5163_v48 }
 0x172   : > { %v2031_v52 = vadd.f32 %v1594_v16, %v1593_v5  ;;  %v1555_v29 = vmul.f32 %v5155_v36, %v1406_v18  ;;  %v1403_v30 = vmax.f32 %v1147_v38, %v1275_v19  ;;  %v1551_v31 = vmul.f32 %v5155_v36, %v1402_v21 }
 0x173   : > { %2035 = vadd.xlane.f32.xlu1 %v2034_v6  ;;  %v1556_v37 = vmul.f32 %v5146_v33, %v1407_v22  ;;  %v1159_v41 = vadd.f32 %v913_v23, %v5122_v54  ;;  %v1286_v42 = vmul.f32 0.2, %v1158_v43  ;;  %v1154_v44 = vadd.f32 %v909_v10, %v5160_v47 }
 0x174   : > { %2032 = vadd.xlane.f32.xlu0 %v2031_v52  ;;  %v1552_v45 = vmul.f32 %v5146_v33, %v1403_v30  ;;  %v1155_v9 = vadd.f32 %v913_v23, %v5126_v61  ;;  %v957_v57 = vrot.slane %v5195_v12, %v5039_v8  ;;  %v961_v28 = vrot.slane %v5195_v12, %v5059_v14 }
 0x175   : > { %v1666_v53 = vadd.f32 %v1556_v37, %v1555_v29  ;;  %v1287_v25 = vmul.f32 0.2, %v1159_v41  ;;  %v1414_v32 = vmax.f32 %v1158_v43, %v1286_v42  ;;  %v1282_v58 = vmul.f32 0.2, %v1154_v44 }
 0x176   : > { %v1663_v56 = vadd.f32 %v1552_v45, %v1551_v31  ;;  %v1283_v59 = vmul.f32 0.2, %v1155_v9  ;;  %v1182_v60 = vadd.f32 %v957_v57, %v5163_v48  ;;  %v1183_v51 = vadd.f32 %v961_v28, %v5122_v54 }
 0x177   : > { %1667 = vadd.xlane.f32.xlu1 %v1666_v53  ;;  %v1415_v62 = vmax.f32 %v1159_v41, %v1287_v25  ;;  %v1563_v0 = vmul.f32 %v5155_v36, %v1414_v32  ;;  %v1410_v38 = vmax.f32 %v1154_v44, %v1282_v58  ;;  %v1178_v1 = vadd.f32 %v957_v57, %v5160_v47 }
 0x178   : > { %1664 = vadd.xlane.f32.xlu0 %v1663_v56  ;;  %v1411_v2 = vmax.f32 %v1155_v9, %v1283_v59  ;;  %v1310_v5 = vmul.f32 0.2, %v1182_v60  ;;  %v1311_v27 = vmul.f32 0.2, %v1183_v51  ;;  %v1179_v10 = vadd.f32 %v961_v28, %v5126_v61 }
 0x179   : > { %v1564_v16 = vmul.f32 %v5146_v33, %v1415_v62  ;;  %v1559_v18 = vmul.f32 %v5155_v36, %v1410_v38  ;;  %v1306_v19 = vmul.f32 0.2, %v1178_v1  ;;  %v973_v21 = vrot.slane %v5201_v15, %v5039_v8 }
 0x17a   : > { %v1560_v6 = vmul.f32 %v5146_v33, %v1411_v2  ;;  %v1438_v22 = vmax.f32 %v1182_v60, %v1310_v5  ;;  %v1439_v23 = vmax.f32 %v1183_v51, %v1311_v27  ;;  %v1307_v43 = vmul.f32 0.2, %v1179_v10 }
 0x17b   : > { %v1672_v52 = vadd.f32 %v1564_v16, %v1563_v0  ;;  %v1434_v29 = vmax.f32 %v1178_v1, %v1306_v19  ;;  %v977_v30 = vrot.slane %v5201_v15, %v5059_v14  ;;  %v1190_v31 = vadd.f32 %v973_v21, %v5163_v48 }
 0x17c   : > { %v1669_v37 = vadd.f32 %v1560_v6, %v1559_v18  ;;  %v1587_v41 = vmul.f32 %v5155_v36, %v1438_v22  ;;  %v1588_v42 = vmul.f32 %v5146_v33, %v1439_v23  ;;  %v1435_v44 = vmax.f32 %v1179_v10, %v1307_v43  ;;  %v5514_v23 = vpop.permute.xlu1 %1722 }
 0x17d   : > { %1673 = vadd.xlane.f32.xlu1 %v1672_v52  ;;  %v1583_v45 = vmul.f32 %v5155_v36, %v1434_v29  ;;  %v1191_v9 = vadd.f32 %v977_v30, %v5122_v54  ;;  %v1318_v57 = vmul.f32 0.2, %v1190_v31  ;;  %v1186_v28 = vadd.f32 %v973_v21, %v5160_v47 }
 0x17e   : > { %1670 = vadd.xlane.f32.xlu0 %v1669_v37  ;;  %v1690_v53 = vadd.f32 %v1588_v42, %v1587_v41  ;;  %v1584_v25 = vmul.f32 %v5146_v33, %v1435_v44  ;;  %v1187_v32 = vadd.f32 %v977_v30, %v5126_v61  ;;  %v5493_v58 = vcombine.high %v5192_v11, %v5192_v11 }
 0x17f   : > { %v1319_v56 = vmul.f32 0.2, %v1191_v9  ;;  %v1446_v59 = vmax.f32 %v1190_v31, %v1318_v57  ;;  %v1314_v60 = vmul.f32 0.2, %v1186_v28  ;;  %v5497_v51 = vcombine.high %v5198_v13, %v5198_v13 }
 0x180   : > { %v1687_v62 = vadd.f32 %v1584_v25, %v1583_v45  ;;  %v1315_v0 = vmul.f32 0.2, %v1187_v32  ;;  %v933_v38 = vrot.slane %v5493_v58, %v5067_v17  ;;  %v937_v1 = vrot.slane %v5493_v58, %v5078_v20 }
 0x181   : > { %1691 = vadd.xlane.f32.xlu1 %v1690_v53  ;;  %v1447_v2 = vmax.f32 %v1191_v9, %v1319_v56  ;;  %v1595_v11 = vmul.f32 %v5155_v36, %v1446_v59  ;;  %v1442_v5 = vmax.f32 %v1186_v28, %v1314_v60  ;;  %v949_v27 = vrot.slane %v5497_v51, %v5067_v17 }
 0x182   : > { %1688 = vadd.xlane.f32.xlu0 %v1687_v62  ;;  %v1443_v10 = vmax.f32 %v1187_v32, %v1315_v0  ;;  %v1168_v13 = vadd.f32 %v933_v38, %v5116_v49  ;;  %v1169_v16 = vadd.f32 %v937_v1, %v5114_v46  ;;  %v1164_v18 = vadd.f32 %v933_v38, %v5118_v50 }
 0x183   : > { %v1596_v19 = vmul.f32 %v5146_v33, %v1447_v2  ;;  %v1591_v21 = vmul.f32 %v5155_v36, %v1442_v5  ;;  %v1165_v6 = vadd.f32 %v937_v1, %v5124_v55  ;;  %v953_v22 = vrot.slane %v5497_v51, %v5078_v20 }
 0x184   : > { %v1592_v43 = vmul.f32 %v5146_v33, %v1443_v10  ;;  %v1296_v52 = vmul.f32 0.2, %v1168_v13  ;;  %v1297_v29 = vmul.f32 0.2, %v1169_v16  ;;  %v1292_v30 = vmul.f32 0.2, %v1164_v18 }
 0x185   : > { %v1696_v31 = vadd.f32 %v1596_v19, %v1595_v11  ;;  %v1293_v37 = vmul.f32 0.2, %v1165_v6  ;;  %v1176_v41 = vadd.f32 %v949_v27, %v5116_v49  ;;  %v1177_v42 = vadd.f32 %v953_v22, %v5114_v46  ;;  %v5525_v11 = vpop.permute.xlu1 %1729 }
 0x186   : > { %v1693_v44 = vadd.f32 %v1592_v43, %v1591_v21  ;;  %v1424_v45 = vmax.f32 %v1168_v13, %v1296_v52  ;;  %v1425_v9 = vmax.f32 %v1169_v16, %v1297_v29  ;;  %v1420_v57 = vmax.f32 %v1164_v18, %v1292_v30 }
 0x187   : > { %1697 = vadd.xlane.f32.xlu1 %v1696_v31  ;;  %v1421_v28 = vmax.f32 %v1165_v6, %v1293_v37  ;;  %v1304_v53 = vmul.f32 0.2, %v1176_v41  ;;  %v1305_v25 = vmul.f32 0.2, %v1177_v42  ;;  %v1172_v32 = vadd.f32 %v949_v27, %v5118_v50 }
 0x188   : > { %1694 = vadd.xlane.f32.xlu0 %v1693_v44  ;;  %v1573_v56 = vmul.f32 %v5149_v34, %v1424_v45  ;;  %v1574_v59 = vmul.f32 %v5152_v35, %v1425_v9  ;;  %v1569_v60 = vmul.f32 %v5149_v34, %v1420_v57  ;;  %v1173_v62 = vadd.f32 %v953_v22, %v5124_v55 }
 0x189   : > { %v1570_v0 = vmul.f32 %v5152_v35, %v1421_v28  ;;  %v1432_v38 = vmax.f32 %v1176_v41, %v1304_v53  ;;  %v1433_v1 = vmax.f32 %v1177_v42, %v1305_v25  ;;  %v1300_v2 = vmul.f32 0.2, %v1172_v32  ;;  %v5556_v28 = vpop.permute.xlu1 %1733 }
 0x18a   : > { %v2016_v5 = vadd.f32 %v1574_v59, %v1573_v56  ;;  %v1301_v10 = vmul.f32 0.2, %v1173_v62  ;;  %v5529_v27 = vcombine.high %v5195_v12, %v5195_v12  ;;  %v5533_v13 = vcombine.high %v5201_v15, %v5201_v15  ;;  %v5558_v59 = vpop.permute.xlu0 %1718 }
 0x18b   : > { %v2013_v16 = vadd.f32 %v1570_v0, %v1569_v60  ;;  %v1581_v18 = vmul.f32 %v5149_v34, %v1432_v38  ;;  %v1582_v19 = vmul.f32 %v5152_v35, %v1433_v1  ;;  %v1428_v21 = vmax.f32 %v1172_v32, %v1300_v2 }
 0x18c   : > { %2017 = vadd.xlane.f32.xlu1 %v2016_v5  ;;  %v1429_v6 = vmax.f32 %v1173_v62, %v1301_v10  ;;  %v997_v22 = vrot.slane %v5529_v27, %v5067_v17  ;;  %v1001_v43 = vrot.slane %v5529_v27, %v5078_v20  ;;  %v1013_v12 = vrot.slane %v5533_v13, %v5067_v17 }
 0x18d   : > { %2014 = vadd.xlane.f32.xlu0 %v2013_v16  ;;  %v2022_v15 = vadd.f32 %v1582_v19, %v1581_v18  ;;  %v1577_v52 = vmul.f32 %v5149_v34, %v1428_v21  ;;  %v1017_v29 = vrot.slane %v5533_v13, %v5078_v20  ;;  %v925_v30 = vrot.slane %v5493_v58, %v5039_v8 }
 0x18e   : > { %v1578_v31 = vmul.f32 %v5152_v35, %v1429_v6  ;;  %v1200_v37 = vadd.f32 %v997_v22, %v5116_v49  ;;  %v1201_v41 = vadd.f32 %v1001_v43, %v5114_v46  ;;  %v1196_v42 = vadd.f32 %v997_v22, %v5118_v50 }
 0x18f   : > { %v1197_v44 = vadd.f32 %v1001_v43, %v5124_v55  ;;  %v1208_v45 = vadd.f32 %v1013_v12, %v5116_v49  ;;  %v1209_v9 = vadd.f32 %v1017_v29, %v5114_v46  ;;  %v1204_v57 = vadd.f32 %v1013_v12, %v5118_v50 }
 0x190   : > { %2023 = vadd.xlane.f32.xlu1 %v2022_v15  ;;  %v2019_v53 = vadd.f32 %v1578_v31, %v1577_v52  ;;  %v1328_v25 = vmul.f32 0.2, %v1200_v37  ;;  %v1329_v32 = vmul.f32 0.2, %v1201_v41  ;;  %v1324_v56 = vmul.f32 0.2, %v1196_v42  ;;  %v5567_v15 = vpop.permute.xlu1 %1744 }
 0x191   : > { %v1325_v60 = vmul.f32 0.2, %v1197_v44  ;;  %v1336_v62 = vmul.f32 0.2, %v1208_v45  ;;  %v1337_v0 = vmul.f32 0.2, %v1209_v9  ;;  %v1205_v38 = vadd.f32 %v1017_v29, %v5124_v55 }
 0x192   : > { %2020 = vadd.xlane.f32.xlu0 %v2019_v53  ;;  %v1456_v49 = vmax.f32 %v1200_v37, %v1328_v25  ;;  %v1457_v1 = vmax.f32 %v1201_v41, %v1329_v32  ;;  %v1452_v46 = vmax.f32 %v1196_v42, %v1324_v56  ;;  %v1332_v2 = vmul.f32 0.2, %v1204_v57  ;;  %v5573_v41 = vpop.permute.xlu0 %1740 }
 0x193   : > { %v1453_v50 = vmax.f32 %v1197_v44, %v1325_v60  ;;  %v1464_v5 = vmax.f32 %v1208_v45, %v1336_v62  ;;  %v1465_v10 = vmax.f32 %v1209_v9, %v1337_v0  ;;  %v1333_v16 = vmul.f32 0.2, %v1205_v38 }
 0x194   : > { %v1605_v18 = vmul.f32 %v5149_v34, %v1456_v49  ;;  %v1606_v19 = vmul.f32 %v5152_v35, %v1457_v1  ;;  %v1601_v21 = vmul.f32 %v5149_v34, %v1452_v46  ;;  %v1460_v6 = vmax.f32 %v1204_v57, %v1332_v2  ;;  %v5589_v2 = vpop.permute.xlu1 %1755 }
 0x195   : > { %v1602_v22 = vmul.f32 %v5152_v35, %v1453_v50  ;;  %v1613_v55 = vmul.f32 %v5149_v34, %v1464_v5  ;;  %v1614_v43 = vmul.f32 %v5152_v35, %v1465_v10  ;;  %v1461_v12 = vmax.f32 %v1205_v38, %v1333_v16 }
 0x196   : > { %v2040_v52 = vadd.f32 %v1606_v19, %v1605_v18  ;;  %v1609_v29 = vmul.f32 %v5149_v34, %v1460_v6  ;;  %v929_v31 = vrot.slane %v5493_v58, %v5059_v14  ;;  %v1166_v37 = vadd.f32 %v925_v30, %v5163_v48  ;;  %v5592_v16 = vpop.permute.xlu0 %1751 }
 0x197   : > { %v2037_v42 = vadd.f32 %v1602_v22, %v1601_v21  ;;  %v2046_v44 = vadd.f32 %v1614_v43, %v1613_v55  ;;  %v1610_v45 = vmul.f32 %v5152_v35, %v1461_v12  ;;  %v1162_v9 = vadd.f32 %v925_v30, %v5160_v47 }
 0x198   : > { %2041 = vadd.xlane.f32.xlu1 %v2040_v52  ;;  %v1167_v57 = vadd.f32 %v929_v31, %v5122_v54  ;;  %v1294_v53 = vmul.f32 0.2, %v1166_v37  ;;  %v1163_v25 = vadd.f32 %v929_v31, %v5126_v61  ;;  %v941_v34 = vrot.slane %v5497_v51, %v5039_v8 }
 0x199   : > { %2038 = vadd.xlane.f32.xlu0 %v2037_v42  ;;  %v2043_v58 = vadd.f32 %v1610_v45, %v1609_v29  ;;  %v1290_v32 = vmul.f32 0.2, %v1162_v9  ;;  %v945_v56 = vrot.slane %v5497_v51, %v5059_v14  ;;  %v989_v35 = vrot.slane %v5529_v27, %v5039_v8 }
 0x19a   : > { %v1295_v60 = vmul.f32 0.2, %v1167_v57  ;;  %v1422_v30 = vmax.f32 %v1166_v37, %v1294_v53  ;;  %v1291_v62 = vmul.f32 0.2, %v1163_v25  ;;  %v1174_v0 = vadd.f32 %v941_v34, %v5163_v48 }
 0x19b   : > { %v1418_v38 = vmax.f32 %v1162_v9, %v1290_v32  ;;  %v1175_v49 = vadd.f32 %v945_v56, %v5122_v54  ;;  %v1170_v1 = vadd.f32 %v941_v34, %v5160_v47  ;;  %v1171_v46 = vadd.f32 %v945_v56, %v5126_v61 }
 0x19c   : > { %2047 = vadd.xlane.f32.xlu1 %v2046_v44  ;;  %v1423_v50 = vmax.f32 %v1167_v57, %v1295_v60  ;;  %v1571_v51 = vmul.f32 %v5155_v36, %v1422_v30  ;;  %v1419_v5 = vmax.f32 %v1163_v25, %v1291_v62  ;;  %v1302_v10 = vmul.f32 0.2, %v1174_v0 }
 0x19d   : > { %2044 = vadd.xlane.f32.xlu0 %v2043_v58  ;;  %v1567_v18 = vmul.f32 %v5155_v36, %v1418_v38  ;;  %v1303_v19 = vmul.f32 0.2, %v1175_v49  ;;  %v1298_v21 = vmul.f32 0.2, %v1170_v1  ;;  %v1299_v6 = vmul.f32 0.2, %v1171_v46 }
 0x19e   : > { %v1572_v22 = vmul.f32 %v5146_v33, %v1423_v50  ;;  %v1568_v55 = vmul.f32 %v5146_v33, %v1419_v5  ;;  %v1430_v43 = vmax.f32 %v1174_v0, %v1302_v10  ;;  %v993_v12 = vrot.slane %v5529_v27, %v5059_v14 }
 0x19f   : > { %v1431_v52 = vmax.f32 %v1175_v49, %v1303_v19  ;;  %v1426_v29 = vmax.f32 %v1170_v1, %v1298_v21  ;;  %v1427_v31 = vmax.f32 %v1171_v46, %v1299_v6  ;;  %v1198_v37 = vadd.f32 %v989_v35, %v5163_v48 }
 0x1a0   : > { %v1678_v42 = vadd.f32 %v1572_v22, %v1571_v51  ;;  %v1675_v44 = vadd.f32 %v1568_v55, %v1567_v18  ;;  %v1579_v45 = vmul.f32 %v5155_v36, %v1430_v43  ;;  %v1199_v9 = vadd.f32 %v993_v12, %v5122_v54  ;;  %v5602_v57 = vpop.xlane.xlu1 %1960 }
 0x1a1   : > { %v1580_v53 = vmul.f32 %v5146_v33, %v1431_v52  ;;  %v1575_v25 = vmul.f32 %v5155_v36, %v1426_v29  ;;  %v1576_v34 = vmul.f32 %v5146_v33, %v1427_v31  ;;  %v1326_v27 = vmul.f32 0.2, %v1198_v37  ;;  %v5607_v58 = vpop.xlane.xlu0 %1954 }
 0x1a2   : > { %1679 = vadd.xlane.f32.xlu1 %v1678_v42  ;;  %1676 = vadd.xlane.f32.xlu0 %v1675_v44  ;;  %v1327_v32 = vmul.f32 0.2, %v1199_v9  ;;  %v1194_v56 = vadd.f32 %v989_v35, %v5160_v47  ;;  %v1195_v60 = vadd.f32 %v993_v12, %v5126_v61  ;;  %v4932_v18 = vmov 0  }
 0x1a3   : > { %v1684_v30 = vadd.f32 %v1580_v53, %v1579_v45  ;;  %v1454_v62 = vmax.f32 %v1198_v37, %v1326_v27  ;;  %v1681_v0 = vadd.f32 %v1576_v34, %v1575_v25  ;;  %4823 = vset.pattern.permute.xlu1 %v4932_v18  ;;  %4822 = vset.pattern.permute.xlu0 %v4932_v18  ;;  %v5632_v37 = vld [vmem:[%s5047_s6] sm:$0xff] }
 0x1a4   : > { %v1455_v38 = vmax.f32 %v1199_v9, %v1327_v32  ;;  %v1322_v49 = vmul.f32 0.2, %v1194_v56  ;;  %v1323_v1 = vmul.f32 0.2, %v1195_v60  ;;  %v5611_v46 = vpop.xlane.xlu1 %1963  ;;  %v1760_v42 = vrot.slane %v5632_v37, %v5108_v39 }
 0x1a5   : > { %v1603_v50 = vmul.f32 %v5155_v36, %v1454_v62  ;;  %v5614_v51 = vpop.xlane.xlu0 %1957  ;;  %v1005_v32 = vrot.slane %v5533_v13, %v5039_v8 }
 0x1a6   : > { %1685 = vadd.xlane.f32.xlu1 %v1684_v30  ;;  %1682 = vadd.xlane.f32.xlu0 %v1681_v0  ;;  %v1604_v5 = vmul.f32 %v5146_v33, %v1455_v38  ;;  %v1450_v10 = vmax.f32 %v1194_v56, %v1322_v49  ;;  %v1451_v35 = vmax.f32 %v1195_v60, %v1323_v1 }
 0x1a7   : > { %v1009_v56 = vrot.slane %v5533_v13, %v5059_v14  ;;  %v1206_v30 = vadd.f32 %v1005_v32, %v5163_v48  ;;  %v1202_v49 = vadd.f32 %v1005_v32, %v5160_v47 }
 0x1a8   : > { %v1702_v19 = vadd.f32 %v1604_v5, %v1603_v50  ;;  %v1599_v21 = vmul.f32 %v5155_v36, %v1450_v10  ;;  %v1600_v6 = vmul.f32 %v5146_v33, %v1451_v35 }
 0x1a9   : > { %v1207_v62 = vadd.f32 %v1009_v56, %v5122_v54  ;;  %v1203_v1 = vadd.f32 %v1009_v56, %v5126_v61  ;;  %v1334_v50 = vmul.f32 0.2, %v1206_v30  ;;  %v1330_v10 = vmul.f32 0.2, %v1202_v49 }
 0x1aa   : > { %1703 = vadd.xlane.f32.xlu1 %v1702_v19  ;;  %v1699_v22 = vadd.f32 %v1600_v6, %v1599_v21  ;;  %v5619_v55 = vpop.xlane.xlu1 %1981 }
 0x1ab   : > { %v5621_v43 = vpop.xlane.xlu0 %1978  ;;  %v1335_v5 = vmul.f32 0.2, %v1207_v62  ;;  %v1331_v35 = vmul.f32 0.2, %v1203_v1  ;;  %v1462_v19 = vmax.f32 %v1206_v30, %v1334_v50  ;;  %v1458_v6 = vmax.f32 %v1202_v49, %v1330_v10  ;;  %v246_v10 = vld [vmem:[%s5047_s6 + $0x8] sm:$0xff]  ;;  %s4935_s6 = smov [#allocation2]  }
 0x1ac   : > { %1700 = vadd.xlane.f32.xlu0 %v1699_v22  ;;  %v1837_v48 = vrot.slane %v246_v10, %v5078_v20  ;;  %v1859_v7 = vrot.slane %v246_v10, %v5111_v40 }
 0x1ad   : > { %v1463_v21 = vmax.f32 %v1207_v62, %v1335_v5  ;;  %v1459_v54 = vmax.f32 %v1203_v1, %v1331_v35  ;;  %v1611_v22 = vmul.f32 %v5155_v36, %v1462_v19  ;;  %v1607_v32 = vmul.f32 %v5155_v36, %v1458_v6 }
 0x1ae   : > { %v5623_v12 = vpop.xlane.xlu1 %1987  ;;  %v1771_v36 = vrot.slane %v5632_v37, %v5111_v40  ;;  %v1815_v6 = vrot.slane %v246_v10, %v5059_v14  ;;  %v1793_v14 = vrot.slane %v5632_v37, %v5099_v26  ;;  %v2050_v40 = vadd.f32 %v5614_v51, %v5514_v23 }
 0x1af   : > { %v5625_v52 = vpop.xlane.xlu0 %1984  ;;  %v1608_v56 = vmul.f32 %v5146_v33, %v1459_v54  ;;  %v2052_v51 = vadd.f32 %v5611_v46, %v5556_v28 }
 0x1b1   : > { %v1705_v62 = vadd.f32 %v1608_v56, %v1607_v32 }
 0x1b4   : > { %v5627_v29 = vpop.xlane.xlu1 %1619 }
 0x1b5   : > { %v5629_v31 = vpop.xlane.xlu0 %1616 }
 0x1b8   : > { %v5636_v44 = vpop.xlane.xlu1 %1625 }
 0x1b9   : > { %v5638_v45 = vpop.xlane.xlu0 %1622 }
 0x1bb   : > { %1766 = vbcast.lane.b32.xlu1 %v1760_v42, 264 }
 0x1be   : > { %v5640_v9 = vpop.xlane.xlu1 %1643 }
 0x1bf   : > { %v5642_v53 = vpop.xlane.xlu0 %1640 }
 0x1c2   : > { %1762 = vbcast.lane.b32.xlu0 %v1760_v42, 256  ;;  %v5644_v25 = vpop.xlane.xlu1 %1649  ;;  %v1612_v42 = vmul.f32 %v5146_v33, %v1463_v21 }
 0x1c3   : > { %v5646_v34 = vpop.xlane.xlu0 %1646 }
 0x1c4   : > { %v1708_v3 = vadd.f32 %v1612_v42, %v1611_v22  ;;  %v1782_v42 = vrot.slane %v5632_v37, %v5094_v24 }
 0x1c8   : > { %v5648_v27 = vpop.xlane.xlu1 %1969 }
 0x1c9   : > { %v5654_v60 = vpop.xlane.xlu0 %1966 }
 0x1cd   : > { %v5658_v0 = vpop.xlane.xlu1 %1975 }
 0x1ce   : > { %v5660_v38 = vpop.xlane.xlu0 %1972  ;;  %v2056_v46 = vadd.f32 %v5658_v0, %v5589_v2 }
 0x1d1   : > { %v5664_v18 = vpop.xlane.xlu1 %1993 }
 0x1d3   : > { %v5666_v13 = vpop.xlane.xlu0 %1990 }
 0x1d9   : > { %v5670_v4 = vpop.xlane.xlu1 %1999 }
 0x1da   : > { %v5672_v61 = vpop.xlane.xlu0 %1996 }
 0x1dd   : > { %v5676_v63 = vpop.xlane.xlu1 %1631 }
 0x1de   : > { %v5678_v30 = vpop.xlane.xlu0 %1628 }
 0x1df   : > { %1709 = vadd.xlane.f32.xlu1 %v1708_v3  ;;  %v1804_v3 = vrot.slane %v246_v10, %v5039_v8 }
 0x1e1   : > { %1706 = vadd.xlane.f32.xlu0 %v1705_v62  ;;  %v1826_v62 = vrot.slane %v246_v10, %v5067_v17  ;;  %v1848_v17 = vrot.slane %v246_v10, %v5108_v39  ;;  %v1881_v39 = vrot.slane %v246_v10, %v5099_v26 }
 0x1e3   : > { %v5680_v49 = vpop.xlane.xlu1 %1637  ;;  %v5682_v1 = vpop.xlane.xlu0 %1634 }
 0x1e7   : > { %v5684_v50 = vpop.xlane.xlu1 %1655  ;;  %v5686_v5 = vpop.xlane.xlu0 %1652 }
 0x1ec   : > { %v5690_v33 = vpop.xlane.xlu1 %1661 }
 0x1ed   : > { %6929 = vst [vmem:[#allocation11_spill] sm:$0xff] %v5690_v33  ;;  %v5693_v35 = vpop.xlane.xlu0 %1658 }
 0x1ee   : > { %6930 = vst [vmem:[#allocation12_spill] sm:$0xff] %v5693_v35  ;;  %v1870_v35 = vrot.slane %v246_v10, %v5094_v24  ;;  %v2051_v24 = vadd.f32 %v5602_v57, %v5525_v11  ;;  %v2055_v57 = vadd.f32 %v5660_v38, %v5592_v16 }
 0x1f0   : > { %1777 = vbcast.lane.b32.xlu1 %v1771_v36, 264  ;;  %v5696_v19 = vpop.xlane.xlu1 %2005 }
 0x1f1   : > { %v5698_v21 = vpop.xlane.xlu0 %2002 }
 0x1f4   : > { %1810 = vbcast.lane.b32.xlu1 %v1804_v3, 264 }
 0x1f6   : > { %v5701_v54 = vpop.xlane.xlu1 %2011 }
 0x1f7   : > { %1773 = vbcast.lane.b32.xlu0 %v1771_v36, 256  ;;  %v5703_v22 = vpop.xlane.xlu0 %2008 }
 0x1f8   : > { %1821 = vbcast.lane.b32.xlu1 %v1815_v6, 264 }
 0x1fa   : > { %v5707_v32 = vpop.xlane.xlu1 %2029 }
 0x1fb   : > { %1806 = vbcast.lane.b32.xlu0 %v1804_v3, 256  ;;  %v5709_v56 = vpop.xlane.xlu0 %2026 }
 0x1fc   : > { %1788 = vbcast.lane.b32.xlu1 %v1782_v42, 264 }
 0x1ff   : > { %1817 = vbcast.lane.b32.xlu0 %v1815_v6, 256 }
 0x200   : > { %1832 = vbcast.lane.b32.xlu1 %v1826_v62, 264  ;;  %v5714_v36 = vpop.xlane.xlu1 %2035 }
 0x201   : > { %v5716_v8 = vpop.xlane.xlu0 %2032 }
 0x203   : > { %1784 = vbcast.lane.b32.xlu0 %v1782_v42, 256 }
 0x204   : > { %1799 = vbcast.lane.b32.xlu1 %v1793_v14, 264  ;;  %v5719_v47 = vpop.xlane.xlu1 %1667 }
 0x205   : > { %v5721_v3 = vpop.xlane.xlu0 %1664 }
 0x207   : > { %1828 = vbcast.lane.b32.xlu0 %v1826_v62, 256 }
 0x208   : > { %1843 = vbcast.lane.b32.xlu1 %v1837_v48, 264 }
 0x20a   : > { %v5724_v6 = vpop.xlane.xlu1 %1673 }
 0x20b   : > { %1795 = vbcast.lane.b32.xlu0 %v1793_v14, 256  ;;  %v5726_v37 = vpop.xlane.xlu0 %1670 }
 0x20c   : > { %1854 = vbcast.lane.b32.xlu1 %v1848_v17, 264 }
 0x20e   : > { %v5729_v42 = vpop.xlane.xlu1 %1691 }
 0x20f   : > { %1839 = vbcast.lane.b32.xlu0 %v1837_v48, 256  ;;  %v5731_v20 = vpop.xlane.xlu0 %1688 }
 0x210   : > { %6931 = vst [vmem:[#allocation13_spill] sm:$0xff] %v5731_v20  ;;  %1865 = vbcast.lane.b32.xlu1 %v1859_v7, 264 }
 0x213   : > { %1850 = vbcast.lane.b32.xlu0 %v1848_v17, 256  ;;  %v2053_v17 = vadd.f32 %v5654_v60, %v5573_v41 }
 0x214   : > { %1876 = vbcast.lane.b32.xlu1 %v1870_v35, 264  ;;  %v5735_v62 = vpop.xlane.xlu1 %1697 }
 0x215   : > { %6932 = vst [vmem:[#allocation14_spill] sm:$0xff] %v5735_v62  ;;  %v5737_v14 = vpop.xlane.xlu0 %1694 }
 0x216   : > { %6933 = vst [vmem:[#allocation15_spill] sm:$0xff] %v5737_v14 }
 0x217   : > { %1861 = vbcast.lane.b32.xlu0 %v1859_v7, 256  ;;  %v2049_v7 = vadd.f32 %v5607_v58, %v5558_v59  ;;  %v2054_v58 = vadd.f32 %v5648_v27, %v5567_v15 }
 0x218   : > { %1887 = vbcast.lane.b32.xlu1 %v1881_v39, 264 }
 0x219   : > { %v5739_v33 = vpop.xlane.xlu1 %2017 }
 0x21a   : > { %v5743_v48 = vpop.xlane.xlu0 %2014 }
 0x21b   : > { %1872 = vbcast.lane.b32.xlu0 %v1870_v35, 256 }
 0x21c   : > { %2416 = vperm.xlu1 %4823, %v2050_v40  }
 0x21d   : > { %v5747_v26 = vpop.xlane.xlu1 %2023 }
 0x21f   : > { %1883 = vbcast.lane.b32.xlu0 %v1881_v39, 256  ;;  %v5749_v10 = vpop.xlane.xlu0 %2020 }
 0x220   : > { %2419 = vperm.xlu1 %4823, %v2051_v24  }
 0x223   : > { %2413 = vperm.xlu0 %4822, %v2049_v7  }
 0x224   : > { %2425 = vperm.xlu1 %4823, %v2053_v17  }
 0x225   : > { %v5757_v35 = vpop.xlane.xlu1 %2041 }
 0x226   : > { %v5761_v39 = vpop.xlane.xlu0 %2038 }
 0x227   : > { %2422 = vperm.xlu0 %4822, %v2052_v51  }
 0x228   : > { %2431 = vperm.xlu1 %4823, %v2055_v57  }
 0x229   : > { %v5765_v40 = vpop.xlane.xlu1 %2047 }
 0x22a   : > { %v5767_v60 = vpop.xlane.xlu0 %2044 }
 0x22b   : > { %2428 = vperm.xlu0 %4822, %v2054_v58  }
 0x22f   : > { %2434 = vperm.xlu0 %4822, %v2056_v46   ;;  %v5771_v24 = vpop.xlane.xlu1 %1679  ;;  %v5773_v7 = vpop.xlane.xlu0 %1676 }
 0x233   : > { %v5775_v38 = vpop.xlane.xlu1 %1685  ;;  %v5777_v17 = vpop.xlane.xlu0 %1682 }
 0x237   : > { %v5779_v51 = vpop.xlane.xlu1 %1703 }
 0x238   : > { %6934 = vst [vmem:[#allocation16_spill] sm:$0xff] %v5779_v51 }
 0x239   : > { %v5781_v27 = vpop.xlane.xlu0 %1700 }
 0x23a   : > { %6935 = vst [vmem:[#allocation17_spill] sm:$0xff] %v5781_v27 }
 0x23b   : > { %v5783_v57 = vpop.permute.xlu1 %1766 }
 0x23c   : > { %v2058_v58 = vadd.f32 %v5619_v55, %v5783_v57 }
 0x23d   : > { %v5787_v14 = vpop.permute.xlu0 %1762 }
 0x23e   : > { %2440 = vperm.xlu0 %4822, %v2058_v58   ;;  %v2057_v0 = vadd.f32 %v5621_v43, %v5787_v14 }
 0x240   : > { %2437 = vperm.xlu1 %4823, %v2057_v0  }
 0x26c   : > { %v5791_v46 = vpop.xlane.xlu1 %1709 }
 0x26d   : > { %6936 = vst [vmem:[#allocation18_spill] sm:$0xff] %v5791_v46 }
 0x26e   : > { %v5793_v62 = vpop.xlane.xlu0 %1706 }
 0x26f   : > { %6937 = vst [vmem:[#allocation19_spill] sm:$0xff] %v5793_v62 }
 0x270   : > { %v5795_v20 = vpop.permute.xlu1 %1777 }
 0x271   : > { %v2060_v27 = vadd.f32 %v5623_v12, %v5795_v20 }
 0x272   : > { %v5799_v51 = vpop.permute.xlu0 %1773 }
 0x273   : > { %2446 = vperm.xlu0 %4822, %v2060_v27   ;;  %v2059_v55 = vadd.f32 %v5625_v52, %v5799_v51 }
 0x274   : > { %v5803_v58 = vpop.permute.xlu1 %1810 }
 0x275   : > { %2443 = vperm.xlu1 %4823, %v2059_v55   ;;  %v2066_v43 = vadd.f32 %v5696_v19, %v5803_v58 }
 0x276   : > { %v5807_v0 = vpop.permute.xlu0 %1806 }
 0x277   : > { %2464 = vperm.xlu0 %4822, %v2066_v43   ;;  %v2065_v62 = vadd.f32 %v5698_v21, %v5807_v0 }
 0x278   : > { %v5811_v46 = vpop.permute.xlu1 %1821 }
 0x279   : > { %2461 = vperm.xlu1 %4823, %v2065_v62   ;;  %v2068_v12 = vadd.f32 %v5701_v54, %v5811_v46 }
 0x27a   : > { %v5815_v27 = vpop.permute.xlu0 %1817 }
 0x27b   : > { %2470 = vperm.xlu0 %4822, %v2068_v12   ;;  %v2067_v52 = vadd.f32 %v5703_v22, %v5815_v27 }
 0x27c   : > { %v5819_v55 = vpop.permute.xlu1 %1788 }
 0x27d   : > { %2467 = vperm.xlu1 %4823, %v2067_v52   ;;  %v2062_v19 = vadd.f32 %v5664_v18, %v5819_v55 }
 0x27e   : > { %v5823_v43 = vpop.permute.xlu0 %1784 }
 0x27f   : > { %2452 = vperm.xlu0 %4822, %v2062_v19   ;;  %v2061_v21 = vadd.f32 %v5666_v13, %v5823_v43 }
 0x280   : > { %v5827_v62 = vpop.permute.xlu1 %1832 }
 0x281   : > { %2449 = vperm.xlu1 %4823, %v2061_v21   ;;  %v2070_v54 = vadd.f32 %v5739_v33, %v5827_v62 }
 0x282   : > { %v5831_v12 = vpop.permute.xlu0 %1828 }
 0x283   : > { %2476 = vperm.xlu0 %4822, %v2070_v54   ;;  %v2069_v22 = vadd.f32 %v5743_v48, %v5831_v12 }
 0x284   : > { %v5835_v52 = vpop.permute.xlu1 %1799 }
 0x285   : > { %6938 = vst [vmem:[#allocation20_spill] sm:$0xff] %v5835_v52  ;;  %2473 = vperm.xlu1 %4823, %v2069_v22   ;;  %v2064_v18 = vadd.f32 %v5670_v4, %v5835_v52 }
 0x286   : > { %v5839_v19 = vpop.permute.xlu0 %1795 }
 0x287   : > { %6939 = vst [vmem:[#allocation21_spill] sm:$0xff] %v5839_v19  ;;  %2458 = vperm.xlu0 %4822, %v2064_v18   ;;  %v2063_v13 = vadd.f32 %v5672_v61, %v5839_v19 }
 0x288   : > { %v5843_v21 = vpop.permute.xlu1 %1843 }
 0x289   : > { %6940 = vst [vmem:[#allocation22_spill] sm:$0xff] %v5843_v21  ;;  %2455 = vperm.xlu1 %4823, %v2063_v13   ;;  %v2072_v33 = vadd.f32 %v5747_v26, %v5843_v21  ;;  %v1922_v26 = vadd.f32 %v5514_v23, %v5627_v29  ;;  %v1921_v13 = vadd.f32 %v5558_v59, %v5629_v31 }
 0x28a   : > { %v5847_v54 = vpop.permute.xlu0 %1839 }
 0x28b   : > { %6941 = vst [vmem:[#allocation23_spill] sm:$0xff] %v5847_v54  ;;  %2482 = vperm.xlu0 %4822, %v2072_v33   ;;  %v2071_v48 = vadd.f32 %v5749_v10, %v5847_v54  ;;  %v1924_v10 = vadd.f32 %v5556_v28, %v5636_v44  ;;  %v1926_v44 = vadd.f32 %v5567_v15, %v5676_v63 }
 0x28c   : > { %v5851_v22 = vpop.permute.xlu1 %1854  ;;  %v1928_v63 = vadd.f32 %v5589_v2, %v5680_v49  ;;  %v1930_v49 = vadd.f32 %v5783_v57, %v5640_v9  ;;  %v1937_v9 = vadd.f32 %v5807_v0, %v5721_v3  ;;  %v1942_v3 = vadd.f32 %v5827_v62, %v5771_v24 }
 0x28d   : > { %6942 = vst [vmem:[#allocation24_spill] sm:$0xff] %v5851_v22  ;;  %2479 = vperm.xlu1 %4823, %v2071_v48   ;;  %v2074_v4 = vadd.f32 %v5707_v32, %v5851_v22  ;;  %v1923_v32 = vadd.f32 %v5525_v11, %v5638_v45  ;;  %v1925_v45 = vadd.f32 %v5573_v41, %v5678_v30 }
 0x28e   : > { %v5855_v18 = vpop.permute.xlu0 %1850  ;;  %v1927_v30 = vadd.f32 %v5592_v16, %v5682_v1  ;;  %v1932_v1 = vadd.f32 %v5795_v20, %v5644_v25  ;;  %v1939_v25 = vadd.f32 %v5815_v27, %v5726_v37  ;;  %v1943_v24 = vadd.f32 %v5847_v54, %v5777_v17 }
 0x28f   : > { %6943 = vst [vmem:[#allocation25_spill] sm:$0xff] %v5855_v18  ;;  %2488 = vperm.xlu0 %4822, %v2074_v4   ;;  %v2073_v61 = vadd.f32 %v5709_v56, %v5855_v18 }
 0x290   : > { %v5865_v33 = vpop.permute.xlu1 %1865 }
 0x291   : > { %2485 = vperm.xlu1 %4823, %v2073_v61   ;;  %6944 = vst [vmem:[#allocation26_spill] sm:$0xff] %v5865_v33  ;;  %v2076_v29 = vadd.f32 %v5714_v36, %v5865_v33 }
 0x292   : > { %v5869_v48 = vpop.permute.xlu0 %1861 }
 0x293   : > { %2117 = vperm.xlu0 %4822, %v1922_v26   ;;  %6945 = vst [vmem:[#allocation27_spill] sm:$0xff] %v5869_v48  ;;  %v2075_v31 = vadd.f32 %v5716_v8, %v5869_v48 }
 0x294   : > { %v5877_v56 = vpop.permute.xlu1 %1876 }
 0x295   : > { %2114 = vperm.xlu1 %4823, %v1921_v13   ;;  %6946 = vst [vmem:[#allocation28_spill] sm:$0xff] %v5877_v56  ;;  %v2078_v36 = vadd.f32 %v5757_v35, %v5877_v56  ;;  %v1929_v13 = vadd.f32 %v5787_v14, %v5642_v53  ;;  %v1940_v53 = vadd.f32 %v5811_v46, %v5724_v6 }
 0x296   : > { %v5881_v4 = vpop.permute.xlu0 %1872  ;;  %v1941_v6 = vadd.f32 %v5831_v12, %v5773_v7  ;;  %v1946_v7 = vadd.f32 %v5851_v22, %v5729_v42 }
 0x297   : > { %2123 = vperm.xlu0 %4822, %v1924_v10   ;;  %6947 = vst [vmem:[#allocation29_spill] sm:$0xff] %v5881_v4  ;;  %v2077_v8 = vadd.f32 %v5761_v39, %v5881_v4  ;;  %v6950_v10 = vld [vmem:[#allocation11_spill] sm:$0xff] }
 0x298   : > { %v5889_v61 = vpop.permute.xlu1 %1887  ;;  %v1936_v37 = vadd.f32 %v5835_v52, %v6950_v10 }
 0x299   : > { %2120 = vperm.xlu1 %4823, %v1923_v32   ;;  %6948 = vst [vmem:[#allocation30_spill] sm:$0xff] %v5889_v61  ;;  %v2080_v35 = vadd.f32 %v5765_v40, %v5889_v61  ;;  %v1931_v40 = vadd.f32 %v5799_v51, %v5646_v34  ;;  %v1934_v34 = vadd.f32 %v5819_v55, %v5684_v50  ;;  %v6951_v32 = vld [vmem:[#allocation12_spill] sm:$0xff] }
 0x29a   : > { %v5893_v26 = vpop.permute.xlu0 %1883  ;;  %v1935_v50 = vadd.f32 %v5839_v19, %v6951_v32 }
 0x29b   : > { %2494 = vperm.xlu0 %4822, %v2076_v29   ;;  %6949 = vst [vmem:[#allocation31_spill] sm:$0xff] %v5893_v26  ;;  %v2079_v39 = vadd.f32 %v5767_v60, %v5893_v26  ;;  %v1938_v60 = vadd.f32 %v5803_v58, %v5719_v47  ;;  %v1933_v47 = vadd.f32 %v5823_v43, %v5686_v5  ;;  %v6952_v29 = vld [vmem:[#allocation13_spill] sm:$0xff] }
 0x29c   : > { %v1944_v5 = vadd.f32 %v5843_v21, %v5775_v38 }
 0x29d   : > { %2491 = vperm.xlu1 %4823, %v2075_v31   ;;  %v1945_v31 = vadd.f32 %v5855_v18, %v6952_v29 }
 0x29f   : > { %2129 = vperm.xlu0 %4822, %v1926_v44   ;;  %v6953_v44 = vld [vmem:[#allocation14_spill] sm:$0xff] }
 0x2a1   : > { %2126 = vperm.xlu1 %4823, %v1925_v45   ;;  %v1948_v45 = vadd.f32 %v5865_v33, %v6953_v44 }
 0x2a3   : > { %2500 = vperm.xlu0 %4822, %v2078_v36   ;;  %v6954_v36 = vld [vmem:[#allocation15_spill] sm:$0xff] }
 0x2a4   : > { %v1947_v38 = vadd.f32 %v5869_v48, %v6954_v36 }
 0x2a5   : > { %2497 = vperm.xlu1 %4823, %v2077_v8   ;;  %v6955_v8 = vld [vmem:[#allocation16_spill] sm:$0xff] }
 0x2a6   : > { %v1950_v17 = vadd.f32 %v5877_v56, %v6955_v8 }
 0x2a7   : > { %2135 = vperm.xlu0 %4822, %v1928_v63   ;;  %v6956_v63 = vld [vmem:[#allocation17_spill] sm:$0xff] }
 0x2a8   : > { %v1949_v42 = vadd.f32 %v5881_v4, %v6956_v63 }
 0x2a9   : > { %2132 = vperm.xlu1 %4823, %v1927_v30   ;;  %v2414_v30 = vpop.permute.xlu0 %2413 }
 0x2ab   : > { %2506 = vperm.xlu0 %4822, %v2080_v35   ;;  %v6957_v35 = vld [vmem:[#allocation18_spill] sm:$0xff] }
 0x2ad   : > { %2503 = vperm.xlu1 %4823, %v2079_v39   ;;  %v1952_v39 = vadd.f32 %v5889_v61, %v6957_v35 }
 0x2af   : > { %2141 = vperm.xlu0 %4822, %v1930_v49   ;;  %v2417_v49 = vpop.permute.xlu1 %2416 }
 0x2b1   : > { %2138 = vperm.xlu1 %4823, %v1929_v13   ;;  %v6958_v13 = vld [vmem:[#allocation19_spill] sm:$0xff] }
 0x2b3   : > { %2147 = vperm.xlu0 %4822, %v1932_v1   ;;  %v1951_v1 = vadd.f32 %v5893_v26, %v6958_v13 }
 0x2b5   : > { %2144 = vperm.xlu1 %4823, %v1931_v40   ;;  %v2423_v40 = vpop.permute.xlu0 %2422 }
 0x2b7   : > { %2165 = vperm.xlu0 %4822, %v1938_v60   ;;  %v2420_v60 = vpop.permute.xlu1 %2419 }
 0x2b9   : > { %2162 = vperm.xlu1 %4823, %v1937_v9   ;;  %v2429_v9 = vpop.permute.xlu0 %2428 }
 0x2bb   : > { %2171 = vperm.xlu0 %4822, %v1940_v53   ;;  %v2426_v53 = vpop.permute.xlu1 %2425 }
 0x2bd   : > { %2168 = vperm.xlu1 %4823, %v1939_v25   ;;  %v2435_v25 = vpop.permute.xlu0 %2434 }
 0x2bf   : > { %2153 = vperm.xlu0 %4822, %v1934_v34   ;;  %v2432_v34 = vpop.permute.xlu1 %2431 }
 0x2c1   : > { %2150 = vperm.xlu1 %4823, %v1933_v47   ;;  %v2441_v47 = vpop.permute.xlu0 %2440 }
 0x2c3   : > { %2177 = vperm.xlu0 %4822, %v1942_v3   ;;  %v2438_v3 = vpop.permute.xlu1 %2437 }
 0x2c5   : > { %2174 = vperm.xlu1 %4823, %v1941_v6  }
 0x2c7   : > { %2159 = vperm.xlu0 %4822, %v1936_v37   ;;  %v6959_v37 = vlaneseq }
 0x2c9   : > { %2156 = vperm.xlu1 %4823, %v1935_v50   ;;  %v2210_v32 = vand.u32 127, %v6959_v37 }
 0x2cb   : > { %2183 = vperm.xlu0 %4822, %v1944_v5  }
 0x2cd   : > { %2180 = vperm.xlu1 %4823, %v1943_v24   ;;  %v2215_v24 = vadd.s32 4294967288, %v2210_v32 }
 0x2cf   : > { %2189 = vperm.xlu0 %4822, %v1946_v7  }
 0x2d1   : > { %2186 = vperm.xlu1 %4823, %v1945_v31   ;;  %v6960_v31 = vld [vmem:[#allocation5_spill] sm:$0xff] }
 0x2d2   : > { %v5957_v44 = vsub.s32 %v2210_v32, %v6960_v31 }
 0x2d3   : > { %2195 = vperm.xlu0 %4822, %v1948_v45   ;;  %v5960_v45 = vsub.s32 %v2215_v24, %v6960_v31 }
 0x2d4   : > { %6961 = vst [vmem:[#allocation11_spill] sm:$0xff] %v5957_v44  ;;  %v2520_v63 = vrot.slane %v2420_v60, %v5957_v44  ;;  %v2529_v13 = vrot.slane %v2426_v53, %v5957_v44  ;;  %v2538_v32 = vrot.slane %v2432_v34, %v5957_v44 }
 0x2d5   : > { %2192 = vperm.xlu1 %4823, %v1947_v38   ;;  %6962 = vst [vmem:[#allocation12_spill] sm:$0xff] %v5960_v45  ;;  %v2524_v38 = vrot.slane %v2423_v40, %v5960_v45  ;;  %v2533_v8 = vrot.slane %v2429_v9, %v5960_v45  ;;  %v2542_v35 = vrot.slane %v2435_v25, %v5960_v45 }
 0x2d6   : > { %v2551_v37 = vrot.slane %v2441_v47, %v5960_v45 }
 0x2d7   : > { %2201 = vperm.xlu0 %4822, %v1950_v17   ;;  %v2525_v9 = vsel %vm2220_vm1, %v2524_v38, %v2520_v63  ;;  %v2534_v25 = vsel %vm2220_vm1, %v2533_v8, %v2529_v13  ;;  %v2543_v24 = vsel %vm2220_vm1, %v2542_v35, %v2538_v32 }
 0x2d9   : > { %2198 = vperm.xlu1 %4823, %v1949_v42   ;;  %v2511_v42 = vrot.slane %v2414_v30, %v5957_v44 }
 0x2db   : > { %2207 = vperm.xlu0 %4822, %v1952_v39   ;;  %v2515_v39 = vrot.slane %v2417_v49, %v5960_v45 }
 0x2dd   : > { %2204 = vperm.xlu1 %4823, %v1951_v1   ;;  %v2547_v1 = vrot.slane %v2438_v3, %v5957_v44  ;;  %v2516_v47 = vsel %vm2220_vm1, %v2515_v39, %v2511_v42 }
 0x2de   : > { %v2652_v31 = vsel %vm2357_vm2, %v2525_v9, %v2516_v47 }
 0x2df   : > { %v2552_v34 = vsel %vm2220_vm1, %v2551_v37, %v2547_v1 }
 0x2f2   : > { %v2447_v6 = vpop.permute.xlu0 %2446 }
 0x2f3   : > { %v2560_v30 = vrot.slane %v2447_v6, %v5960_v45  ;;  %v2653_v6 = vsel %vm2359_vm3, %v2534_v25, %v2652_v31 }
 0x2f4   : > { %v2444_v10 = vpop.permute.xlu1 %2443 }
 0x2f5   : > { %v2556_v60 = vrot.slane %v2444_v10, %v5957_v44 }
 0x2f6   : > { %v5948_v50 = vpop.permute.xlu0 %2464 }
 0x2f7   : > { %v2561_v38 = vsel %vm2220_vm1, %v2560_v30, %v2556_v60 }
 0x2f8   : > { %v5950_v5 = vpop.permute.xlu1 %2461 }
 0x2fa   : > { %v5952_v7 = vpop.permute.xlu0 %2470 }
 0x2fc   : > { %v5954_v29 = vpop.permute.xlu1 %2467 }
 0x2fe   : > { %v2453_v36 = vpop.permute.xlu0 %2452 }
 0x2ff   : > { %v2569_v53 = vrot.slane %v2453_v36, %v5960_v45  ;;  %v2654_v36 = vsel %vm2361_vm4, %v2543_v24, %v2653_v6 }
 0x300   : > { %v2450_v17 = vpop.permute.xlu1 %2449  ;;  %v2655_v42 = vsel %vm2363_vm5, %v2552_v34, %v2654_v36  ;;  %v2596_v36 = vrot.slane %v5952_v7, %v5960_v45 }
 0x301   : > { %v2565_v49 = vrot.slane %v2450_v17, %v5957_v44  ;;  %v2656_v13 = vsel %vm2365_vm6, %v2561_v38, %v2655_v42 }
 0x302   : > { %v5971_v40 = vpop.permute.xlu0 %2476 }
 0x303   : > { %v2570_v17 = vsel %vm2220_vm1, %v2569_v53, %v2565_v49 }
 0x304   : > { %v2474_v3 = vpop.permute.xlu1 %2473  ;;  %v2657_v37 = vsel %vm2367_vm7, %v2570_v17, %v2656_v13  ;;  %v2587_v13 = vrot.slane %v5948_v50, %v5960_v45 }
 0x305   : > { %v2601_v17 = vrot.slane %v2474_v3, %v5957_v44 }
 0x306   : > { %v2459_v10 = vpop.permute.xlu0 %2458 }
 0x307   : > { %v2578_v8 = vrot.slane %v2459_v10, %v5960_v45 }
 0x308   : > { %v2456_v63 = vpop.permute.xlu1 %2455 }
 0x309   : > { %v2574_v35 = vrot.slane %v2456_v63, %v5957_v44  ;;  %v2605_v63 = vrot.slane %v5971_v40, %v5960_v45 }
 0x30a   : > { %v2483_v39 = vpop.permute.xlu0 %2482 }
 0x30b   : > { %v2579_v1 = vsel %vm2220_vm1, %v2578_v8, %v2574_v35  ;;  %v2592_v8 = vrot.slane %v5954_v29, %v5957_v44  ;;  %v2583_v35 = vrot.slane %v5950_v5, %v5957_v44  ;;  %v2606_v5 = vsel %vm2220_vm1, %v2605_v63, %v2601_v17 }
 0x30c   : > { %v2480_v9 = vpop.permute.xlu1 %2479  ;;  %v5995_v32 = vsel %vm2369_vm8, %v2579_v1, %v2657_v37  ;;  %v2614_v37 = vrot.slane %v2483_v39, %v5960_v45 }
 0x30d   : > { %v2675_v60 = vsel %vm2668_vm9, %v5995_v32, -inf  ;;  %v2610_v1 = vrot.slane %v2480_v9, %v5957_v44  ;;  %v2597_v3 = vsel %vm2220_vm1, %v2596_v36, %v2592_v8  ;;  %v2588_v39 = vsel %vm2220_vm1, %v2587_v13, %v2583_v35 }
 0x30e   : > { %2676 = vmax.xlane.f32.xlu1 %v2675_v60  ;;  %v2489_v30 = vpop.permute.xlu0 %2488 }
 0x30f   : > { %v2623_v7 = vrot.slane %v2489_v30, %v5960_v45  ;;  %v2659_v30 = vsel %vm2357_vm2, %v2597_v3, %v2588_v39 }
 0x310   : > { %v2486_v25 = vpop.permute.xlu1 %2485 }
 0x311   : > { %v2619_v29 = vrot.slane %v2486_v25, %v5957_v44  ;;  %v2615_v25 = vsel %vm2220_vm1, %v2614_v37, %v2610_v1 }
 0x312   : > { %v5999_v49 = vpop.permute.xlu0 %2117 }
 0x313   : > { %v2624_v4 = vsel %vm2220_vm1, %v2623_v7, %v2619_v29 }
 0x314   : > { %v6001_v53 = vpop.permute.xlu1 %2114 }
 0x316   : > { %v6003_v47 = vpop.permute.xlu0 %2123 }
 0x318   : > { %v6005_v24 = vpop.permute.xlu1 %2120 }
 0x31a   : > { %v2495_v31 = vpop.permute.xlu0 %2494 }
 0x31b   : > { %v2632_v26 = vrot.slane %v2495_v31, %v5960_v45 }
 0x31c   : > { %v2492_v34 = vpop.permute.xlu1 %2491 }
 0x31d   : > { %v2628_v40 = vrot.slane %v2492_v34, %v5957_v44  ;;  %v2660_v34 = vsel %vm2359_vm3, %v2606_v5, %v2659_v30  ;;  %v2225_v30 = vrot.slane %v6005_v24, %v5957_v44 }
 0x31e   : > { %v6007_v10 = vpop.permute.xlu0 %2129  ;;  %v2661_v17 = vsel %vm2361_vm4, %v2615_v25, %v2660_v34 }
 0x31f   : > { %v2633_v31 = vsel %vm2220_vm1, %v2632_v26, %v2628_v40 }
 0x320   : > { %v6009_v6 = vpop.permute.xlu1 %2126 }
 0x321   : > { %v2234_v34 = vrot.slane %v6009_v6, %v5957_v44 }
 0x322   : > { %v2501_v38 = vpop.permute.xlu0 %2500 }
 0x323   : > { %v2641_v50 = vrot.slane %v2501_v38, %v5960_v45 }
 0x324   : > { %v2498_v42 = vpop.permute.xlu1 %2497 }
 0x325   : > { %v2637_v61 = vrot.slane %v2498_v42, %v5957_v44  ;;  %v2662_v42 = vsel %vm2363_vm5, %v2624_v4, %v2661_v17  ;;  %v2214_v17 = vrot.slane %v6001_v53, %v5957_v44 }
 0x326   : > { %v2136_v60 = vpop.permute.xlu0 %2135  ;;  %v2663_v1 = vsel %vm2365_vm6, %v2633_v31, %v2662_v42  ;;  %v2238_v31 = vrot.slane %v6007_v10, %v5960_v45 }
 0x327   : > { %v2642_v38 = vsel %vm2220_vm1, %v2641_v50, %v2637_v61  ;;  %v2247_v24 = vrot.slane %v2136_v60, %v5960_v45 }
 0x328   : > { %v2133_v9 = vpop.permute.xlu1 %2132  ;;  %v2664_v29 = vsel %vm2367_vm7, %v2642_v38, %v2663_v1  ;;  %v2219_v38 = vrot.slane %v5999_v49, %v5960_v45  ;;  %v2239_v53 = vsel %vm2220_vm1, %v2238_v31, %v2234_v34 }
 0x32a   : > { %v2507_v8 = vpop.permute.xlu0 %2506  ;;  %v2221_v60 = vsel %vm2220_vm1, %v2219_v38, %v2214_v17 }
 0x32b   : > { %v2650_v36 = vrot.slane %v2507_v8, %v5960_v45  ;;  %v2229_v8 = vrot.slane %v6003_v47, %v5960_v45 }
 0x32c   : > { %v2504_v63 = vpop.permute.xlu1 %2503 }
 0x32d   : > { %v2646_v35 = vrot.slane %v2504_v63, %v5957_v44  ;;  %v2243_v63 = vrot.slane %v2133_v9, %v5957_v44  ;;  %v2230_v6 = vsel %vm2220_vm1, %v2229_v8, %v2225_v30 }
 0x32e   : > { %v2142_v13 = vpop.permute.xlu0 %2141 }
 0x32f   : > { %v2651_v37 = vsel %vm2220_vm1, %v2650_v36, %v2646_v35  ;;  %v2256_v47 = vrot.slane %v2142_v13, %v5960_v45  ;;  %v2358_v13 = vsel %vm2357_vm2, %v2230_v6, %v2221_v60 }
 0x330   : > { %v2139_v7 = vpop.permute.xlu1 %2138  ;;  %v6047_v26 = vsel %vm2369_vm8, %v2651_v37, %v2664_v29  ;;  %v2248_v29 = vsel %vm2220_vm1, %v2247_v24, %v2243_v63 }
 0x331   : > { %v2678_v3 = vsel %vm2668_vm9, %v6047_v26, -inf  ;;  %v2252_v42 = vrot.slane %v2139_v7, %v5957_v44 }
 0x332   : > { %2679 = vmax.xlane.f32.xlu0 %v2678_v3  ;;  %v2148_v61 = vpop.permute.xlu0 %2147 }
 0x333   : > { %v2265_v1 = vrot.slane %v2148_v61, %v5960_v45  ;;  %v2257_v7 = vsel %vm2220_vm1, %v2256_v47, %v2252_v42 }
 0x334   : > { %v2145_v40 = vpop.permute.xlu1 %2144 }
 0x335   : > { %v2261_v10 = vrot.slane %v2145_v40, %v5957_v44  ;;  %v2360_v40 = vsel %vm2359_vm3, %v2239_v53, %v2358_v13 }
 0x336   : > { %v6051_v4 = vpop.permute.xlu0 %2165  ;;  %v2362_v8 = vsel %vm2361_vm4, %v2248_v29, %v2360_v40 }
 0x337   : > { %v2266_v61 = vsel %vm2220_vm1, %v2265_v1, %v2261_v10  ;;  %v2364_v31 = vsel %vm2363_vm5, %v2257_v7, %v2362_v8 }
 0x338   : > { %v6053_v5 = vpop.permute.xlu1 %2162  ;;  %v2366_v38 = vsel %vm2365_vm6, %v2266_v61, %v2364_v31 }
 0x339   : > { %v2288_v7 = vrot.slane %v6053_v5, %v5957_v44 }
 0x33a   : > { %v2172_v50 = vpop.permute.xlu0 %2171 }
 0x33c   : > { %v2169_v39 = vpop.permute.xlu1 %2168 }
 0x33e   : > { %v2154_v25 = vpop.permute.xlu0 %2153 }
 0x33f   : > { %v2274_v49 = vrot.slane %v2154_v25, %v5960_v45 }
 0x340   : > { %v2151_v36 = vpop.permute.xlu1 %2150 }
 0x341   : > { %v2270_v37 = vrot.slane %v2151_v36, %v5957_v44 }
 0x342   : > { %v2178_v35 = vpop.permute.xlu0 %2177 }
 0x343   : > { %v2275_v25 = vsel %vm2220_vm1, %v2274_v49, %v2270_v37  ;;  %v2297_v37 = vrot.slane %v2169_v39, %v5957_v44  ;;  %v2301_v49 = vrot.slane %v2172_v50, %v5960_v45  ;;  %v2310_v29 = vrot.slane %v2178_v35, %v5960_v45 }
 0x344   : > { %v2175_v9 = vpop.permute.xlu1 %2174  ;;  %v2368_v24 = vsel %vm2367_vm7, %v2275_v25, %v2366_v38 }
 0x345   : > { %v2306_v60 = vrot.slane %v2175_v9, %v5957_v44  ;;  %v2302_v9 = vsel %vm2220_vm1, %v2301_v49, %v2297_v37 }
 0x346   : > { %v2160_v3 = vpop.permute.xlu0 %2159 }
 0x347   : > { %v2283_v30 = vrot.slane %v2160_v3, %v5960_v45  ;;  %v2292_v3 = vrot.slane %v6051_v4, %v5960_v45  ;;  %v2311_v5 = vsel %vm2220_vm1, %v2310_v29, %v2306_v60 }
 0x348   : > { %v2157_v34 = vpop.permute.xlu1 %2156 }
 0x349   : > { %v2279_v36 = vrot.slane %v2157_v34, %v5957_v44  ;;  %v2293_v34 = vsel %vm2220_vm1, %v2292_v3, %v2288_v7 }
 0x34a   : > { %v2184_v17 = vpop.permute.xlu0 %2183 }
 0x34b   : > { %v2284_v63 = vsel %vm2220_vm1, %v2283_v30, %v2279_v36  ;;  %v2319_v61 = vrot.slane %v2184_v17, %v5960_v45  ;;  %v2371_v17 = vsel %vm2357_vm2, %v2302_v9, %v2293_v34 }
 0x34c   : > { %v2181_v42 = vpop.permute.xlu1 %2180  ;;  %v2370_v47 = vsel %vm2369_vm8, %v2284_v63, %v2368_v24  ;;  %v2372_v24 = vsel %vm2359_vm3, %v2311_v5, %v2371_v17 }
 0x34d   : > { %v2669_v6 = vsel %vm2668_vm9, %v2370_v47, -inf  ;;  %v2315_v40 = vrot.slane %v2181_v42, %v5957_v44 }
 0x34e   : > { %2670 = vmax.xlane.f32.xlu0 %v2669_v6  ;;  %v2190_v10 = vpop.permute.xlu0 %2189 }
 0x34f   : > { %v2328_v39 = vrot.slane %v2190_v10, %v5960_v45  ;;  %v2320_v31 = vsel %vm2220_vm1, %v2319_v61, %v2315_v40 }
 0x350   : > { %v2187_v1 = vpop.permute.xlu1 %2186  ;;  %v2373_v10 = vsel %vm2361_vm4, %v2320_v31, %v2372_v24 }
 0x351   : > { %v2324_v30 = vrot.slane %v2187_v1, %v5957_v44 }
 0x352   : > { %v2196_v53 = vpop.permute.xlu0 %2195 }
 0x353   : > { %v2337_v8 = vrot.slane %v2196_v53, %v5960_v45  ;;  %v2329_v38 = vsel %vm2220_vm1, %v2328_v39, %v2324_v30 }
 0x354   : > { %v2193_v13 = vpop.permute.xlu1 %2192  ;;  %v2374_v37 = vsel %vm2363_vm5, %v2329_v38, %v2373_v10 }
 0x355   : > { %v2333_v35 = vrot.slane %v2193_v13, %v5957_v44 }
 0x356   : > { %v2202_v50 = vpop.permute.xlu0 %2201 }
 0x357   : > { %v2346_v4 = vrot.slane %v2202_v50, %v5960_v45  ;;  %v2338_v42 = vsel %vm2220_vm1, %v2337_v8, %v2333_v35 }
 0x358   : > { %v2199_v25 = vpop.permute.xlu1 %2198  ;;  %v2375_v60 = vsel %vm2365_vm6, %v2338_v42, %v2374_v37  ;;  %v2926_v42 = vld [vmem:[%s6874_s3 + $0x88] sm:$0xff]  ;;  %v2928_v37 = vld [vmem:[%s6874_s3 + $0x98] sm:$0xff] }
 0x359   : > { %v2342_v36 = vrot.slane %v2199_v25, %v5957_v44 }
 0x35a   : > { %v2208_v63 = vpop.permute.xlu0 %2207 }
 0x35b   : > { %v2355_v6 = vrot.slane %v2208_v63, %v5960_v45  ;;  %v2347_v1 = vsel %vm2220_vm1, %v2346_v4, %v2342_v36 }
 0x35c   : > { %v2205_v53 = vpop.permute.xlu1 %2204  ;;  %v2376_v13 = vsel %vm2367_vm7, %v2347_v1, %v2375_v60  ;;  %v2910_v1 = vld [vmem:[%s6874_s3 + $0x8] sm:$0xff] }
 0x35d   : > { %v2351_v49 = vrot.slane %v2205_v53, %v5957_v44  ;;  %v2927_v53 = vld [vmem:[%s6874_s3 + $0x90] sm:$0xff] }
 0x35e   : > { %v4732_v60 = vpack.c.bf16 %v2928_v37, %v2927_v53 }
 0x35f   : > { %v2356_v29 = vsel %vm2220_vm1, %v2355_v6, %v2351_v49  ;;  %v2909_v6 = vld [vmem:[%s6874_s3] sm:$0xff] }
 0x360   : > { %v2377_v7 = vsel %vm2369_vm8, %v2356_v29, %v2376_v13  ;;  %v4730_v49 = vpack.c.bf16 %v2910_v1, %v2909_v6  ;;  %v2911_v29 = vld [vmem:[%s6874_s3 + $0x10] sm:$0xff]  ;;  %v2912_v13 = vld [vmem:[%s6874_s3 + $0x18] sm:$0xff] }
 0x361   : > { %v2672_v3 = vsel %vm2668_vm9, %v2377_v7, -inf }
 0x362   : > { %2673 = vmax.xlane.f32.xlu0 %v2672_v3  ;;  %v2930_v3 = vld [vmem:[%s6874_s3 + $0xa8] sm:$0xff] }
 0x39b   : > { %v2677_v40 = vpop.xlane.xlu1 %2676 }
 0x39c   : > { %v2683_v61 = vsub.f32 %v5995_v32, %v2677_v40  ;;  %v4734_v40 = vpack.c.bf16 %v2912_v13, %v2911_v29  ;;  %v6965_v13 = vmov 0.0  }
 0x39e   : > { %v2689_v30 = vmul.f32 1.442695, %v2683_v61 }
 0x3a0   : > { %4829 = vpow2.f32 %v2689_v30  ;;  %v2913_v30 = vld [vmem:[%s6874_s3 + $0x20] sm:$0xff] }
 0x3aa   : > { %v6128_v39 = vpop.eup %4829 }
 0x3ab   : > { %v2699_v50 = vsel %vm2668_vm9, %v6128_v39, 0.0 }
 0x3ac   : > { %2700 = vadd.xlane.f32.xlu1 %v2699_v50  ;;  %v2914_v50 = vld [vmem:[%s6874_s3 + $0x28] sm:$0xff] }
 0x3bf   : > { %v2680_v9 = vpop.xlane.xlu0 %2679 }
 0x3c0   : > { %v2684_v35 = vsub.f32 %v6047_v26, %v2680_v9  ;;  %v2931_v9 = vld [vmem:[%s6874_s3 + $0xb0] sm:$0xff] }
 0x3c2   : > { %v2691_v8 = vmul.f32 1.442695, %v2684_v35  ;;  %v2932_v35 = vld [vmem:[%s6874_s3 + $0xb8] sm:$0xff] }
 0x3c4   : > { %4831 = vpow2.f32 %v2691_v8  ;;  %v4738_v8 = vpack.c.bf16 %v2914_v50, %v2913_v30 }
 0x3ce   : > { %v6133_v5 = vpop.eup %4831 }
 0x3cf   : > { %v2702_v25 = vsel %vm2668_vm9, %v6133_v5, 0.0 }
 0x3d0   : > { %2703 = vadd.xlane.f32.xlu0 %v2702_v25  ;;  %v4740_v25 = vpack.c.bf16 %v2932_v35, %v2931_v9 }
 0x3db   : > { %v2671_v32 = vpop.xlane.xlu0 %2670 }
 0x3dc   : > { %v2681_v4 = vsub.f32 %v2370_v47, %v2671_v32  ;;  %v2925_v47 = vld [vmem:[%s6874_s3 + $0x80] sm:$0xff]  ;;  %v2915_v32 = vld [vmem:[%s6874_s3 + $0x30] sm:$0xff] }
 0x3dd   : > { %v4728_v10 = vpack.c.bf16 %v2926_v42, %v2925_v47  ;;  %v2935_v47 = vld [vmem:[%s6874_s3 + $0xd0] sm:$0xff]  ;;  %v2936_v42 = vld [vmem:[%s6874_s3 + $0xd8] sm:$0xff] }
 0x3de   : > { %v2685_v34 = vmul.f32 1.442695, %v2681_v4  ;;  %v2916_v4 = vld [vmem:[%s6874_s3 + $0x38] sm:$0xff] }
 0x3df   : > { %4729 = vmatprep.subr.bf16.mxu1 %v4728_v10  ;;  %v4748_v10 = vpack.c.bf16 %v2936_v42, %v2935_v47  ;;  %v2924_v47 = vld [vmem:[%s6874_s3 + $0x78] sm:$0xff] }
 0x3e0   : > { %4833 = vpow2.f32 %v2685_v34  ;;  %4731 = vmatpush3.bf16.msra.mxu1 %v4730_v49  ;;  %v2933_v34 = vld [vmem:[%s6874_s3 + $0xc0] sm:$0xff] }
 0x3e1   : > { %4733 = vmatprep.subr.bf16.mxu1 %v4732_v60  ;;  %v6963_v49 = vld [vmem:[#allocation9_spill] sm:$0xff]  ;;  %v6964_v60 = vld [vmem:[#allocation10_spill] sm:$0xff] }
 0x3e2   : > { %v4726_v29 = vpack.c.bf16 %v6964_v60, %v6963_v49 }
 0x3e4   : > { %4735 = vmatpush3.bf16.msra.mxu1 %v4734_v40 }
 0x3ea   : > { %v6137_v31 = vpop.eup %4833 }
 0x3eb   : > { %v2693_v36 = vsel %vm2668_vm9, %v6137_v31, 0.0 }
 0x3ec   : > { %2694 = vadd.xlane.f32.xlu1 %v2693_v36  ;;  %v2934_v36 = vld [vmem:[%s6874_s3 + $0xc8] sm:$0xff] }
 0x3ef   : > { %v2674_v17 = vpop.xlane.xlu0 %2673 }
 0x3f0   : > { %v2682_v26 = vsub.f32 %v2377_v7, %v2674_v17  ;;  %v2929_v7 = vld [vmem:[%s6874_s3 + $0xa0] sm:$0xff]  ;;  %v4742_v17 = vpack.c.bf16 %v2916_v4, %v2915_v32  ;;  %v2938_v32 = vld [vmem:[%s6874_s3 + $0xe8] sm:$0xff] }
 0x3f1   : > { %v4736_v61 = vpack.c.bf16 %v2930_v3, %v2929_v7  ;;  %v2922_v4 = vld [vmem:[%s6874_s3 + $0x68] sm:$0xff] }
 0x3f2   : > { %v2687_v38 = vmul.f32 1.442695, %v2682_v26  ;;  %v4744_v26 = vpack.c.bf16 %v2934_v36, %v2933_v34  ;;  %v2939_v36 = vld [vmem:[%s6874_s3 + $0xf0] sm:$0xff] }
 0x3f3   : > { %4737 = vmatprep.subr.bf16.mxu1 %v4736_v61 }
 0x3f4   : > { %4835 = vpow2.f32 %v2687_v38  ;;  %4739 = vmatpush3.bf16.msra.mxu1 %v4738_v8  ;;  %v2917_v38 = vld [vmem:[%s6874_s3 + $0x40] sm:$0xff]  ;;  %v2920_v8 = vld [vmem:[%s6874_s3 + $0x58] sm:$0xff] }
 0x3f5   : > { %4741 = vmatprep.subr.bf16.mxu1 %v4740_v25 }
 0x3f8   : > { %4743 = vmatpush3.bf16.msra.mxu1 %v4742_v17  ;;  %v2940_v17 = vld [vmem:[%s6874_s3 + $0xf8] sm:$0xff] }
 0x3f9   : > { %4745 = vmatprep.subr.bf16.mxu1 %v4744_v26 }
 0x3fe   : > { %v6141_v63 = vpop.eup %4835 }
 0x3ff   : > { %v2696_v24 = vsel %vm2668_vm9, %v6141_v63, 0.0 }
 0x400   : > { %2697 = vadd.xlane.f32.xlu0 %v2696_v24  ;;  %v2918_v24 = vld [vmem:[%s6874_s3 + $0x48] sm:$0xff] }
 0x401   : > { %v4746_v6 = vpack.c.bf16 %v2918_v24, %v2917_v38  ;;  %v4756_v38 = vpack.c.bf16 %v2940_v17, %v2939_v36  ;;  %v2923_v24 = vld [vmem:[%s6874_s3 + $0x70] sm:$0xff]  ;;  %v2906_v36 = vld [vmem:[%s6875_s4 + $0x3] ss:$0 sm:$0xff] }
 0x402   : > { %v4758_v42 = vpack.c.bf16 %v2924_v47, %v2923_v24  ;;  %v6969_v24 = vld [vmem:[#allocation8_spill] sm:$0xff] }
 0x403   : > { %4747 = vmatpush3.bf16.msra.mxu1 %v4746_v6  ;;  %v4635_v6 = vld [vmem:[%s6875_s4 + $0x2] ss:$8 sm:$0x3] }
 0x404   : > { %4749 = vmatprep.subr.bf16.mxu1 %v4748_v10  ;;  %v6966_v10 = vld [vmem:[#allocation6_spill] sm:$0xff] }
 0x439   : > { %v2701_v1 = vpop.xlane.xlu1 %2700 }
 0x43a   : > { %4837 = vrcp.f32 %v2701_v1  ;;  %v2887_v1 = vrot.slane %v4635_v6, %v6966_v10 }
 0x444   : > { %v4838_v53 = vpop.eup %4837 }
 0x445   : > { %v2710_v37 = vmul.f32 %v4838_v53, %v6128_v39 }
 0x447   : > { %4644 = vmatmul.mubr.msk.f32.vlgmr.msra.gmra.mrb[10].mxu0 %vm2668_vm9, %v2710_v37  ;;  %v6967_v37 = vld [vmem:[#allocation7_spill] sm:$0xff] }
 0x448   : > { %4727 = vmatpush1.bf16.msra.mxu0 %v4726_v29  ;;  %2789 = vmatprep.mubr.f32.mxu0 %v6965_v13  ;;  %v2891_v49 = vrot.slane %v4635_v6, %v6967_v37 }
 0x45d   : > { %v2704_v7 = vpop.xlane.xlu0 %2703 }
 0x45e   : > { %4839 = vrcp.f32 %v2704_v7 }
 0x468   : > { %v4840_v3 = vpop.eup %4839 }
 0x469   : > { %v2712_v40 = vmul.f32 %v4840_v3, %v6133_v5  ;;  %v2919_v5 = vld [vmem:[%s6874_s3 + $0x50] sm:$0xff] }
 0x46a   : > { %v4750_v25 = vpack.c.bf16 %v2920_v8, %v2919_v5 }
 0x46b   : > { %4645 = vmatmul.mubr.msk.f32.gmra.mrb[12].mxu0 %vm2668_vm9, %v2712_v40 }
 0x46c   : > { %2866 = vmatprep.mubr.f32.mxu0 %v6965_v13  ;;  %4751 = vmatpush3.bf16.msra.mxu1 %v4750_v25 }
 0x479   : > { %v2695_v61 = vpop.xlane.xlu1 %2694 }
 0x47a   : > { %4841 = vrcp.f32 %v2695_v61 }
 0x484   : > { %v4842_v39 = vpop.eup %4841 }
 0x485   : > { %v2706_v30 = vmul.f32 %v4842_v39, %v6137_v31  ;;  %v2937_v31 = vld [vmem:[%s6874_s3 + $0xe0] sm:$0xff] }
 0x486   : > { %v4752_v34 = vpack.c.bf16 %v2938_v32, %v2937_v31 }
 0x487   : > { %4646 = vmatmul.mubr.msk.f32.vlgmr.msra.gmra.mrb[10].mxu0 %vm2668_vm9, %v2706_v30 }
 0x488   : > { %2872 = vmatprep.mubr.f32.mxu0 %v6965_v13  ;;  %4753 = vmatprep.subr.bf16.mxu1 %v4752_v34 }
 0x48d   : > { %v2698_v50 = vpop.xlane.xlu0 %2697 }
 0x48e   : > { %4843 = vrcp.f32 %v2698_v50 }
 0x498   : > { %v4844_v9 = vpop.eup %4843 }
 0x499   : > { %v2708_v35 = vmul.f32 %v4844_v9, %v6141_v63  ;;  %v2921_v63 = vld [vmem:[%s6874_s3 + $0x60] sm:$0xff] }
 0x49a   : > { %v4754_v26 = vpack.c.bf16 %v2922_v4, %v2921_v63 }
 0x49b   : > { %4647 = vmatmul.mubr.msk.f32.gmra.mrb[12].mxu0 %vm2668_vm9, %v2708_v35 }
 0x49c   : > { %4755 = vmatpush3.bf16.msra.mxu1 %v4754_v26 }
 0x49d   : > { %4757 = vmatprep.subr.bf16.mxu1 %v4756_v38 }
 0x4a0   : > { %4759 = vmatpush3.bf16.msra.mxu1 %v4758_v42 }
 0x55a   : > { %v2868_v53 = vpop.f32.mrb[10].mxu0 }
 0x55b   : > { %v2879_v60 = vmul.f32 0.5, %v2868_v53  ;;  %v2870_v29 = vpop.f32.mrb[11].mxu0 }
 0x55c   : > { %v2880_v13 = vmul.f32 0.5, %v2870_v29 }
 0x55d   : > { %v2894_v7 = vadd.f32 %v2887_v1, %v2879_v60 }
 0x55e   : > { %v2895_v3 = vadd.f32 %v2891_v49, %v2880_v13 }
 0x55f   : > { %v2898_v40 = vmul.f32 0.2, %v2894_v7 }
 0x560   : > { %v2899_v61 = vmul.f32 0.2, %v2895_v3 }
 0x561   : > { %v2902_v30 = vmax.f32 %v2894_v7, %v2898_v40 }
 0x562   : > { %v2903_v39 = vmax.f32 %v2895_v3, %v2899_v61 }
 0x564   : > { %3005 = vmatprep.mubr.f32.mxu1 %v2903_v39 }
 0x565   : > { %3006 = vmatmul.mubr.f32.vlgmr.msra.gmra.mrb[6].mxu1 %v2902_v30 }
 0x56e   : > { %v2874_v50 = vpop.f32.mrb[12].mxu0 }
 0x56f   : > { %v2881_v9 = vmul.f32 0.5, %v2874_v50  ;;  %v2876_v35 = vpop.f32.mrb[13].mxu0 }
 0x570   : > { %v2882_v5 = vmul.f32 0.5, %v2876_v35 }
 0x571   : > { %v2896_v8 = vadd.f32 %v2887_v1, %v2881_v9 }
 0x572   : > { %v2897_v31 = vadd.f32 %v2891_v49, %v2882_v5 }
 0x573   : > { %v2900_v25 = vmul.f32 0.2, %v2896_v8 }
 0x574   : > { %v2901_v32 = vmul.f32 0.2, %v2897_v31 }
 0x575   : > { %v2904_v4 = vmax.f32 %v2896_v8, %v2900_v25 }
 0x576   : > { %v2905_v63 = vmax.f32 %v2897_v31, %v2901_v32 }
 0x578   : > { %3010 = vmatprep.mubr.f32.mxu1 %v2905_v63 }
 0x579   : > { %3011 = vmatmul.mubr.f32.gmra.mrb[8].mxu1 %v2904_v4 }
 0x638   : > { %v4692_v34 = vpop.f32.mrb[6].mxu1 }
 0x639   : > { %v4693_v17 = vpop.f32.mrb[7].mxu1 }
 0x63a   : > { %v4694_v26 = vadd.f32 %v4693_v17, %v4692_v34 }
 0x63c   : > { %v6262_v38 = vadd.f32 %v4694_v26, %v2906_v36 }
 0x63e   : > { %6968 = vst [vmem:[#allocation13_spill] sm:$0xff] %v6262_v38  ;;  %v3025_v47 = vrot.slane %v6262_v38, %v6969_v24  ;;  %v3018_v42 = vcombine.high %v6262_v38, %v6262_v38 }
 0x640   : > { %v3041_v6 = vrot.slane %v3025_v47, %v6969_v24  ;;  %v3033_v1 = vcombine.high %v3025_v47, %v3025_v47  ;;  %v3032_v53 = vrot.slane %v3018_v42, %v6969_v24 }
 0x642   : > { %v3119_v37 = vrot.slane %v3041_v6, %v6966_v10  ;;  %v3055_v49 = vrot.slane %v3033_v1, %v6969_v24  ;;  %v3063_v60 = vcombine.high %v3041_v6, %v3041_v6  ;;  %v3048_v13 = vrot.slane %v3032_v53, %v6969_v24 }
 0x643   : > { %v3034_v61 = vcombine.high %v3032_v53, %v3032_v53 }
 0x644   : > { %3180 = vrot.lane.b32.xlu1 %v3119_v37, %s4933_s7  ;;  %v3123_v29 = vrot.slane %v3055_v49, %v6966_v10  ;;  %v3127_v7 = vrot.slane %v3063_v60, %v6966_v10  ;;  %v3135_v3 = vrot.slane %v3048_v13, %v6966_v10  ;;  %v3065_v40 = vcombine.high %v3055_v49, %v3055_v49 }
 0x645   : > { %v3062_v50 = vrot.slane %v3034_v61, %v6969_v24  ;;  %v3064_v5 = vcombine.high %v3048_v13, %v3048_v13 }
 0x646   : > { %3182 = vrot.lane.b32.xlu0 %v3123_v29, %s4933_s7  ;;  %v3131_v30 = vrot.slane %v3065_v40, %v6966_v10 }
 0x647   : > { %v3139_v31 = vrot.slane %v3062_v50, %v6966_v10  ;;  %v3143_v63 = vrot.slane %v3064_v5, %v6966_v10  ;;  %v3066_v34 = vcombine.high %v3062_v50, %v3062_v50 }
 0x648   : > { %3184 = vrot.lane.b32.xlu1 %v3127_v7, %s4933_s7 }
 0x649   : > { %v3147_v6 = vrot.slane %v3066_v34, %v6966_v10 }
 0x64a   : > { %3188 = vrot.lane.b32.xlu0 %v3135_v3, %s4933_s7 }
 0x64c   : > { %v4695_v39 = vpop.f32.mrb[8].mxu1 }
 0x64d   : > { %v4696_v9 = vpop.f32.mrb[9].mxu1 }
 0x64e   : > { %v4697_v35 = vadd.f32 %v4696_v9, %v4695_v39  ;;  %3186 = vrot.lane.b32.xlu0 %v3131_v30, %s4933_s7 }
 0x650   : > { %v6283_v8 = vadd.f32 %v4697_v35, %v2906_v36 }
 0x652   : > { %6970 = vst [vmem:[#allocation14_spill] sm:$0xff] %v6283_v8  ;;  %3190 = vrot.lane.b32.xlu0 %v3139_v31, %s4933_s7  ;;  %v3074_v25 = vrot.slane %v6283_v8, %v6969_v24  ;;  %v3067_v32 = vcombine.high %v6283_v8, %v6283_v8 }
 0x654   : > { %v3090_v4 = vrot.slane %v3074_v25, %v6969_v24  ;;  %v3082_v17 = vcombine.high %v3074_v25, %v3074_v25  ;;  %v3081_v26 = vrot.slane %v3067_v32, %v6969_v24  ;;  %v6321_v32 = vld [vmem:[%s6875_s4 + $0x4] ss:$0 sm:$0xff] }
 0x656   : > { %3192 = vrot.lane.b32.xlu0 %v3143_v63, %s4933_s7  ;;  %v3151_v36 = vrot.slane %v3090_v4, %v6966_v10  ;;  %v3104_v47 = vrot.slane %v3082_v17, %v6969_v24  ;;  %v3083_v42 = vcombine.high %v3081_v26, %v3081_v26  ;;  %v3112_v49 = vcombine.high %v3090_v4, %v3090_v4 }
 0x657   : > { %v3097_v13 = vrot.slane %v3081_v26, %v6969_v24 }
 0x658   : > { %3196 = vrot.lane.b32.xlu1 %v3151_v36, %s4933_s7  ;;  %v3111_v1 = vrot.slane %v3083_v42, %v6969_v24  ;;  %v3155_v53 = vrot.slane %v3104_v47, %v6966_v10  ;;  %v3159_v29 = vrot.slane %v3112_v49, %v6966_v10  ;;  %v3114_v3 = vcombine.high %v3104_v47, %v3104_v47 }
 0x659   : > { %v3167_v7 = vrot.slane %v3097_v13, %v6966_v10  ;;  %v3113_v39 = vcombine.high %v3097_v13, %v3097_v13 }
 0x65a   : > { %3194 = vrot.lane.b32.xlu0 %v3147_v6, %s4933_s7  ;;  %v3115_v37 = vcombine.high %v3111_v1, %v3111_v1  ;;  %v3163_v40 = vrot.slane %v3114_v3, %v6966_v10  ;;  %v3171_v61 = vrot.slane %v3111_v1, %v6966_v10 }
 0x65b   : > { %v3175_v30 = vrot.slane %v3113_v39, %v6966_v10 }
 0x65c   : > { %3198 = vrot.lane.b32.xlu1 %v3155_v53, %s4933_s7  ;;  %v3179_v60 = vrot.slane %v3115_v37, %v6966_v10 }
 0x65e   : > { %3210 = vrot.lane.b32.xlu0 %v3179_v60, %s4933_s7 }
 0x660   : > { %3200 = vrot.lane.b32.xlu1 %v3159_v29, %s4933_s7 }
 0x664   : > { %3204 = vrot.lane.b32.xlu1 %v3167_v7, %s4933_s7 }
 0x668   : > { %3202 = vrot.lane.b32.xlu1 %v3163_v40, %s4933_s7 }
 0x66c   : > { %3206 = vrot.lane.b32.xlu1 %v3171_v61, %s4933_s7 }
 0x670   : > { %3208 = vrot.lane.b32.xlu1 %v3175_v30, %s4933_s7  ;;  %s4870_s7 = sshll.u32 %s4935_s6, 4  ;;  %s4871_s7 = int_to_ptr.vmem [resolvable:$false] %s4870_s7 }
 0x671   : > { %s4872_s8 = scalar_lea.vmem %s4871_s7, 512  ;;  %p4873_p0 = scmp.lt.s32.totalorder %s6826_s17, %s4871_s7 }
 0x672   : > { %p4874_p1 = scmp.lt.s32.totalorder %s4872_s8, %s4866_s22 }
 0x674   : > { %p4875_p2 = por %p4874_p1, %p4873_p0 }
 0x676   : > { %p4876_p3 = pnand %p4875_p2, %p4869_p13 }
 0x6b6   : > { %v3181_v24 = vpop.permute.xlu1 %3180 }
 0x6b7   : > { %v3228_v50 = vadd.f32 %v3181_v24, %v6262_v38  ;;  %v3229_v9 = vadd.f32 %v3181_v24, %v6283_v8 }
 0x6b8   : > { %v3183_v17 = vpop.permute.xlu0 %3182 }
 0x6b9   : > { %v3260_v35 = vmul.f32 0.2, %v3228_v50  ;;  %v3261_v5 = vmul.f32 0.2, %v3229_v9  ;;  %v3230_v26 = vadd.f32 %v3183_v17, %v6262_v38  ;;  %v3231_v36 = vadd.f32 %v3183_v17, %v6283_v8 }
 0x6ba   : > { %v3185_v47 = vpop.permute.xlu1 %3184 }
 0x6bb   : > { %v3292_v31 = vmax.f32 %v3228_v50, %v3260_v35  ;;  %v3293_v25 = vmax.f32 %v3229_v9, %v3261_v5  ;;  %v3262_v42 = vmul.f32 0.2, %v3230_v26  ;;  %v3263_v6 = vmul.f32 0.2, %v3231_v36 }
 0x6bc   : > { %v3232_v1 = vadd.f32 %v3185_v47, %v6262_v38  ;;  %v3233_v53 = vadd.f32 %v3185_v47, %v6283_v8  ;;  %v3189_v37 = vpop.permute.xlu0 %3188 }
 0x6bd   : > { %v3324_v63 = vmul.f32 %v3292_v31, %v6321_v32  ;;  %v3325_v10 = vmul.f32 %v3293_v25, %v6321_v32  ;;  %v3236_v49 = vadd.f32 %v3189_v37, %v6262_v38  ;;  %v3237_v60 = vadd.f32 %v3189_v37, %v6283_v8 }
 0x6be   : > { %v3294_v29 = vmax.f32 %v3230_v26, %v3262_v42  ;;  %v3295_v13 = vmax.f32 %v3231_v36, %v3263_v6  ;;  %v3264_v7 = vmul.f32 0.2, %v3232_v1  ;;  %v3265_v3 = vmul.f32 0.2, %v3233_v53 }
 0x6bf   : > { %3517 = vrot.lane.b32.xlu1 %v3324_v63, %s4934_s10  ;;  %3519 = vrot.lane.b32.xlu0 %v3325_v10, %s4934_s10  ;;  %v3360_v4 = vsel %vm3356_vm10, %v3325_v10, 0.0  ;;  %v3357_v34 = vsel %vm3356_vm10, %v3324_v63, 0.0  ;;  %v3268_v40 = vmul.f32 0.2, %v3236_v49  ;;  %v3269_v61 = vmul.f32 0.2, %v3237_v60 }
 0x6c0   : > { %v3296_v39 = vmax.f32 %v3232_v1, %v3264_v7  ;;  %v3297_v30 = vmax.f32 %v3233_v53, %v3265_v3  ;;  %v3327_v24 = vmul.f32 %v3295_v13, %v6321_v32  ;;  %v3326_v50 = vmul.f32 %v3294_v29, %v6321_v32  ;;  %v3187_v47 = vpop.permute.xlu0 %3186 }
 0x6c1   : > { %v3300_v9 = vmax.f32 %v3236_v49, %v3268_v40  ;;  %v3301_v35 = vmax.f32 %v3237_v60, %v3269_v61  ;;  %v3234_v53 = vadd.f32 %v3187_v47, %v6262_v38  ;;  %v3235_v37 = vadd.f32 %v3187_v47, %v6283_v8 }
 0x6c2   : > { %v3329_v5 = vmul.f32 %v3297_v30, %v6321_v32  ;;  %v3328_v31 = vmul.f32 %v3296_v39, %v6321_v32  ;;  %v3366_v10 = vsel %vm3356_vm10, %v3327_v24, 0.0 }
 0x6c3   : > { %v3333_v25 = vmul.f32 %v3301_v35, %v6321_v32  ;;  %v3332_v63 = vmul.f32 %v3300_v9, %v6321_v32  ;;  %v3266_v13 = vmul.f32 0.2, %v3234_v53  ;;  %v3267_v7 = vmul.f32 0.2, %v3235_v37 }
 0x6c4   : > { %v3369_v26 = vsel %vm3356_vm10, %v3328_v31, 0.0  ;;  %v3191_v49 = vpop.permute.xlu0 %3190 }
 0x6c5   : > { %v3384_v17 = vsel %vm3356_vm10, %v3333_v25, 0.0  ;;  %v3381_v36 = vsel %vm3356_vm10, %v3332_v63, 0.0  ;;  %v3238_v3 = vadd.f32 %v3191_v49, %v6262_v38  ;;  %v3239_v40 = vadd.f32 %v3191_v49, %v6283_v8 }
 0x6c7   : > { %v3270_v9 = vmul.f32 0.2, %v3238_v3  ;;  %v3271_v35 = vmul.f32 0.2, %v3239_v40 }
 0x6c8   : > { %v3193_v30 = vpop.permute.xlu0 %3192 }
 0x6ca   : > { %v3197_v42 = vpop.permute.xlu1 %3196 }
 0x6cb   : > { %v3244_v6 = vadd.f32 %v3197_v42, %v6262_v38  ;;  %v3245_v1 = vadd.f32 %v3197_v42, %v6283_v8 }
 0x6cd   : > { %v3276_v60 = vmul.f32 0.2, %v3244_v6  ;;  %v3277_v29 = vmul.f32 0.2, %v3245_v1 }
 0x6cf   : > { %v3308_v61 = vmax.f32 %v3244_v6, %v3276_v60  ;;  %v3309_v39 = vmax.f32 %v3245_v1, %v3277_v29 }
 0x6de   : > { %3361 = vadd.xlane.f32.xlu0 %v3360_v4  ;;  %v3372_v4 = vsel %vm3356_vm10, %v3329_v5, 0.0 }
 0x6e3   : > { %3358 = vadd.xlane.f32.xlu1 %v3357_v34  ;;  %v3363_v34 = vsel %vm3356_vm10, %v3326_v50, 0.0 }
 0x6f4   : > { %3523 = vrot.lane.b32.xlu0 %v3327_v24, %s4934_s10  ;;  %3521 = vrot.lane.b32.xlu1 %v3326_v50, %s4934_s10  ;;  %v3298_v24 = vmax.f32 %v3234_v53, %v3266_v13  ;;  %v3299_v50 = vmax.f32 %v3235_v37, %v3267_v7 }
 0x6f8   : > { %3527 = vrot.lane.b32.xlu0 %v3329_v5, %s4934_s10  ;;  %3525 = vrot.lane.b32.xlu1 %v3328_v31, %s4934_s10  ;;  %v3240_v5 = vadd.f32 %v3193_v30, %v6262_v38  ;;  %v3241_v31 = vadd.f32 %v3193_v30, %v6283_v8 }
 0x6fc   : > { %3535 = vrot.lane.b32.xlu0 %v3333_v25, %s4934_s10  ;;  %3533 = vrot.lane.b32.xlu1 %v3332_v63, %s4934_s10  ;;  %v3341_v25 = vmul.f32 %v3309_v39, %v6321_v32  ;;  %v3340_v63 = vmul.f32 %v3308_v61, %v6321_v32  ;;  %v3199_v61 = vpop.permute.xlu1 %3198 }
 0x6fe   : > { %v3408_v49 = vsel %vm3356_vm10, %v3341_v25, 0.0  ;;  %v3405_v29 = vsel %vm3356_vm10, %v3340_v63, 0.0 }
 0x700   : > { %v3201_v30 = vpop.permute.xlu1 %3200 }
 0x71b   : > { %3367 = vadd.xlane.f32.xlu0 %v3366_v10  ;;  %v3331_v10 = vmul.f32 %v3299_v50, %v6321_v32  ;;  %v3247_v50 = vadd.f32 %v3199_v61, %v6283_v8 }
 0x71d   : > { %v3378_v60 = vsel %vm3356_vm10, %v3331_v10, 0.0 }
 0x71f   : > { %3373 = vadd.xlane.f32.xlu0 %v3372_v4  ;;  %v3330_v4 = vmul.f32 %v3298_v24, %v6321_v32  ;;  %v3246_v24 = vadd.f32 %v3199_v61, %v6262_v38 }
 0x720   : > { %3364 = vadd.xlane.f32.xlu1 %v3363_v34  ;;  %v3302_v34 = vmax.f32 %v3238_v3, %v3270_v9  ;;  %v3248_v9 = vadd.f32 %v3201_v30, %v6262_v38 }
 0x721   : > { %v3375_v7 = vsel %vm3356_vm10, %v3330_v4, 0.0 }
 0x722   : > { %v3334_v1 = vmul.f32 %v3302_v34, %v6321_v32 }
 0x723   : > { %3385 = vadd.xlane.f32.xlu0 %v3384_v17  ;;  %v3303_v17 = vmax.f32 %v3239_v40, %v3271_v35  ;;  %v3249_v35 = vadd.f32 %v3201_v30, %v6283_v8 }
 0x724   : > { %3370 = vadd.xlane.f32.xlu1 %v3369_v26  ;;  %v3272_v26 = vmul.f32 0.2, %v3240_v5  ;;  %v3387_v40 = vsel %vm3356_vm10, %v3334_v1, 0.0 }
 0x725   : > { %v3335_v6 = vmul.f32 %v3303_v17, %v6321_v32 }
 0x726   : > { %v3304_v47 = vmax.f32 %v3240_v5, %v3272_v26  ;;  %v3278_v5 = vmul.f32 0.2, %v3246_v24 }
 0x727   : > { %v3390_v13 = vsel %vm3356_vm10, %v3335_v6, 0.0 }
 0x728   : > { %3382 = vadd.xlane.f32.xlu1 %v3381_v36  ;;  %v3273_v36 = vmul.f32 0.2, %v3241_v31  ;;  %v3336_v37 = vmul.f32 %v3304_v47, %v6321_v32  ;;  %v3310_v34 = vmax.f32 %v3246_v24, %v3278_v5 }
 0x72a   : > { %v3305_v42 = vmax.f32 %v3241_v31, %v3273_v36  ;;  %v3393_v39 = vsel %vm3356_vm10, %v3336_v37, 0.0  ;;  %v3279_v31 = vmul.f32 0.2, %v3247_v50 }
 0x72c   : > { %v3337_v53 = vmul.f32 %v3305_v42, %v6321_v32  ;;  %v3311_v17 = vmax.f32 %v3247_v50, %v3279_v31 }
 0x72e   : > { %v3396_v3 = vsel %vm3356_vm10, %v3337_v53, 0.0 }
 0x739   : > { %3551 = vrot.lane.b32.xlu0 %v3341_v25, %s4934_s10  ;;  %3549 = vrot.lane.b32.xlu1 %v3340_v63, %s4934_s10  ;;  %v3205_v25 = vpop.permute.xlu1 %3204  ;;  %v3280_v63 = vmul.f32 0.2, %v3248_v9 }
 0x73a   : > { %v3252_v26 = vadd.f32 %v3205_v25, %v6262_v38  ;;  %v3253_v36 = vadd.f32 %v3205_v25, %v6283_v8 }
 0x73d   : > { %3531 = vrot.lane.b32.xlu0 %v3331_v10, %s4934_s10  ;;  %3529 = vrot.lane.b32.xlu1 %v3330_v4, %s4934_s10  ;;  %v3281_v10 = vmul.f32 0.2, %v3249_v35  ;;  %v3195_v4 = vpop.permute.xlu0 %3194 }
 0x73e   : > { %v3242_v47 = vadd.f32 %v3195_v4, %v6262_v38  ;;  %v3243_v42 = vadd.f32 %v3195_v4, %v6283_v8 }
 0x741   : > { %3539 = vrot.lane.b32.xlu0 %v3335_v6, %s4934_s10  ;;  %3537 = vrot.lane.b32.xlu1 %v3334_v1, %s4934_s10  ;;  %v3312_v6 = vmax.f32 %v3248_v9, %v3280_v63  ;;  %v3313_v1 = vmax.f32 %v3249_v35, %v3281_v10 }
 0x743   : > { %v3344_v61 = vmul.f32 %v3312_v6, %v6321_v32 }
 0x745   : > { %3543 = vrot.lane.b32.xlu0 %v3337_v53, %s4934_s10  ;;  %3541 = vrot.lane.b32.xlu1 %v3336_v37, %s4934_s10  ;;  %v3284_v53 = vmul.f32 0.2, %v3252_v26  ;;  %v3285_v37 = vmul.f32 0.2, %v3253_v36  ;;  %v3417_v10 = vsel %vm3356_vm10, %v3344_v61, 0.0 }
 0x764   : > { %3409 = vadd.xlane.f32.xlu0 %v3408_v49  ;;  %v3343_v49 = vmul.f32 %v3311_v17, %v6321_v32  ;;  %v3203_v17 = vpop.permute.xlu1 %3202 }
 0x766   : > { %v3414_v5 = vsel %vm3356_vm10, %v3343_v49, 0.0 }
 0x768   : > { %3379 = vadd.xlane.f32.xlu0 %v3378_v60  ;;  %v3342_v60 = vmul.f32 %v3310_v34, %v6321_v32 }
 0x769   : > { %3406 = vadd.xlane.f32.xlu1 %v3405_v29  ;;  %v3274_v29 = vmul.f32 0.2, %v3242_v47 }
 0x76a   : > { %v3411_v25 = vsel %vm3356_vm10, %v3342_v60, 0.0 }
 0x76c   : > { %3391 = vadd.xlane.f32.xlu0 %v3390_v13  ;;  %v3275_v13 = vmul.f32 0.2, %v3243_v42 }
 0x76d   : > { %3376 = vadd.xlane.f32.xlu1 %v3375_v7  ;;  %v3316_v7 = vmax.f32 %v3252_v26, %v3284_v53 }
 0x76e   : > { %v3307_v30 = vmax.f32 %v3243_v42, %v3275_v13  ;;  %v3251_v42 = vadd.f32 %v3203_v17, %v6283_v8 }
 0x76f   : > { %v3348_v50 = vmul.f32 %v3316_v7, %v6321_v32 }
 0x770   : > { %3397 = vadd.xlane.f32.xlu0 %v3396_v3  ;;  %v3317_v3 = vmax.f32 %v3253_v36, %v3285_v37  ;;  %v3339_v9 = vmul.f32 %v3307_v30, %v6321_v32  ;;  %v3207_v36 = vpop.permute.xlu1 %3206  ;;  %v3283_v37 = vmul.f32 0.2, %v3251_v42 }
 0x771   : > { %3388 = vadd.xlane.f32.xlu1 %v3387_v40  ;;  %v3345_v40 = vmul.f32 %v3313_v1, %v6321_v32  ;;  %v3429_v34 = vsel %vm3356_vm10, %v3348_v50, 0.0  ;;  %v3254_v6 = vadd.f32 %v3207_v36, %v6262_v38  ;;  %v3255_v1 = vadd.f32 %v3207_v36, %v6283_v8 }
 0x772   : > { %v3349_v24 = vmul.f32 %v3317_v3, %v6321_v32  ;;  %v3402_v4 = vsel %vm3356_vm10, %v3339_v9, 0.0  ;;  %v3315_v7 = vmax.f32 %v3251_v42, %v3283_v37 }
 0x773   : > { %v3420_v31 = vsel %vm3356_vm10, %v3345_v40, 0.0 }
 0x774   : > { %v3432_v63 = vsel %vm3356_vm10, %v3349_v24, 0.0 }
 0x775   : > { %3394 = vadd.xlane.f32.xlu1 %v3393_v39  ;;  %v3306_v39 = vmax.f32 %v3242_v47, %v3274_v29  ;;  %v3250_v47 = vadd.f32 %v3203_v17, %v6262_v38  ;;  %v3287_v29 = vmul.f32 0.2, %v3255_v1 }
 0x777   : > { %v3338_v35 = vmul.f32 %v3306_v39, %v6321_v32  ;;  %v3282_v53 = vmul.f32 0.2, %v3250_v47  ;;  %v3319_v39 = vmax.f32 %v3255_v1, %v3287_v29 }
 0x779   : > { %v3399_v26 = vsel %vm3356_vm10, %v3338_v35, 0.0  ;;  %v3314_v13 = vmax.f32 %v3250_v47, %v3282_v53 }
 0x786   : > { %3555 = vrot.lane.b32.xlu0 %v3343_v49, %s4934_s10  ;;  %3553 = vrot.lane.b32.xlu1 %v3342_v60, %s4934_s10  ;;  %v3209_v49 = vpop.permute.xlu1 %3208  ;;  %v3286_v60 = vmul.f32 0.2, %v3254_v6 }
 0x787   : > { %v3256_v3 = vadd.f32 %v3209_v49, %v6262_v38 }
 0x789   : > { %v3288_v30 = vmul.f32 0.2, %v3256_v3 }
 0x78a   : > { %3559 = vrot.lane.b32.xlu0 %v3345_v40, %s4934_s10  ;;  %3557 = vrot.lane.b32.xlu1 %v3344_v61, %s4934_s10  ;;  %v3257_v40 = vadd.f32 %v3209_v49, %v6283_v8  ;;  %v3318_v61 = vmax.f32 %v3254_v6, %v3286_v60 }
 0x78e   : > { %3567 = vrot.lane.b32.xlu0 %v3349_v24, %s4934_s10  ;;  %3565 = vrot.lane.b32.xlu1 %v3348_v50, %s4934_s10  ;;  %v3289_v24 = vmul.f32 0.2, %v3257_v40  ;;  %v3347_v50 = vmul.f32 %v3315_v7, %v6321_v32 }
 0x790   : > { %v3426_v29 = vsel %vm3356_vm10, %v3347_v50, 0.0 }
 0x792   : > { %3547 = vrot.lane.b32.xlu0 %v3339_v9, %s4934_s10  ;;  %3545 = vrot.lane.b32.xlu1 %v3338_v35, %s4934_s10  ;;  %v3346_v9 = vmul.f32 %v3314_v13, %v6321_v32  ;;  %v3320_v35 = vmax.f32 %v3256_v3, %v3288_v30 }
 0x794   : > { %v3423_v3 = vsel %vm3356_vm10, %v3346_v9, 0.0 }
 0x7b1   : > { %3415 = vadd.xlane.f32.xlu0 %v3414_v5  ;;  %v3321_v5 = vmax.f32 %v3257_v40, %v3289_v24 }
 0x7b5   : > { %3421 = vadd.xlane.f32.xlu0 %v3420_v31  ;;  %v3351_v31 = vmul.f32 %v3319_v39, %v6321_v32 }
 0x7b6   : > { %3412 = vadd.xlane.f32.xlu1 %v3411_v25  ;;  %v3350_v25 = vmul.f32 %v3318_v61, %v6321_v32 }
 0x7b7   : > { %v3438_v7 = vsel %vm3356_vm10, %v3351_v31, 0.0 }
 0x7b8   : > { %v3435_v30 = vsel %vm3356_vm10, %v3350_v25, 0.0 }
 0x7b9   : > { %3433 = vadd.xlane.f32.xlu0 %v3432_v63  ;;  %v3353_v63 = vmul.f32 %v3321_v5, %v6321_v32 }
 0x7ba   : > { %3418 = vadd.xlane.f32.xlu1 %v3417_v10  ;;  %v3352_v10 = vmul.f32 %v3320_v35, %v6321_v32 }
 0x7bb   : > { %v3444_v61 = vsel %vm3356_vm10, %v3353_v63, 0.0 }
 0x7bd   : > { %3403 = vadd.xlane.f32.xlu0 %v3402_v4  ;;  %v3211_v4 = vpop.permute.xlu0 %3210 }
 0x7be   : > { %3430 = vadd.xlane.f32.xlu1 %v3429_v34  ;;  %v6435_v34 = vpop.permute.xlu1 %3517  ;;  %v3258_v5 = vadd.f32 %v3211_v4, %v6262_v38 }
 0x7bf   : > { %v3613_v18 = vsel %vm3356_vm10, %v6435_v34, 0.0 }
 0x7c1   : > { %v3520_v17 = vpop.permute.xlu0 %3519 }
 0x7c2   : > { %3400 = vadd.xlane.f32.xlu1 %v3399_v26  ;;  %v6437_v26 = vpop.xlane.xlu1 %3358  ;;  %v3616_v33 = vsel %vm3356_vm10, %v3520_v17, 0.0 }
 0x7c5   : > { %v6439_v36 = vpop.xlane.xlu0 %3361 }
 0x7c6   : > { %v3522_v47 = vpop.permute.xlu1 %3521 }
 0x7c7   : > { %v3619_v19 = vsel %vm3356_vm10, %v3522_v47, 0.0 }
 0x7c9   : > { %v6441_v42 = vpop.permute.xlu0 %3523 }
 0x7ca   : > { %v6443_v6 = vpop.permute.xlu1 %3525 }
 0x7cd   : > { %v6445_v1 = vpop.permute.xlu0 %3527 }
 0x7ce   : > { %v6447_v53 = vpop.permute.xlu1 %3533 }
 0x7d1   : > { %v6449_v37 = vpop.permute.xlu0 %3535 }
 0x7d2   : > { %v6451_v49 = vpop.xlane.xlu1 %3364 }
 0x7d3   : > { %3563 = vrot.lane.b32.xlu0 %v3347_v50, %s4934_s10  ;;  %3561 = vrot.lane.b32.xlu1 %v3346_v9, %s4934_s10  ;;  %v3441_v50 = vsel %vm3356_vm10, %v3352_v10, 0.0  ;;  %v3259_v9 = vadd.f32 %v3211_v4, %v6283_v8 }
 0x7d5   : > { %v6453_v60 = vpop.xlane.xlu0 %3367 }
 0x7d6   : > { %v6456_v13 = vpop.xlane.xlu1 %3370 }
 0x7d7   : > { %3571 = vrot.lane.b32.xlu0 %v3351_v31, %s4934_s10  ;;  %3569 = vrot.lane.b32.xlu1 %v3350_v25, %s4934_s10 }
 0x7d9   : > { %v6460_v40 = vpop.xlane.xlu0 %3373 }
 0x7da   : > { %v6463_v39 = vpop.xlane.xlu1 %3382 }
 0x7db   : > { %3575 = vrot.lane.b32.xlu0 %v3353_v63, %s4934_s10  ;;  %3573 = vrot.lane.b32.xlu1 %v3352_v10, %s4934_s10 }
 0x7dd   : > { %v6466_v24 = vpop.xlane.xlu0 %3385 }
 0x7de   : > { %v3550_v35 = vpop.permute.xlu1 %3549 }
 0x7e1   : > { %v3552_v31 = vpop.permute.xlu0 %3551 }
 0x7e2   : > { %v3530_v63 = vpop.permute.xlu1 %3529 }
 0x7e6   : > { %v3538_v45 = vpop.permute.xlu1 %3537 }
 0x7ea   : > { %v3542_v10 = vpop.permute.xlu1 %3541 }
 0x7f6   : > { %v6475_v4 = vpop.xlane.xlu1 %3406 }
 0x7fa   : > { %3427 = vadd.xlane.f32.xlu0 %v3426_v29  ;;  %v3290_v29 = vmul.f32 0.2, %v3258_v5  ;;  %v6479_v38 = vpop.xlane.xlu1 %3376 }
 0x7fc   : > { %v3322_v44 = vmax.f32 %v3258_v5, %v3290_v29 }
 0x7fe   : > { %3439 = vadd.xlane.f32.xlu0 %v3438_v7  ;;  %v3291_v7 = vmul.f32 0.2, %v3259_v9 }
 0x7ff   : > { %3424 = vadd.xlane.f32.xlu1 %v3423_v3  ;;  %v3532_v3 = vpop.permute.xlu0 %3531 }
 0x802   : > { %3445 = vadd.xlane.f32.xlu0 %v3444_v61  ;;  %v3323_v61 = vmax.f32 %v3259_v9, %v3291_v7  ;;  %v6483_v9 = vpop.xlane.xlu1 %3388 }
 0x803   : > { %3436 = vadd.xlane.f32.xlu1 %v3435_v30  ;;  %v3354_v30 = vmul.f32 %v3322_v44, %v6321_v32  ;;  %v3540_v56 = vpop.permute.xlu0 %3539 }
 0x804   : > { %v3355_v25 = vmul.f32 %v3323_v61, %v6321_v32 }
 0x805   : > { %v3447_v54 = vsel %vm3356_vm10, %v3354_v30, 0.0 }
 0x806   : > { %v6487_v44 = vpop.xlane.xlu1 %3394  ;;  %v3450_v61 = vsel %vm3356_vm10, %v3355_v25, 0.0 }
 0x807   : > { %3442 = vadd.xlane.f32.xlu1 %v3441_v50  ;;  %v3544_v50 = vpop.permute.xlu0 %3543 }
 0x80a   : > { %v3554_v7 = vpop.permute.xlu1 %3553 }
 0x80b   : > { %v6477_v8 = vpop.xlane.xlu0 %3409 }
 0x80e   : > { %v3558_v21 = vpop.permute.xlu1 %3557 }
 0x80f   : > { %v6481_v5 = vpop.xlane.xlu0 %3379 }
 0x812   : > { %v3566_v22 = vpop.permute.xlu1 %3565 }
 0x813   : > { %v6485_v29 = vpop.xlane.xlu0 %3391 }
 0x816   : > { %v3546_v47 = vpop.permute.xlu1 %3545 }
 0x817   : > { %v6489_v32 = vpop.xlane.xlu0 %3397 }
 0x818   : > { %3579 = vrot.lane.b32.xlu0 %v3355_v25, %s4934_s10  ;;  %3577 = vrot.lane.b32.xlu1 %v3354_v30, %s4934_s10  ;;  %v3622_v25 = vsel %vm3356_vm10, %v6441_v42, 0.0  ;;  %v3661_v42 = vsel %vm3356_vm10, %v3550_v35, 0.0 }
 0x81b   : > { %v3556_v48 = vpop.permute.xlu0 %3555 }
 0x81f   : > { %v3560_v52 = vpop.permute.xlu0 %3559 }
 0x823   : > { %v3568_v17 = vpop.permute.xlu0 %3567 }
 0x827   : > { %v3548_v34 = vpop.permute.xlu0 %3547 }
 0x837   : > { %3451 = vadd.xlane.f32.xlu0 %v3450_v61 }
 0x83b   : > { %3617 = vadd.xlane.f32.xlu0 %v3616_v33  ;;  %v3625_v33 = vsel %vm3356_vm10, %v6443_v6, 0.0  ;;  %v3664_v6 = vsel %vm3356_vm10, %v3552_v31, 0.0  ;;  %v3649_v31 = vsel %vm3356_vm10, %v3542_v10, 0.0 }
 0x83c   : > { %3448 = vadd.xlane.f32.xlu1 %v3447_v54  ;;  %v3628_v54 = vsel %vm3356_vm10, %v6445_v1, 0.0  ;;  %v3631_v1 = vsel %vm3356_vm10, %v3530_v63, 0.0  ;;  %v3652_v63 = vsel %vm3356_vm10, %v3544_v50, 0.0  ;;  %v3685_v50 = vsel %vm3356_vm10, %v3566_v22, 0.0 }
 0x83e   : > { %v6511_v61 = vpop.xlane.xlu0 %3415 }
 0x83f   : > { %3620 = vadd.xlane.f32.xlu0 %v3619_v19  ;;  %v3637_v19 = vsel %vm3356_vm10, %v6447_v53, 0.0 }
 0x840   : > { %3614 = vadd.xlane.f32.xlu1 %v3613_v18  ;;  %v3640_v18 = vsel %vm3356_vm10, %v6449_v37, 0.0  ;;  %v3643_v37 = vsel %vm3356_vm10, %v3538_v45, 0.0 }
 0x842   : > { %v6518_v35 = vpop.xlane.xlu0 %3421 }
 0x843   : > { %3623 = vadd.xlane.f32.xlu0 %v3622_v25  ;;  %v6508_v30 = vpop.xlane.xlu1 %3412  ;;  %v3634_v25 = vsel %vm3356_vm10, %v3532_v3, 0.0  ;;  %v3667_v3 = vsel %vm3356_vm10, %v3554_v7, 0.0  ;;  %v3688_v7 = vsel %vm3356_vm10, %v3568_v17, 0.0 }
 0x844   : > { %3626 = vadd.xlane.f32.xlu1 %v3625_v33  ;;  %v3646_v33 = vsel %vm3356_vm10, %v3540_v56, 0.0  ;;  %v3673_v56 = vsel %vm3356_vm10, %v3558_v21, 0.0  ;;  %v3658_v21 = vsel %vm3356_vm10, %v3548_v34, 0.0 }
 0x847   : > { %3629 = vadd.xlane.f32.xlu0 %v3628_v54  ;;  %v6514_v53 = vpop.xlane.xlu1 %3418 }
 0x848   : > { %3638 = vadd.xlane.f32.xlu1 %v3637_v19  ;;  %v6525_v19 = vpop.xlane.xlu0 %3433 }
 0x84b   : > { %3641 = vadd.xlane.f32.xlu0 %v3640_v18  ;;  %v6522_v54 = vpop.xlane.xlu1 %3430  ;;  %v3670_v18 = vsel %vm3356_vm10, %v3556_v48, 0.0 }
 0x84c   : > { %3662 = vadd.xlane.f32.xlu1 %v3661_v42  ;;  %v6532_v10 = vpop.xlane.xlu0 %3403  ;;  %v3676_v42 = vsel %vm3356_vm10, %v3560_v52, 0.0 }
 0x84f   : > { %3665 = vadd.xlane.f32.xlu0 %v3664_v6  ;;  %v6528_v45 = vpop.xlane.xlu1 %3400 }
 0x850   : > { %3632 = vadd.xlane.f32.xlu1 %v3631_v1  ;;  %v3564_v1 = vpop.permute.xlu0 %3563 }
 0x853   : > { %3635 = vadd.xlane.f32.xlu0 %v3634_v25  ;;  %v3562_v6 = vpop.permute.xlu1 %3561  ;;  %v3655_v25 = vsel %vm3356_vm10, %v3546_v47, 0.0 }
 0x854   : > { %3644 = vadd.xlane.f32.xlu1 %v3643_v37  ;;  %v3679_v37 = vsel %vm3356_vm10, %v3562_v6, 0.0  ;;  %v3572_v52 = vpop.permute.xlu0 %3571 }
 0x855   : > { %v3694_v17 = vsel %vm3356_vm10, %v3572_v52, 0.0  ;;  %v3456_v52 = vadd.f32 %v6453_v60, %v5556_v28  ;;  %v3469_v60 = vadd.f32 %v6475_v4, %v5807_v0  ;;  %v3466_v4 = vadd.f32 %v6489_v32, %v5819_v55 }
 0x856   : > { %v3474_v32 = vadd.f32 %v6518_v35, %v5827_v62 }
 0x857   : > { %3647 = vadd.xlane.f32.xlu0 %v3646_v33  ;;  %v3570_v48 = vpop.permute.xlu1 %3569  ;;  %v3682_v33 = vsel %vm3356_vm10, %v3564_v1, 0.0 }
 0x858   : > { %3650 = vadd.xlane.f32.xlu1 %v3649_v31  ;;  %v3691_v22 = vsel %vm3356_vm10, %v3570_v48, 0.0 }
 0x85b   : > { %3653 = vadd.xlane.f32.xlu0 %v3652_v63  ;;  %v3574_v31 = vpop.permute.xlu1 %3573  ;;  %v3576_v63 = vpop.permute.xlu0 %3575 }
 0x85c   : > { %3668 = vadd.xlane.f32.xlu1 %v3667_v3  ;;  %v3697_v47 = vsel %vm3356_vm10, %v3574_v31, 0.0  ;;  %v3700_v34 = vsel %vm3356_vm10, %v3576_v63, 0.0  ;;  %v3457_v31 = vadd.f32 %v6456_v13, %v5573_v41  ;;  %v3460_v13 = vadd.f32 %v6481_v5, %v5589_v2 }
 0x85d   : > { %v3465_v5 = vadd.f32 %v6487_v44, %v5823_v43  ;;  %v3473_v44 = vadd.f32 %v6514_v53, %v5831_v12 }
 0x85f   : > { %3671 = vadd.xlane.f32.xlu0 %v3670_v18 }
 0x860   : > { %3674 = vadd.xlane.f32.xlu1 %v3673_v56 }
 0x863   : > { %3677 = vadd.xlane.f32.xlu0 %v3676_v42 }
 0x864   : > { %3686 = vadd.xlane.f32.xlu1 %v3685_v50 }
 0x867   : > { %3689 = vadd.xlane.f32.xlu0 %v3688_v7 }
 0x868   : > { %3656 = vadd.xlane.f32.xlu1 %v3655_v25 }
 0x86b   : > { %3659 = vadd.xlane.f32.xlu0 %v3658_v21  ;;  %v3454_v21 = vadd.f32 %v6439_v36, %v5514_v23  ;;  %v3461_v36 = vadd.f32 %v6463_v39, %v5787_v14  ;;  %v3464_v39 = vadd.f32 %v6485_v29, %v5795_v20  ;;  %v3471_v29 = vadd.f32 %v6508_v30, %v5815_v27 }
 0x86c   : > { %3680 = vadd.xlane.f32.xlu1 %v3679_v37  ;;  %v3453_v37 = vadd.f32 %v6437_v26, %v5558_v59  ;;  %v3462_v26 = vadd.f32 %v6466_v24, %v5783_v57  ;;  %v3463_v24 = vadd.f32 %v6483_v9, %v5799_v51 }
 0x86f   : > { %3683 = vadd.xlane.f32.xlu0 %v3682_v33  ;;  %v3455_v33 = vadd.f32 %v6451_v49, %v5525_v11  ;;  %v3470_v49 = vadd.f32 %v6477_v8, %v5803_v58 }
 0x870   : > { %3692 = vadd.xlane.f32.xlu1 %v3691_v22  ;;  %v3458_v22 = vadd.f32 %v6460_v40, %v5567_v15  ;;  %v3459_v40 = vadd.f32 %v6479_v38, %v5592_v16 }
 0x873   : > { %3695 = vadd.xlane.f32.xlu0 %v3694_v17  ;;  %v3472_v17 = vadd.f32 %v6511_v61, %v5811_v46 }
 0x874   : > { %3698 = vadd.xlane.f32.xlu1 %v3697_v47 }
 0x877   : > { %3701 = vadd.xlane.f32.xlu0 %v3700_v34 }
 0x887   : > { %v6545_v3 = vpop.xlane.xlu0 %3427 }
 0x88b   : > { %v6547_v18 = vpop.xlane.xlu0 %3439 }
 0x88c   : > { %v6549_v56 = vpop.xlane.xlu1 %3424 }
 0x88f   : > { %v6551_v42 = vpop.xlane.xlu0 %3445 }
 0x890   : > { %v6553_v50 = vpop.xlane.xlu1 %3436 }
 0x893   : > { %v3580_v6 = vpop.permute.xlu0 %3579 }
 0x894   : > { %v6555_v7 = vpop.xlane.xlu1 %3442  ;;  %v3706_v1 = vsel %vm3356_vm10, %v3580_v6, 0.0  ;;  %v6971_v6 = vld [vmem:[#allocation24_spill] sm:$0xff] }
 0x895   : > { %3707 = vadd.xlane.f32.xlu0 %v3706_v1  ;;  %v3478_v61 = vadd.f32 %v6525_v19, %v6971_v6  ;;  %v6972_v1 = vld [vmem:[#allocation25_spill] sm:$0xff] }
 0x896   : > { %v3477_v30 = vadd.f32 %v6522_v54, %v6972_v1 }
 0x898   : > { %v3578_v25 = vpop.permute.xlu1 %3577 }
 0x899   : > { %v3703_v48 = vsel %vm3356_vm10, %v3578_v25, 0.0 }
 0x89a   : > { %3704 = vadd.xlane.f32.xlu1 %v3703_v48 }
 0x8ab   : > { %3774 = vperm.xlu1 %4823, %v3453_v37   ;;  %3777 = vperm.xlu0 %4822, %v3454_v21   ;;  %v6973_v21 = vld [vmem:[#allocation20_spill] sm:$0xff]  ;;  %v6974_v37 = vld [vmem:[#allocation21_spill] sm:$0xff] }
 0x8ac   : > { %v3468_v35 = vadd.f32 %v6532_v10, %v6973_v21  ;;  %v3467_v53 = vadd.f32 %v6528_v45, %v6974_v37  ;;  %v6978_v10 = vld [vmem:[#allocation27_spill] sm:$0xff] }
 0x8af   : > { %3780 = vperm.xlu1 %4823, %v3455_v33   ;;  %3783 = vperm.xlu0 %4822, %v3456_v52  }
 0x8b3   : > { %3786 = vperm.xlu1 %4823, %v3457_v31   ;;  %3789 = vperm.xlu0 %4822, %v3458_v22   ;;  %v6975_v22 = vld [vmem:[#allocation22_spill] sm:$0xff]  ;;  %v6976_v31 = vld [vmem:[#allocation23_spill] sm:$0xff] }
 0x8b4   : > { %v3476_v19 = vadd.f32 %v6545_v3, %v6975_v22  ;;  %v3475_v54 = vadd.f32 %v6549_v56, %v6976_v31 }
 0x8b7   : > { %3798 = vperm.xlu1 %4823, %v3461_v36   ;;  %3801 = vperm.xlu0 %4822, %v3462_v26   ;;  %v6977_v36 = vld [vmem:[#allocation26_spill] sm:$0xff] }
 0x8bb   : > { %3822 = vperm.xlu1 %4823, %v3469_v60   ;;  %3825 = vperm.xlu0 %4822, %v3470_v49   ;;  %v3480_v49 = vadd.f32 %v6547_v18, %v6977_v36  ;;  %v3479_v60 = vadd.f32 %v6553_v50, %v6978_v10 }
 0x8bf   : > { %3792 = vperm.xlu1 %4823, %v3459_v40   ;;  %3795 = vperm.xlu0 %4822, %v3460_v13  }
 0x8c3   : > { %3804 = vperm.xlu1 %4823, %v3463_v24   ;;  %3807 = vperm.xlu0 %4822, %v3464_v39  }
 0x8c4   : > { %v6587_v8 = vpop.xlane.xlu0 %3451 }
 0x8c7   : > { %3810 = vperm.xlu1 %4823, %v3465_v5   ;;  %3813 = vperm.xlu0 %4822, %v3466_v4  }
 0x8c8   : > { %v3618_v38 = vpop.xlane.xlu0 %3617 }
 0x8c9   : > { %v6597_v9 = vpop.xlane.xlu1 %3448  ;;  %v3710_v40 = vadd.f32 %v3618_v38, %v5514_v23 }
 0x8cb   : > { %3828 = vperm.xlu1 %4823, %v3471_v29   ;;  %3831 = vperm.xlu0 %4822, %v3472_v17  }
 0x8cc   : > { %v3621_v63 = vpop.xlane.xlu0 %3620 }
 0x8cd   : > { %v3615_v47 = vpop.xlane.xlu1 %3614  ;;  %v3711_v24 = vadd.f32 %v3621_v63, %v5525_v11 }
 0x8ce   : > { %v3709_v3 = vadd.f32 %v3615_v47, %v5558_v59 }
 0x8cf   : > { %3834 = vperm.xlu1 %4823, %v3473_v44   ;;  %3837 = vperm.xlu0 %4822, %v3474_v32  }
 0x8d0   : > { %v3624_v34 = vpop.xlane.xlu0 %3623 }
 0x8d1   : > { %v3627_v25 = vpop.xlane.xlu1 %3626  ;;  %v3712_v50 = vadd.f32 %v3624_v34, %v5556_v28 }
 0x8d2   : > { %v3713_v23 = vadd.f32 %v3627_v25, %v5573_v41 }
 0x8d3   : > { %3846 = vperm.xlu1 %4823, %v3477_v30   ;;  %3849 = vperm.xlu0 %4822, %v3478_v61  }
 0x8d4   : > { %v3630_v48 = vpop.xlane.xlu0 %3629 }
 0x8d5   : > { %v3639_v52 = vpop.xlane.xlu1 %3638  ;;  %v3714_v4 = vadd.f32 %v3630_v48, %v5567_v15 }
 0x8d6   : > { %v3717_v15 = vadd.f32 %v3639_v52, %v5787_v14  ;;  %v6979_v52 = vld [vmem:[#allocation28_spill] sm:$0xff] }
 0x8d7   : > { %3816 = vperm.xlu1 %4823, %v3467_v53   ;;  %3819 = vperm.xlu0 %4822, %v3468_v35  }
 0x8d8   : > { %v3642_v33 = vpop.xlane.xlu0 %3641 }
 0x8d9   : > { %v3663_v45 = vpop.xlane.xlu1 %3662  ;;  %v3718_v5 = vadd.f32 %v3642_v33, %v5783_v57 }
 0x8da   : > { %v3725_v57 = vadd.f32 %v3663_v45, %v5807_v0 }
 0x8db   : > { %3840 = vperm.xlu1 %4823, %v3475_v54   ;;  %3843 = vperm.xlu0 %4822, %v3476_v19   ;;  %v6980_v19 = vld [vmem:[#allocation29_spill] sm:$0xff] }
 0x8dc   : > { %v3666_v26 = vpop.xlane.xlu0 %3665 }
 0x8dd   : > { %v3633_v56 = vpop.xlane.xlu1 %3632  ;;  %v3726_v59 = vadd.f32 %v3666_v26, %v5803_v58  ;;  %v6981_v26 = vld [vmem:[#allocation30_spill] sm:$0xff] }
 0x8de   : > { %v3715_v41 = vadd.f32 %v3633_v56, %v5592_v16 }
 0x8df   : > { %3852 = vperm.xlu1 %4823, %v3479_v60   ;;  %3855 = vperm.xlu0 %4822, %v3480_v49   ;;  %v3482_v49 = vadd.f32 %v6551_v42, %v6979_v52 }
 0x8e0   : > { %v3636_v13 = vpop.xlane.xlu0 %3635 }
 0x8e1   : > { %v3645_v17 = vpop.xlane.xlu1 %3644  ;;  %v3716_v29 = vadd.f32 %v3636_v13, %v5589_v2 }
 0x8e2   : > { %v3719_v2 = vadd.f32 %v3645_v17, %v5799_v51 }
 0x8e3   : > { %4062 = vperm.xlu1 %4823, %v3709_v3   ;;  %4065 = vperm.xlu0 %4822, %v3710_v40   ;;  %v6983_v40 = vld [vmem:[#allocation12_spill] sm:$0xff] }
 0x8e4   : > { %v3648_v39 = vpop.xlane.xlu0 %3647 }
 0x8e5   : > { %v3651_v11 = vpop.xlane.xlu1 %3650  ;;  %v3720_v63 = vadd.f32 %v3648_v39, %v5795_v20  ;;  %v3481_v39 = vadd.f32 %v6555_v7, %v6980_v19 }
 0x8e6   : > { %v3721_v20 = vadd.f32 %v3651_v11, %v5823_v43 }
 0x8e7   : > { %4068 = vperm.xlu1 %4823, %v3711_v24   ;;  %4077 = vperm.xlu0 %4822, %v3714_v4   ;;  %v6984_v24 = vld [vmem:[#allocation11_spill] sm:$0xff] }
 0x8e8   : > { %v3654_v18 = vpop.xlane.xlu0 %3653 }
 0x8e9   : > { %v3669_v32 = vpop.xlane.xlu1 %3668  ;;  %v3722_v58 = vadd.f32 %v3654_v18, %v5819_v55 }
 0x8ea   : > { %v3727_v16 = vadd.f32 %v3669_v32, %v5815_v27 }
 0x8eb   : > { %4071 = vperm.xlu1 %4823, %v3712_v50   ;;  %4089 = vperm.xlu0 %4822, %v3718_v5  }
 0x8ec   : > { %v3672_v38 = vpop.xlane.xlu0 %3671 }
 0x8ed   : > { %v3675_v14 = vpop.xlane.xlu1 %3674  ;;  %v3728_v47 = vadd.f32 %v3672_v38, %v5811_v46 }
 0x8ee   : > { %v3729_v46 = vadd.f32 %v3675_v14, %v5831_v12 }
 0x8ef   : > { %4074 = vperm.xlu1 %4823, %v3713_v23   ;;  %4113 = vperm.xlu0 %4822, %v3726_v59  }
 0x8f0   : > { %v3678_v28 = vpop.xlane.xlu0 %3677 }
 0x8f1   : > { %v3730_v34 = vadd.f32 %v3678_v28, %v5827_v62  ;;  %v3687_v61 = vpop.xlane.xlu1 %3686 }
 0x8f2   : > { %v3733_v62 = vadd.f32 %v3687_v61, %v6972_v1 }
 0x8f3   : > { %4086 = vperm.xlu1 %4823, %v3717_v15   ;;  %4083 = vperm.xlu0 %4822, %v3716_v29  }
 0x8f4   : > { %v3690_v44 = vpop.xlane.xlu0 %3689 }
 0x8f5   : > { %v3734_v55 = vadd.f32 %v3690_v44, %v6971_v6  ;;  %v3657_v51 = vpop.xlane.xlu1 %3656 }
 0x8f6   : > { %v3723_v27 = vadd.f32 %v3657_v51, %v6974_v37 }
 0x8f7   : > { %4110 = vperm.xlu1 %4823, %v3725_v57   ;;  %4095 = vperm.xlu0 %4822, %v3720_v63  }
 0x8f8   : > { %v3660_v0 = vpop.xlane.xlu0 %3659 }
 0x8f9   : > { %v3724_v25 = vadd.f32 %v3660_v0, %v6973_v21  ;;  %v3681_v35 = vpop.xlane.xlu1 %3680 }
 0x8fa   : > { %v3731_v21 = vadd.f32 %v3681_v35, %v6976_v31  ;;  %v6982_v31 = vld [vmem:[#allocation31_spill] sm:$0xff] }
 0x8fb   : > { %4080 = vperm.xlu1 %4823, %v3715_v41   ;;  %4101 = vperm.xlu0 %4822, %v3722_v58   ;;  %v3483_v17 = vadd.f32 %v6597_v9, %v6982_v31 }
 0x8fc   : > { %v3684_v30 = vpop.xlane.xlu0 %3683 }
 0x8fd   : > { %v3732_v48 = vadd.f32 %v3684_v30, %v6975_v22  ;;  %v3693_v12 = vpop.xlane.xlu1 %3692 }
 0x8fe   : > { %v3735_v1 = vadd.f32 %v3693_v12, %v6978_v10  ;;  %v3484_v10 = vadd.f32 %v6587_v8, %v6981_v26 }
 0x8ff   : > { %4092 = vperm.xlu1 %4823, %v3719_v2   ;;  %4119 = vperm.xlu0 %4822, %v3728_v47  }
 0x900   : > { %v3696_v43 = vpop.xlane.xlu0 %3695 }
 0x901   : > { %v3736_v6 = vadd.f32 %v3696_v43, %v6977_v36  ;;  %v3699_v22 = vpop.xlane.xlu1 %3698 }
 0x902   : > { %v3737_v54 = vadd.f32 %v3699_v22, %v6980_v19 }
 0x903   : > { %4098 = vperm.xlu1 %4823, %v3721_v20   ;;  %4125 = vperm.xlu0 %4822, %v3730_v34  }
 0x904   : > { %v3702_v53 = vpop.xlane.xlu0 %3701 }
 0x905   : > { %v3738_v33 = vadd.f32 %v3702_v53, %v6979_v52 }
 0x907   : > { %4116 = vperm.xlu1 %4823, %v3727_v16   ;;  %4137 = vperm.xlu0 %4822, %v3734_v55  }
 0x90b   : > { %4122 = vperm.xlu1 %4823, %v3729_v46   ;;  %4107 = vperm.xlu0 %4822, %v3724_v25  }
 0x90f   : > { %4134 = vperm.xlu1 %4823, %v3733_v62   ;;  %4131 = vperm.xlu0 %4822, %v3732_v48  }
 0x913   : > { %4104 = vperm.xlu1 %4823, %v3723_v27   ;;  %4143 = vperm.xlu0 %4822, %v3736_v6  }
 0x917   : > { %4128 = vperm.xlu1 %4823, %v3731_v21   ;;  %4149 = vperm.xlu0 %4822, %v3738_v33  }
 0x91b   : > { %4140 = vperm.xlu1 %4823, %v3735_v1  }
 0x91f   : > { %4146 = vperm.xlu1 %4823, %v3737_v54  }
 0x922   : > { %v3708_v37 = vpop.xlane.xlu0 %3707 }
 0x923   : > { %v3740_v36 = vadd.f32 %v3708_v37, %v6981_v26 }
 0x925   : > { %4155 = vperm.xlu0 %4822, %v3740_v36  }
 0x927   : > { %v3705_v60 = vpop.xlane.xlu1 %3704 }
 0x928   : > { %v3739_v45 = vadd.f32 %v3705_v60, %v6982_v31 }
 0x929   : > { %3861 = vperm.xlu0 %4822, %v3482_v49  }
 0x92a   : > { %4152 = vperm.xlu1 %4823, %v3739_v45   ;;  %v3778_v13 = vpop.permute.xlu0 %3777 }
 0x92b   : > { %v3876_v3 = vrot.slane %v3778_v13, %v6983_v40  ;;  %v3775_v56 = vpop.permute.xlu1 %3774 }
 0x92c   : > { %v3872_v4 = vrot.slane %v3775_v56, %v6984_v24 }
 0x92d   : > { %3867 = vperm.xlu0 %4822, %v3484_v10  }
 0x92e   : > { %v3877_v42 = vsel %vm2220_vm1, %v3876_v3, %v3872_v4  ;;  %3858 = vperm.xlu1 %4823, %v3481_v39   ;;  %v3784_v18 = vpop.permute.xlu0 %3783 }
 0x92f   : > { %v3885_v50 = vrot.slane %v3784_v18, %v6983_v40  ;;  %v3781_v5 = vpop.permute.xlu1 %3780 }
 0x930   : > { %v3881_v8 = vrot.slane %v3781_v5, %v6984_v24 }
 0x932   : > { %v3886_v23 = vsel %vm2220_vm1, %v3885_v50, %v3881_v8  ;;  %3864 = vperm.xlu1 %4823, %v3483_v17   ;;  %v3790_v59 = vpop.permute.xlu0 %3789 }
 0x933   : > { %v4013_v7 = vsel %vm2357_vm2, %v3886_v23, %v3877_v42  ;;  %v3894_v38 = vrot.slane %v3790_v59, %v6983_v40  ;;  %v3787_v11 = vpop.permute.xlu1 %3786 }
 0x934   : > { %v3890_v15 = vrot.slane %v3787_v11, %v6984_v24 }
 0x936   : > { %v3895_v29 = vsel %vm2220_vm1, %v3894_v38, %v3890_v15  ;;  %v3802_v28 = vpop.permute.xlu0 %3801 }
 0x937   : > { %v4014_v57 = vsel %vm2359_vm3, %v3895_v29, %v4013_v7  ;;  %v3912_v9 = vrot.slane %v3802_v28, %v6983_v40  ;;  %v3799_v63 = vpop.permute.xlu1 %3798 }
 0x938   : > { %v3908_v32 = vrot.slane %v3799_v63, %v6984_v24 }
 0x93a   : > { %v3913_v41 = vsel %vm2220_vm1, %v3912_v9, %v3908_v32  ;;  %v3826_v58 = vpop.permute.xlu0 %3825 }
 0x93b   : > { %v3948_v44 = vrot.slane %v3826_v58, %v6983_v40  ;;  %v3823_v14 = vpop.permute.xlu1 %3822 }
 0x93c   : > { %v3944_v2 = vrot.slane %v3823_v14, %v6984_v24 }
 0x93e   : > { %v3949_v47 = vsel %vm2220_vm1, %v3948_v44, %v3944_v2  ;;  %v3796_v0 = vpop.permute.xlu0 %3795 }
 0x93f   : > { %v3903_v20 = vrot.slane %v3796_v0, %v6983_v40  ;;  %v3793_v34 = vpop.permute.xlu1 %3792 }
 0x940   : > { %v3899_v61 = vrot.slane %v3793_v34, %v6984_v24 }
 0x942   : > { %v3904_v16 = vsel %vm2220_vm1, %v3903_v20, %v3899_v61  ;;  %v3808_v55 = vpop.permute.xlu0 %3807 }
 0x943   : > { %v4015_v30 = vsel %vm2361_vm4, %v3904_v16, %v4014_v57  ;;  %v3921_v51 = vrot.slane %v3808_v55, %v6983_v40  ;;  %v3805_v46 = vpop.permute.xlu1 %3804 }
 0x944   : > { %v3917_v25 = vrot.slane %v3805_v46, %v6984_v24  ;;  %v4016_v43 = vsel %vm2363_vm5, %v3913_v41, %v4015_v30 }
 0x946   : > { %v3922_v62 = vsel %vm2220_vm1, %v3921_v51, %v3917_v25  ;;  %v3814_v48 = vpop.permute.xlu0 %3813 }
 0x947   : > { %v3930_v35 = vrot.slane %v3814_v48, %v6983_v40  ;;  %v3811_v27 = vpop.permute.xlu1 %3810  ;;  %v4017_v6 = vsel %vm2365_vm6, %v3922_v62, %v4016_v43 }
 0x948   : > { %v3926_v53 = vrot.slane %v3811_v27, %v6984_v24 }
 0x94a   : > { %v3931_v12 = vsel %vm2220_vm1, %v3930_v35, %v3926_v53  ;;  %v3832_v21 = vpop.permute.xlu0 %3831 }
 0x94b   : > { %v3957_v52 = vrot.slane %v3832_v21, %v6983_v40  ;;  %v3829_v33 = vpop.permute.xlu1 %3828  ;;  %v4018_v1 = vsel %vm2367_vm7, %v3931_v12, %v4017_v6 }
 0x94c   : > { %v3953_v22 = vrot.slane %v3829_v33, %v6984_v24 }
 0x94e   : > { %v3958_v19 = vsel %vm2220_vm1, %v3957_v52, %v3953_v22  ;;  %v3838_v54 = vpop.permute.xlu0 %3837 }
 0x94f   : > { %v4020_v37 = vsel %vm2357_vm2, %v3958_v19, %v3949_v47  ;;  %v3966_v26 = vrot.slane %v3838_v54, %v6983_v40  ;;  %v3835_v36 = vpop.permute.xlu1 %3834 }
 0x950   : > { %v3962_v49 = vrot.slane %v3835_v36, %v6984_v24 }
 0x952   : > { %v3967_v60 = vsel %vm2220_vm1, %v3966_v26, %v3962_v49  ;;  %v3850_v31 = vpop.permute.xlu0 %3849 }
 0x953   : > { %v4021_v45 = vsel %vm2359_vm3, %v3967_v60, %v4020_v37  ;;  %v3984_v13 = vrot.slane %v3850_v31, %v6983_v40  ;;  %v3847_v10 = vpop.permute.xlu1 %3846 }
 0x954   : > { %v3980_v3 = vrot.slane %v3847_v10, %v6984_v24 }
 0x956   : > { %v3985_v56 = vsel %vm2220_vm1, %v3984_v13, %v3980_v3  ;;  %v3820_v39 = vpop.permute.xlu0 %3819 }
 0x957   : > { %v3939_v4 = vrot.slane %v3820_v39, %v6983_v40  ;;  %v3817_v42 = vpop.permute.xlu1 %3816 }
 0x958   : > { %v3935_v18 = vrot.slane %v3817_v42, %v6984_v24 }
 0x95a   : > { %v3844_v50 = vpop.permute.xlu0 %3843  ;;  %v3940_v5 = vsel %vm2220_vm1, %v3939_v4, %v3935_v18 }
 0x95b   : > { %v3975_v17 = vrot.slane %v3844_v50, %v6983_v40  ;;  %v3841_v8 = vpop.permute.xlu1 %3840  ;;  %v6705_v23 = vsel %vm2369_vm8, %v3940_v5, %v4018_v1 }
 0x95c   : > { %v3971_v59 = vrot.slane %v3841_v8, %v6984_v24 }
 0x95e   : > { %v3976_v7 = vsel %vm2220_vm1, %v3975_v17, %v3971_v59  ;;  %v3856_v38 = vpop.permute.xlu0 %3855 }
 0x95f   : > { %v4022_v11 = vsel %vm2361_vm4, %v3976_v7, %v4021_v45  ;;  %v3993_v15 = vrot.slane %v3856_v38, %v6983_v40  ;;  %v3853_v29 = vpop.permute.xlu1 %3852 }
 0x960   : > { %v3989_v28 = vrot.slane %v3853_v29, %v6984_v24  ;;  %v4023_v57 = vsel %vm2363_vm5, %v3985_v56, %v4022_v11 }
 0x962   : > { %v3994_v9 = vsel %vm2220_vm1, %v3993_v15, %v3989_v28  ;;  %v4066_v63 = vpop.permute.xlu0 %4065 }
 0x963   : > { %v4063_v32 = vpop.permute.xlu1 %4062  ;;  %v6715_v41 = vsel %vm2365_vm6, %v3994_v9, %v4023_v57  ;;  %v4164_v6 = vrot.slane %v4066_v63, %v6983_v40 }
 0x964   : > { %v4160_v53 = vrot.slane %v4063_v32, %v6984_v24 }
 0x966   : > { %v4078_v58 = vpop.permute.xlu0 %4077  ;;  %v4165_v54 = vsel %vm2220_vm1, %v4164_v6, %v4160_v53 }
 0x967   : > { %v4069_v44 = vpop.permute.xlu1 %4068  ;;  %v4182_v52 = vrot.slane %v4078_v58, %v6983_v40 }
 0x968   : > { %v4169_v12 = vrot.slane %v4069_v44, %v6984_v24 }
 0x96a   : > { %v4090_v14 = vpop.permute.xlu0 %4089 }
 0x96b   : > { %v4072_v2 = vpop.permute.xlu1 %4071  ;;  %v4200_v3 = vrot.slane %v4090_v14, %v6983_v40 }
 0x96c   : > { %v4173_v48 = vrot.slane %v4072_v2, %v6983_v40 }
 0x96e   : > { %v6717_v47 = vpop.permute.xlu0 %4113  ;;  %v4174_v1 = vsel %vm2220_vm1, %v4173_v48, %v4169_v12 }
 0x96f   : > { %v4075_v0 = vpop.permute.xlu1 %4074  ;;  %v4301_v49 = vsel %vm2357_vm2, %v4174_v1, %v4165_v54 }
 0x970   : > { %v4178_v27 = vrot.slane %v4075_v0, %v6984_v24 }
 0x972   : > { %v4084_v20 = vpop.permute.xlu0 %4083  ;;  %v4183_v19 = vsel %vm2220_vm1, %v4182_v52, %v4178_v27 }
 0x973   : > { %v4087_v34 = vpop.permute.xlu1 %4086  ;;  %v4191_v22 = vrot.slane %v4084_v20, %v6983_v40  ;;  %v4302_v13 = vsel %vm2359_vm3, %v4183_v19, %v4301_v49  ;;  %v4236_v20 = vrot.slane %v6717_v47, %v6983_v40 }
 0x974   : > { %v4196_v60 = vrot.slane %v4087_v34, %v6984_v24 }
 0x976   : > { %v4096_v61 = vpop.permute.xlu0 %4095  ;;  %v4201_v42 = vsel %vm2220_vm1, %v4200_v3, %v4196_v60 }
 0x977   : > { %v6719_v16 = vpop.permute.xlu1 %4110  ;;  %v4209_v10 = vrot.slane %v4096_v61, %v6983_v40 }
 0x978   : > { %v4232_v58 = vrot.slane %v6719_v16, %v6984_v24 }
 0x97a   : > { %v4102_v55 = vpop.permute.xlu0 %4101 }
 0x97b   : > { %v4081_v30 = vpop.permute.xlu1 %4080  ;;  %v4218_v56 = vrot.slane %v4102_v55, %v6983_v40 }
 0x97c   : > { %v4187_v21 = vrot.slane %v4081_v30, %v6984_v24 }
 0x97e   : > { %v4120_v51 = vpop.permute.xlu0 %4119  ;;  %v4192_v37 = vsel %vm2220_vm1, %v4191_v22, %v4187_v21 }
 0x97f   : > { %v4093_v46 = vpop.permute.xlu1 %4092  ;;  %v4303_v39 = vsel %vm2361_vm4, %v4192_v37, %v4302_v13  ;;  %v4245_v44 = vrot.slane %v4120_v51, %v6983_v40 }
 0x980   : > { %v4205_v26 = vrot.slane %v4093_v46, %v6984_v24  ;;  %v4304_v59 = vsel %vm2363_vm5, %v4201_v42, %v4303_v39  ;;  %v4237_v46 = vsel %vm2220_vm1, %v4236_v20, %v4232_v58  ;;  %v4317_v42 = vsel %vm2668_vm9, %v6705_v23, -inf  ;;  %v6985_v20 = vld [vmem:[#allocation13_spill] sm:$0xff] }
 0x982   : > { %v4126_v25 = vpop.permute.xlu0 %4125  ;;  %v4210_v4 = vsel %vm2220_vm1, %v4209_v10, %v4205_v26 }
 0x983   : > { %v4099_v43 = vpop.permute.xlu1 %4098  ;;  %v4305_v7 = vsel %vm2365_vm6, %v4210_v4, %v4304_v59  ;;  %v4254_v0 = vrot.slane %v4126_v25, %v6983_v40 }
 0x984   : > { %v4214_v31 = vrot.slane %v4099_v43, %v6984_v24 }
 0x986   : > { %v6722_v35 = vpop.permute.xlu0 %4137  ;;  %v4219_v18 = vsel %vm2220_vm1, %v4218_v56, %v4214_v31 }
 0x987   : > { %v4117_v62 = vpop.permute.xlu1 %4116  ;;  %v4306_v11 = vsel %vm2367_vm7, %v4219_v18, %v4305_v7  ;;  %v4272_v6 = vrot.slane %v6722_v35, %v6983_v40 }
 0x988   : > { %v4241_v63 = vrot.slane %v4117_v62, %v6984_v24 }
 0x98a   : > { %v4108_v36 = vpop.permute.xlu0 %4107  ;;  %v4246_v34 = vsel %vm2220_vm1, %v4245_v44, %v4241_v63 }
 0x98b   : > { %v4123_v33 = vpop.permute.xlu1 %4122  ;;  %v4227_v5 = vrot.slane %v4108_v36, %v6983_v40  ;;  %v4308_v62 = vsel %vm2357_vm2, %v4246_v34, %v4237_v46 }
 0x98c   : > { %v4250_v32 = vrot.slane %v4123_v33, %v6984_v24 }
 0x98e   : > { %v4132_v17 = vpop.permute.xlu0 %4131  ;;  %v4255_v30 = vsel %vm2220_vm1, %v4254_v0, %v4250_v32 }
 0x98f   : > { %v4135_v45 = vpop.permute.xlu1 %4134  ;;  %v4263_v61 = vrot.slane %v4132_v17, %v6983_v40  ;;  %v4309_v48 = vsel %vm2359_vm3, %v4255_v30, %v4308_v62 }
 0x990   : > { %v4268_v25 = vrot.slane %v4135_v45, %v6984_v24 }
 0x992   : > { %v4144_v57 = vpop.permute.xlu0 %4143  ;;  %v4273_v52 = vsel %vm2220_vm1, %v4272_v6, %v4268_v25 }
 0x993   : > { %v4105_v50 = vpop.permute.xlu1 %4104  ;;  %v4281_v27 = vrot.slane %v4144_v57, %v6983_v40 }
 0x994   : > { %v4223_v8 = vrot.slane %v4105_v50, %v6984_v24 }
 0x996   : > { %v4228_v38 = vsel %vm2220_vm1, %v4227_v5, %v4223_v8  ;;  %v4150_v14 = vpop.permute.xlu0 %4149 }
 0x997   : > { %v4129_v15 = vpop.permute.xlu1 %4128  ;;  %v4307_v29 = vsel %vm2369_vm8, %v4228_v38, %v4306_v11  ;;  %v4290_v53 = vrot.slane %v4150_v14, %v6983_v40 }
 0x998   : > { %v4323_v28 = vsel %vm2668_vm9, %v4307_v29, -inf  ;;  %v4259_v2 = vrot.slane %v4129_v15, %v6984_v24 }
 0x999   : > { %4324 = vmax.xlane.f32.xlu1 %v4323_v28 }
 0x99a   : > { %v4264_v16 = vsel %vm2220_vm1, %v4263_v61, %v4259_v2 }
 0x99b   : > { %v4141_v9 = vpop.permute.xlu1 %4140  ;;  %v4310_v12 = vsel %vm2361_vm4, %v4264_v16, %v4309_v48 }
 0x99c   : > { %v4277_v51 = vrot.slane %v4141_v9, %v6984_v24  ;;  %v4311_v37 = vsel %vm2363_vm5, %v4273_v52, %v4310_v12 }
 0x99e   : > { %v4282_v21 = vsel %vm2220_vm1, %v4281_v27, %v4277_v51 }
 0x99f   : > { %v4147_v55 = vpop.permute.xlu1 %4146  ;;  %v4312_v35 = vsel %vm2365_vm6, %v4282_v21, %v4311_v37 }
 0x9a0   : > { %v4286_v47 = vrot.slane %v4147_v55, %v6984_v24 }
 0x9a2   : > { %v4291_v33 = vsel %vm2220_vm1, %v4290_v53, %v4286_v47 }
 0x9a3   : > { %v4313_v36 = vsel %vm2367_vm7, %v4291_v33, %v4312_v35  ;;  %v2908_v33 = vld [vmem:[%s6875_s4 + $0x5] ss:$0 sm:$0xff] }
 0x9a4   : > { %v4156_v43 = vpop.permute.xlu0 %4155 }
 0x9a5   : > { %v4299_v19 = vrot.slane %v4156_v43, %v6983_v40 }
 0x9a8   : > { %v3862_v1 = vpop.permute.xlu0 %3861 }
 0x9a9   : > { %v4153_v22 = vpop.permute.xlu1 %4152  ;;  %v4002_v13 = vrot.slane %v3862_v1, %v6983_v40 }
 0x9aa   : > { %v4295_v54 = vrot.slane %v4153_v22, %v6984_v24 }
 0x9ac   : > { %v4300_v26 = vsel %vm2220_vm1, %v4299_v19, %v4295_v54  ;;  %v3868_v10 = vpop.permute.xlu0 %3867 }
 0x9ad   : > { %v3859_v49 = vpop.permute.xlu1 %3858  ;;  %v4314_v60 = vsel %vm2369_vm8, %v4300_v26, %v4313_v36  ;;  %v4011_v39 = vrot.slane %v3868_v10, %v6983_v40 }
 0x9ae   : > { %v3998_v31 = vrot.slane %v3859_v49, %v6984_v24  ;;  %v4326_v45 = vsel %vm2668_vm9, %v4314_v60, -inf }
 0x9af   : > { %4327 = vmax.xlane.f32.xlu0 %v4326_v45 }
 0x9b0   : > { %v4003_v3 = vsel %vm2220_vm1, %v4002_v13, %v3998_v31 }
 0x9b1   : > { %v3865_v56 = vpop.permute.xlu1 %3864  ;;  %v4025_v50 = vsel %vm2367_vm7, %v4003_v3, %v6715_v41 }
 0x9b2   : > { %v4007_v4 = vrot.slane %v3865_v56, %v6984_v24 }
 0x9b3   : > { %4318 = vmax.xlane.f32.xlu0 %v4317_v42 }
 0x9b4   : > { %v4012_v18 = vsel %vm2220_vm1, %v4011_v39, %v4007_v4 }
 0x9b5   : > { %v4026_v5 = vsel %vm2369_vm8, %v4012_v18, %v4025_v50 }
 0x9b6   : > { %v4320_v17 = vsel %vm2668_vm9, %v4026_v5, -inf }
 0x9b7   : > { %4321 = vmax.xlane.f32.xlu0 %v4320_v17 }
 0xa26   : > { %v4325_v8 = vpop.xlane.xlu1 %4324 }
 0xa27   : > { %v4331_v59 = vsub.f32 %v4307_v29, %v4325_v8 }
 0xa29   : > { %v4337_v7 = vmul.f32 1.442695, %v4331_v59 }
 0xa2b   : > { %4845 = vpow2.f32 %v4337_v7 }
 0xa35   : > { %v4846_v40 = vpop.eup %4845 }
 0xa36   : > { %v4347_v24 = vsel %vm2668_vm9, %v4846_v40, 0.0 }
 0xa37   : > { %4348 = vadd.xlane.f32.xlu1 %v4347_v24 }
 0xa3c   : > { %v4328_v38 = vpop.xlane.xlu0 %4327 }
 0xa3d   : > { %v4332_v11 = vsub.f32 %v4314_v60, %v4328_v38 }
 0xa3f   : > { %v4339_v15 = vmul.f32 1.442695, %v4332_v11 }
 0xa40   : > { %v4319_v28 = vpop.xlane.xlu0 %4318 }
 0xa41   : > { %4847 = vpow2.f32 %v4339_v15  ;;  %v4329_v41 = vsub.f32 %v6705_v23, %v4319_v28  ;;  %v6986_v23 = vld [vmem:[#allocation14_spill] sm:$0xff] }
 0xa42   : > { %v4824_v34 = vpack.i.bf16 %v6986_v23, %v6985_v20  ;;  %v4764_v27 = vpack.c.bf16 %v6986_v23, %v6985_v20 }
 0xa43   : > { %v4333_v57 = vmul.f32 1.442695, %v4329_v41 }
 0xa44   : > { %v4322_v9 = vpop.xlane.xlu0 %4321 }
 0xa45   : > { %4849 = vpow2.f32 %v4333_v57  ;;  %v4330_v63 = vsub.f32 %v4026_v5, %v4322_v9 }
 0xa47   : > { %v4335_v32 = vmul.f32 1.442695, %v4330_v63 }
 0xa49   : > { %4851 = vpow2.f32 %v4335_v32 }
 0xa4b   : > { %v4848_v29 = vpop.eup %4847 }
 0xa4c   : > { %v4350_v58 = vsel %vm2668_vm9, %v4848_v29, 0.0 }
 0xa4d   : > { %4351 = vadd.xlane.f32.xlu0 %v4350_v58 }
 0xa4f   : > { %v4850_v44 = vpop.eup %4849 }
 0xa50   : > { %v4341_v14 = vsel %vm2668_vm9, %v4850_v44, 0.0 }
 0xa51   : > { %4342 = vadd.xlane.f32.xlu1 %v4341_v14 }
 0xa53   : > { %v4852_v2 = vpop.eup %4851 }
 0xa54   : > { %v4344_v0 = vsel %vm2668_vm9, %v4852_v2, 0.0 }
 0xa55   : > { %4345 = vadd.xlane.f32.xlu0 %v4344_v0 }
 0xa62   : > { %4825 = vrot.lane.b32.xlu1 %v4824_v34, %s4934_s10 }
 0xac4   : > { %v4349_v61 = vpop.xlane.xlu1 %4348 }
 0xac5   : > { %4853 = vrcp.f32 %v4349_v61 }
 0xacf   : > { %v4854_v55 = vpop.eup %4853 }
 0xad0   : > { %v4358_v30 = vmul.f32 %v4854_v55, %v4846_v40 }
 0xad2   : > { %4710 = vmatprep.mubr.msk.f32.mxu0 %vm2668_vm9, %v4358_v30 }
 0xada   : > { %v4352_v46 = vpop.xlane.xlu0 %4351 }
 0xadb   : > { %4855 = vrcp.f32 %v4352_v46 }
 0xade   : > { %v4343_v16 = vpop.xlane.xlu1 %4342 }
 0xadf   : > { %4857 = vrcp.f32 %v4343_v16 }
 0xae2   : > { %v4826_v51 = vpop.permute.xlu1 %4825  ;;  %v4346_v43 = vpop.xlane.xlu0 %4345 }
 0xae3   : > { %v4828_v62 = vunpack.i.h.bf16 %v4826_v51  ;;  %v4827_v25 = vunpack.i.l.bf16 %v4826_v51  ;;  %4859 = vrcp.f32 %v4346_v43 }
 0xae5   : > { %v4760_v47 = vpack.c.bf16 %v4828_v62, %v4827_v25  ;;  %v4856_v48 = vpop.eup %4855 }
 0xae6   : > { %v4360_v53 = vmul.f32 %v4856_v48, %v4848_v29 }
 0xae7   : > { %4761 = vmatprep.subr.bf16.mxu0 %v4760_v47 }
 0xae8   : > { %4763 = vmatpush3.bf16.msra.mxu0 %v4760_v47 }
 0xae9   : > { %v4858_v6 = vpop.eup %4857  ;;  %4765 = vmatprep.subr.bf16.mxu0 %v4764_v27 }
 0xaea   : > { %v4354_v12 = vmul.f32 %v4858_v6, %v4850_v44 }
 0xaeb   : > { %4711 = vmatmul.mubr.msk.f32.vlgmr.msra.gmra.mrb[14].mxu0 %vm2668_vm9, %v4360_v53 }
 0xaec   : > { %4767 = vmatpush3.bf16.msra.mxu0 %v4764_v27  ;;  %4717 = vmatprep.mubr.msk.f32.mxu0 %vm2668_vm9, %v4354_v12 }
 0xaed   : > { %v4860_v21 = vpop.eup %4859 }
 0xaee   : > { %v4356_v52 = vmul.f32 %v4860_v21, %v4852_v2 }
 0xaf3   : > { %4718 = vmatmul.mubr.msk.f32.vlgmr.msra.gmra.mrb[14].mxu0 %vm2668_vm9, %v4356_v52 }
 0xbc6   : > { %v4719_v1 = vpop.f32.mrb[14].mxu0 }
 0xbc7   : > { %v4530_v22 = vmul.f32 0.5, %v4719_v1  ;;  %v4520_v19 = vpop.f32.mrb[15].mxu0 }
 0xbc8   : > { %v4529_v54 = vmul.f32 0.5, %v4520_v19 }
 0xbc9   : > { %v4532_v37 = vadd.f32 %v4530_v22, %v2908_v33 }
 0xbca   : > { %v4531_v35 = vadd.f32 %v4529_v54, %v2908_v33 }
 0xbcb   : > { %4861 = vtanh.f32 %v4532_v37 }
 0xbcc   : > { %4863 = vtanh.f32 %v4531_v35 }
 0xbd5   : > { %v4862_v26 = vpop.eup %4861 }
 0xbd6   : > { %v4864_v36 = vpop.eup %4863  ;;  %4536 = vst.msk [vmem:[%s232_s16 + $0x8] sm:$0xff] %vm3356_vm10, %v4862_v26 }
 0xbd7   : > { %4535 = vst.msk [vmem:[%s232_s16] sm:$0xff] %vm3356_vm10, %v4864_v36 }
 0xbd8   : > { %4879 = shalt.err (!%p4876_p3)
}
 0xbd9   : > { %s4880_s9 = scalar_lea.hbm %s6824_s26, 256  ;;  %s4884_s12 = scalar_lea.hbm %s6876_s5, 1024 }
 0xbda   : > { %p4881_p4 = scmp.ne.s32.totalorder %s6824_s26, %s4880_s9  ;;  %p4885_p9 = scmp.lt.u32.totalorder %s6824_s26, %s6876_s5 }
 0xbdb   : > { %p4886_p10 = scmp.lt.u32.totalorder %s4884_s12, %s4880_s9  ;;  %p4888_p12 = scmp.lt.u32.totalorder %s4880_s9, %s6824_s26 }
 0xbdc   : > { %p4882_p7 = pnand %p4881_p4, %p5006_p5 }
 0xbdd   : > { %p4887_p11 = por %p4886_p10, %p4885_p9 }
 0xbde   : > { %p4883_p8 = pneg %p4882_p7 }
 0xbdf   : > { %p4889_p13 = por %p4888_p12, %p4887_p11 }
 0xbe1   : > { %p4890_p0 = pnand %p4889_p13, %p4883_p8 }
 0xbe3   : > { %4893 = shalt.err (!%p4890_p0)
}
 0xbe4   : > { %s4936_s15 = smov 128   ;;  %s4937_s16 = smov 8  }
 0xbe5   : > { %4776 = dma.vmem_to_hbm [thread:$0]  (%p5006_p5), %s6826_s17, 256, %s6824_s26, %s6830_s30, %s4936_s15, %s4936_s15, %s4937_s16  }
 0xbe6 PF: > { %p4782_p1 = scmp.ge.s32.totalorder %s4928_s21, 2  ;;  %s4566_s23 = sand.u32 1, %s4916_s18  }
 0xbe7   : > { %s4567_s25 = scalar_lea.sflag [#allocation3], %s4566_s23 }
 0xbe8   : > { %p4779_p2 = pnand %p4782_p1, %p5010_p6 }
 0xbea   : > { %4911 = dma.done.wait (!%p4779_p2), %s4567_s25, 256  }
 0xbeb   : > { %4913 = vsyncadd (!%p4779_p2), %s4567_s25, 4294967040  ;;  %p15_p3 = scmp.ge.s32.totalorder %s4993_s24, 6   ;;  %s6987_s18 = smov %s4920_s19 }
 0xbec   : > { %s6988_s19 = smov %s4924_s20  ;;  %s6989_s20 = smov %s5004_s27 }
 0xbed   : > { %s6990_s21 = smov %s4993_s24  ;;  %17 = sbr.rel (!%p15_p3) target bundleno = 3 (0x3), region = 80 }
 0xbf4   :  { %4572 = vsyncpa [#allocation3], 1 }
 0xbf5   :  { %4574 = vsyncpa [#allocation3 + $0x1], 1 }

</bundles_post_ra>
